<compile_context>
chip_gen: v6e
topology: v6e:2x2x1
jax: 0.10.0
libtpu: 0.0.40
codegen_flags: <defaults>
</compile_context>

<pallas_src>
import functools
import math

import jax
import jax.numpy as jnp
from jax.experimental import pallas as pl
from jax.experimental.pallas import tpu as pltpu


def _round_up(x, m):
    return (x + m - 1) // m * m


def cnn_attn_kernel(x_ref, wconv_ref, bconv_ref, wheads_ref, o_ref, *, l_valid):
    """One batch block of the CNNAttn forward.

    x_ref:      (Bblk, L_in_p, E)   zero-padded embeddings (matmul dtype)
    wconv_ref:  (K, E, F)           conv weight, one (E, F) matrix per tap
    bconv_ref:  (1, F)              conv bias (f32)
    wheads_ref: (F, 2*Cp)           [upscaling^T | output^T], C zero-padded
    o_ref:      (Bblk, Cp)          weighted sum (padded lanes are exactly 0)
    """
    bblk, l_in_p, e = x_ref.shape
    k_taps, _, f = wconv_ref.shape
    cp2 = wheads_ref.shape[1]
    cp = cp2 // 2
    l_out_p = l_in_p - k_taps + 1
    m = bblk * l_out_p

    # --- Conv1d: K accumulating 2-D matmuls over windows sliced from the
    # VMEM-resident tile (no HBM im2col).  Each per-tap RHS is pushed to the
    # MXU once; M = Bblk * L_out_p rows stream through it. ---
    acc = jnp.zeros((m, f), jnp.float32)
    for k in range(k_taps):                               # static unroll
        # l_out_p is a multiple of 16 -> the collapse reshape is layout-preserving.
        xk = x_ref[:, k:k + l_out_p, :].reshape(m, e)
        acc = acc + jnp.dot(xk, wconv_ref[k],
                            preferred_element_type=jnp.float32)
    h = jnp.tanh(acc + bconv_ref[...])                    # (M, F), f32

    # --- Both attention heads in a single (M, F) @ (F, 2*Cp) matmul; split
    # at the lane-128 boundary (free). ---
    y = jnp.dot(h.astype(wheads_ref.dtype), wheads_ref[...],
                preferred_element_type=jnp.float32)       # (M, 2*Cp)
    y = y.reshape(bblk, l_out_p, cp2)
    branch = y[:, :, :cp]                                 # upscaling head
    hw = y[:, :, cp:]                                     # h @ W_out^T

    # --- softmax over L (padded rows masked out) fused with the weighted sum:
    #     out[b, c] = sum_l alpha[b, l, c] * hw[b, l, c]. ---
    l_idx = jax.lax.broadcasted_iota(jnp.int32, (l_out_p, 1), 0)
    branch = jnp.where(l_idx < l_valid, branch, jnp.float32(-1e30))
    mmax = jnp.max(branch, axis=1, keepdims=True)         # (Bblk, 1, Cp)
    ex = jnp.exp(branch - mmax)                           # exactly 0 on masked rows
    denom = jnp.sum(ex, axis=1)                           # (Bblk, Cp)
    num = jnp.sum(ex * hw, axis=1)                        # (Bblk, Cp)
    o_ref[...] = num * pl.reciprocal(denom, approx=True)


def cnn_attn_forward(seqs, lengths, emb_table, w_conv, b_conv, w_up, w_out,
                     kernel_size, *, batch_block=128,
                     matmul_dtype=jnp.bfloat16):
    """CNNAttn forward.  seqs: (B, L, 1) int32 indices; `lengths` is unused by
    the PyTorch forward, so it is ignored here too."""
    del lengths
    B, L, _ = seqs.shape
    E = emb_table.shape[1]
    F = w_conv.shape[0]
    C = w_out.shape[0]
    K = kernel_size
    pad = K // 2

    L_out = L + 2 * pad - K + 1           # conv output length (PyTorch Conv1d)
    L_out_p = _round_up(L_out, 16)        # sublane-tile aligned for f32 & bf16
    L_in_p = L_out_p + K - 1              # padded input length seen in-kernel

    # ---- glue: embedding gather + zero padding (plain JAX) ----
    # TODO(synk): move the embedding gather in-kernel via
    # PrefetchScalarGridSpec(num_scalar_prefetch=1) with `seqs` prefetched to
    # SMEM and emb_table in memory_space=pl.ANY (manual DMA row gather), to
    # remove this extra HBM round trip.
    x = emb_table[seqs[:, :, 0]]                               # (B, L, E)
    x_pad = jnp.pad(x, ((0, 0), (pad, L_in_p - L - pad), (0, 0)))
    x_pad = x_pad.astype(matmul_dtype)                         # (B, L_in_p, E)

    # ---- batch blocking: keep >= 2 grid blocks when B > 8 so both v7x
    # TensorCores get work; pad B up to a multiple of the block. ----
    assert batch_block % 8 == 0, "batch_block must be a multiple of 8"
    B8 = _round_up(B, 8)
    if batch_block >= B8:
        bblk = _round_up(pl.cdiv(B8, 2), 8) if B8 > 8 else B8
    else:
        bblk = batch_block
    n_blocks = pl.cdiv(B, bblk)
    B_pad = n_blocks * bblk
    if B_pad != B:
        x_pad = jnp.pad(x_pad, ((0, B_pad - B), (0, 0), (0, 0)))

    # ---- weight prep: per-tap conv matrices + fused lane-dense head weight ----
    Cp = _round_up(C, 128)
    wconv_t = jnp.transpose(w_conv, (2, 1, 0)).astype(matmul_dtype)  # (K, E, F)
    bconv_2d = b_conv.reshape(1, F).astype(jnp.float32)
    wheads = jnp.zeros((F, 2 * Cp), matmul_dtype)
    wheads = wheads.at[:, :C].set(w_up.T.astype(matmul_dtype))
    wheads = wheads.at[:, Cp:Cp + C].set(w_out.T.astype(matmul_dtype))

    kernel = functools.partial(cnn_attn_kernel, l_valid=L_out)
    out_padded = pl.pallas_call(
        kernel,
        out_shape=jax.ShapeDtypeStruct((B_pad, Cp), jnp.float32),
        grid_spec=pltpu.PrefetchScalarGridSpec(
            num_scalar_prefetch=0,
            grid=(n_blocks,),
            in_specs=[
                pl.BlockSpec((bblk, L_in_p, E), lambda i: (i, 0, 0)),
                pl.BlockSpec((K, E, F), lambda i: (0, 0, 0)),
                pl.BlockSpec((1, F), lambda i: (0, 0)),
                pl.BlockSpec((F, 2 * Cp), lambda i: (0, 0)),
            ],
            out_specs=pl.BlockSpec((bblk, Cp), lambda i: (i, 0)),
        ),
        compiler_params=pltpu.CompilerParams(
            dimension_semantics=("parallel",),
            # Well above the v5e 16 MiB / v6e-v7x 32 MiB scoped defaults, and
            # comfortably below v7x's 64 MiB physical VMEM per TensorCore.
            # Re-sweep batch_block against this budget per generation.
            vmem_limit_bytes=48 * 1024 * 1024),
    )(x_pad, wconv_t, bconv_2d, wheads)

    return out_padded[:B, :C]


def reference_forward(seqs, emb_table, w_conv, b_conv, w_up, w_out,
                      kernel_size):
    """Pure-JAX reference mirroring the PyTorch forward."""
    B, L, _ = seqs.shape
    F = w_conv.shape[0]
    pad = kernel_size // 2
    hi = jax.lax.Precision.HIGHEST
    x = emb_table[seqs[:, :, 0]]
    x_pad = jnp.pad(x, ((0, 0), (pad, pad), (0, 0)))
    L_out = x_pad.shape[1] - kernel_size + 1
    conv = jnp.broadcast_to(b_conv[None, None, :], (B, L_out, F))
    for k in range(kernel_size):
        conv = conv + jnp.einsum('ble,fe->blf',
                                 x_pad[:, k:k + L_out, :], w_conv[:, :, k],
                                 precision=hi)
    h = jnp.tanh(conv)                                    # (B, L_out, F)
    branch = jnp.einsum('blf,cf->blc', h, w_up, precision=hi)
    branch_t = jnp.transpose(branch, (0, 2, 1))           # (B, C, L_out)
    alpha = jax.nn.softmax(branch_t, axis=2)
    modified = jnp.einsum('bcl,blf->bcf', alpha, h, precision=hi)
    weighted = w_out[None, :, :] * modified
    return weighted.sum(axis=2)                           # (B, C)


if __name__ == "__main__":
    # Small shapes consistent with the module's forward.
    B, L, VOCAB, E = 16, 16, 20, 32         # batch, seq len, vocab, emb dim
    F, K, C = 16, 10, 6                     # num_filters, kernel_size, classes

    key = jax.random.PRNGKey(0)
    ks = jax.random.split(key, 6)

    def xavier_uniform(k, shape, fan_in, fan_out):
        bound = math.sqrt(6.0 / (fan_in + fan_out))
        return jax.random.uniform(k, shape, jnp.float32, -bound, bound)

    emb_table = jax.random.normal(ks[0], (VOCAB, E), jnp.float32)  # frozen emb
    seqs = jax.random.randint(ks[1], (B, L, 1), 0, VOCAB)
    lengths = jnp.full((B,), L, jnp.int32)            # unused by forward
    w_conv = xavier_uniform(ks[2], (F, E, K), E * K, F * K)        # Conv1d.weight
    b_conv = jax.random.uniform(ks[3], (F,), jnp.float32,
                                -1.0 / math.sqrt(E * K), 1.0 / math.sqrt(E * K))
    w_up = xavier_uniform(ks[4], (C, F), F, C)        # upscaling.weight (no bias)
    w_out = xavier_uniform(ks[5], (C, F), F, C)       # output.weight
    # NOTE: output.bias exists in the module but is never used in forward().

    ref = reference_forward(seqs, emb_table, w_conv, b_conv, w_up, w_out, K)

    # Perf default: bf16 matmul operands (MXU-native on v5e/v6e/v7x),
    # f32 accumulation + f32 elementwise path.
    out_bf16 = jax.block_until_ready(
        cnn_attn_forward(seqs, lengths, emb_table, w_conv, b_conv,
                         w_up, w_out, K))
    assert out_bf16.shape == (B, C), out_bf16.shape
    if not jnp.allclose(out_bf16, ref, atol=8e-2, rtol=8e-2):
        raise AssertionError(f"bf16 kernel mismatch:\n{out_bf16}\nvs\n{ref}")

    # Full-f32 operand run to verify the kernel math tightly.
    out_f32 = jax.block_until_ready(
        cnn_attn_forward(seqs, lengths, emb_table, w_conv, b_conv,
                         w_up, w_out, K, matmul_dtype=jnp.float32))
    assert out_f32.shape == (B, C), out_f32.shape
    if not jnp.allclose(out_f32, ref, atol=2e-3, rtol=2e-3):
        raise AssertionError(f"f32 kernel mismatch:\n{out_f32}\nvs\n{ref}")

    print("KERNEL_OK")
</pallas_src>

<mosaic_0001>
module attributes {stable_mosaic.version = 11 : i64} {
  func.func @cnn_attn_kernel(%arg0: i32, %arg1: memref<8x41x32xbf16, #tpu.memory_space<vmem>>, %arg2: memref<10x32x16xbf16, #tpu.memory_space<vmem>>, %arg3: memref<1x16xf32, #tpu.memory_space<vmem>>, %arg4: memref<16x256xbf16, #tpu.memory_space<vmem>>, %arg5: memref<8x128xf32, #tpu.memory_space<vmem>>) attributes {dimension_semantics = [#tpu.dimension_semantics<parallel>], iteration_bounds = array<i64: 2>, scalar_prefetch = 0 : i64, scratch_operands = 0 : i64, tpu.core_type = #tpu.core_type<tc>, window_params = [{transform_indices = @transform_0, window_bounds = array<i64: 8, 41, 32>}, {pipeline_mode = #tpu.pipeline_mode<synchronous>, transform_indices = @transform_1, window_bounds = array<i64: 10, 32, 16>}, {pipeline_mode = #tpu.pipeline_mode<synchronous>, transform_indices = @transform_2, window_bounds = array<i64: 1, 16>}, {pipeline_mode = #tpu.pipeline_mode<synchronous>, transform_indices = @transform_3, window_bounds = array<i64: 16, 256>}, {transform_indices = @transform_4, window_bounds = array<i64: 8, 128>}]} {
    %cst = arith.constant 0.000000e+00 : f32
    %0 = vector.broadcast %cst : f32 to vector<256x16xf32>
    %c0 = arith.constant 0 : index
    %c0_0 = arith.constant 0 : index
    %c0_1 = arith.constant 0 : index
    %1 = vector.load %arg1[%c0, %c0_0, %c0_1] : memref<8x41x32xbf16, #tpu.memory_space<vmem>>, vector<8x32x32xbf16>
    %2 = vector.shape_cast %1 : vector<8x32x32xbf16> to vector<256x32xbf16>
    %c0_2 = arith.constant 0 : index
    %c0_3 = arith.constant 0 : index
    %c0_4 = arith.constant 0 : index
    %3 = vector.load %arg2[%c0_2, %c0_3, %c0_4] : memref<10x32x16xbf16, #tpu.memory_space<vmem>>, vector<1x32x16xbf16>
    %4 = vector.shape_cast %3 : vector<1x32x16xbf16> to vector<32x16xbf16>
    %cst_5 = arith.constant dense<0.000000e+00> : vector<256x16xf32>
    %5 = tpu.matmul %2, %4, %cst_5 {dimension_numbers = #tpu.dot_dimension_numbers<[1], [0], [0], [1], [0, 0, 1, 1], [], []>} : vector<256x32xbf16>, vector<32x16xbf16>, vector<256x16xf32> -> vector<256x16xf32>
    %6 = arith.addf %0, %5 : vector<256x16xf32>
    %c0_6 = arith.constant 0 : index
    %c1 = arith.constant 1 : index
    %c0_7 = arith.constant 0 : index
    %7 = vector.load %arg1[%c0_6, %c1, %c0_7] : memref<8x41x32xbf16, #tpu.memory_space<vmem>>, vector<8x32x32xbf16>
    %8 = vector.shape_cast %7 : vector<8x32x32xbf16> to vector<256x32xbf16>
    %c1_8 = arith.constant 1 : index
    %c0_9 = arith.constant 0 : index
    %c0_10 = arith.constant 0 : index
    %9 = vector.load %arg2[%c1_8, %c0_9, %c0_10] : memref<10x32x16xbf16, #tpu.memory_space<vmem>>, vector<1x32x16xbf16>
    %10 = vector.shape_cast %9 : vector<1x32x16xbf16> to vector<32x16xbf16>
    %cst_11 = arith.constant dense<0.000000e+00> : vector<256x16xf32>
    %11 = tpu.matmul %8, %10, %cst_11 {dimension_numbers = #tpu.dot_dimension_numbers<[1], [0], [0], [1], [0, 0, 1, 1], [], []>} : vector<256x32xbf16>, vector<32x16xbf16>, vector<256x16xf32> -> vector<256x16xf32>
    %12 = arith.addf %6, %11 : vector<256x16xf32>
    %c0_12 = arith.constant 0 : index
    %c2 = arith.constant 2 : index
    %c0_13 = arith.constant 0 : index
    %13 = vector.load %arg1[%c0_12, %c2, %c0_13] : memref<8x41x32xbf16, #tpu.memory_space<vmem>>, vector<8x32x32xbf16>
    %14 = vector.shape_cast %13 : vector<8x32x32xbf16> to vector<256x32xbf16>
    %c2_14 = arith.constant 2 : index
    %c0_15 = arith.constant 0 : index
    %c0_16 = arith.constant 0 : index
    %15 = vector.load %arg2[%c2_14, %c0_15, %c0_16] : memref<10x32x16xbf16, #tpu.memory_space<vmem>>, vector<1x32x16xbf16>
    %16 = vector.shape_cast %15 : vector<1x32x16xbf16> to vector<32x16xbf16>
    %cst_17 = arith.constant dense<0.000000e+00> : vector<256x16xf32>
    %17 = tpu.matmul %14, %16, %cst_17 {dimension_numbers = #tpu.dot_dimension_numbers<[1], [0], [0], [1], [0, 0, 1, 1], [], []>} : vector<256x32xbf16>, vector<32x16xbf16>, vector<256x16xf32> -> vector<256x16xf32>
    %18 = arith.addf %12, %17 : vector<256x16xf32>
    %c0_18 = arith.constant 0 : index
    %c3 = arith.constant 3 : index
    %c0_19 = arith.constant 0 : index
    %19 = vector.load %arg1[%c0_18, %c3, %c0_19] : memref<8x41x32xbf16, #tpu.memory_space<vmem>>, vector<8x32x32xbf16>
    %20 = vector.shape_cast %19 : vector<8x32x32xbf16> to vector<256x32xbf16>
    %c3_20 = arith.constant 3 : index
    %c0_21 = arith.constant 0 : index
    %c0_22 = arith.constant 0 : index
    %21 = vector.load %arg2[%c3_20, %c0_21, %c0_22] : memref<10x32x16xbf16, #tpu.memory_space<vmem>>, vector<1x32x16xbf16>
    %22 = vector.shape_cast %21 : vector<1x32x16xbf16> to vector<32x16xbf16>
    %cst_23 = arith.constant dense<0.000000e+00> : vector<256x16xf32>
    %23 = tpu.matmul %20, %22, %cst_23 {dimension_numbers = #tpu.dot_dimension_numbers<[1], [0], [0], [1], [0, 0, 1, 1], [], []>} : vector<256x32xbf16>, vector<32x16xbf16>, vector<256x16xf32> -> vector<256x16xf32>
    %24 = arith.addf %18, %23 : vector<256x16xf32>
    %c0_24 = arith.constant 0 : index
    %c4 = arith.constant 4 : index
    %c0_25 = arith.constant 0 : index
    %25 = vector.load %arg1[%c0_24, %c4, %c0_25] : memref<8x41x32xbf16, #tpu.memory_space<vmem>>, vector<8x32x32xbf16>
    %26 = vector.shape_cast %25 : vector<8x32x32xbf16> to vector<256x32xbf16>
    %c4_26 = arith.constant 4 : index
    %c0_27 = arith.constant 0 : index
    %c0_28 = arith.constant 0 : index
    %27 = vector.load %arg2[%c4_26, %c0_27, %c0_28] : memref<10x32x16xbf16, #tpu.memory_space<vmem>>, vector<1x32x16xbf16>
    %28 = vector.shape_cast %27 : vector<1x32x16xbf16> to vector<32x16xbf16>
    %cst_29 = arith.constant dense<0.000000e+00> : vector<256x16xf32>
    %29 = tpu.matmul %26, %28, %cst_29 {dimension_numbers = #tpu.dot_dimension_numbers<[1], [0], [0], [1], [0, 0, 1, 1], [], []>} : vector<256x32xbf16>, vector<32x16xbf16>, vector<256x16xf32> -> vector<256x16xf32>
    %30 = arith.addf %24, %29 : vector<256x16xf32>
    %c0_30 = arith.constant 0 : index
    %c5 = arith.constant 5 : index
    %c0_31 = arith.constant 0 : index
    %31 = vector.load %arg1[%c0_30, %c5, %c0_31] : memref<8x41x32xbf16, #tpu.memory_space<vmem>>, vector<8x32x32xbf16>
    %32 = vector.shape_cast %31 : vector<8x32x32xbf16> to vector<256x32xbf16>
    %c5_32 = arith.constant 5 : index
    %c0_33 = arith.constant 0 : index
    %c0_34 = arith.constant 0 : index
    %33 = vector.load %arg2[%c5_32, %c0_33, %c0_34] : memref<10x32x16xbf16, #tpu.memory_space<vmem>>, vector<1x32x16xbf16>
    %34 = vector.shape_cast %33 : vector<1x32x16xbf16> to vector<32x16xbf16>
    %cst_35 = arith.constant dense<0.000000e+00> : vector<256x16xf32>
    %35 = tpu.matmul %32, %34, %cst_35 {dimension_numbers = #tpu.dot_dimension_numbers<[1], [0], [0], [1], [0, 0, 1, 1], [], []>} : vector<256x32xbf16>, vector<32x16xbf16>, vector<256x16xf32> -> vector<256x16xf32>
    %36 = arith.addf %30, %35 : vector<256x16xf32>
    %c0_36 = arith.constant 0 : index
    %c6 = arith.constant 6 : index
    %c0_37 = arith.constant 0 : index
    %37 = vector.load %arg1[%c0_36, %c6, %c0_37] : memref<8x41x32xbf16, #tpu.memory_space<vmem>>, vector<8x32x32xbf16>
    %38 = vector.shape_cast %37 : vector<8x32x32xbf16> to vector<256x32xbf16>
    %c6_38 = arith.constant 6 : index
    %c0_39 = arith.constant 0 : index
    %c0_40 = arith.constant 0 : index
    %39 = vector.load %arg2[%c6_38, %c0_39, %c0_40] : memref<10x32x16xbf16, #tpu.memory_space<vmem>>, vector<1x32x16xbf16>
    %40 = vector.shape_cast %39 : vector<1x32x16xbf16> to vector<32x16xbf16>
    %cst_41 = arith.constant dense<0.000000e+00> : vector<256x16xf32>
    %41 = tpu.matmul %38, %40, %cst_41 {dimension_numbers = #tpu.dot_dimension_numbers<[1], [0], [0], [1], [0, 0, 1, 1], [], []>} : vector<256x32xbf16>, vector<32x16xbf16>, vector<256x16xf32> -> vector<256x16xf32>
    %42 = arith.addf %36, %41 : vector<256x16xf32>
    %c0_42 = arith.constant 0 : index
    %c7 = arith.constant 7 : index
    %c0_43 = arith.constant 0 : index
    %43 = vector.load %arg1[%c0_42, %c7, %c0_43] : memref<8x41x32xbf16, #tpu.memory_space<vmem>>, vector<8x32x32xbf16>
    %44 = vector.shape_cast %43 : vector<8x32x32xbf16> to vector<256x32xbf16>
    %c7_44 = arith.constant 7 : index
    %c0_45 = arith.constant 0 : index
    %c0_46 = arith.constant 0 : index
    %45 = vector.load %arg2[%c7_44, %c0_45, %c0_46] : memref<10x32x16xbf16, #tpu.memory_space<vmem>>, vector<1x32x16xbf16>
    %46 = vector.shape_cast %45 : vector<1x32x16xbf16> to vector<32x16xbf16>
    %cst_47 = arith.constant dense<0.000000e+00> : vector<256x16xf32>
    %47 = tpu.matmul %44, %46, %cst_47 {dimension_numbers = #tpu.dot_dimension_numbers<[1], [0], [0], [1], [0, 0, 1, 1], [], []>} : vector<256x32xbf16>, vector<32x16xbf16>, vector<256x16xf32> -> vector<256x16xf32>
    %48 = arith.addf %42, %47 : vector<256x16xf32>
    %c0_48 = arith.constant 0 : index
    %c8 = arith.constant 8 : index
    %c0_49 = arith.constant 0 : index
    %49 = vector.load %arg1[%c0_48, %c8, %c0_49] : memref<8x41x32xbf16, #tpu.memory_space<vmem>>, vector<8x32x32xbf16>
    %50 = vector.shape_cast %49 : vector<8x32x32xbf16> to vector<256x32xbf16>
    %c8_50 = arith.constant 8 : index
    %c0_51 = arith.constant 0 : index
    %c0_52 = arith.constant 0 : index
    %51 = vector.load %arg2[%c8_50, %c0_51, %c0_52] : memref<10x32x16xbf16, #tpu.memory_space<vmem>>, vector<1x32x16xbf16>
    %52 = vector.shape_cast %51 : vector<1x32x16xbf16> to vector<32x16xbf16>
    %cst_53 = arith.constant dense<0.000000e+00> : vector<256x16xf32>
    %53 = tpu.matmul %50, %52, %cst_53 {dimension_numbers = #tpu.dot_dimension_numbers<[1], [0], [0], [1], [0, 0, 1, 1], [], []>} : vector<256x32xbf16>, vector<32x16xbf16>, vector<256x16xf32> -> vector<256x16xf32>
    %54 = arith.addf %48, %53 : vector<256x16xf32>
    %c0_54 = arith.constant 0 : index
    %c9 = arith.constant 9 : index
    %c0_55 = arith.constant 0 : index
    %55 = vector.load %arg1[%c0_54, %c9, %c0_55] : memref<8x41x32xbf16, #tpu.memory_space<vmem>>, vector<8x32x32xbf16>
    %56 = vector.shape_cast %55 : vector<8x32x32xbf16> to vector<256x32xbf16>
    %c9_56 = arith.constant 9 : index
    %c0_57 = arith.constant 0 : index
    %c0_58 = arith.constant 0 : index
    %57 = vector.load %arg2[%c9_56, %c0_57, %c0_58] : memref<10x32x16xbf16, #tpu.memory_space<vmem>>, vector<1x32x16xbf16>
    %58 = vector.shape_cast %57 : vector<1x32x16xbf16> to vector<32x16xbf16>
    %cst_59 = arith.constant dense<0.000000e+00> : vector<256x16xf32>
    %59 = tpu.matmul %56, %58, %cst_59 {dimension_numbers = #tpu.dot_dimension_numbers<[1], [0], [0], [1], [0, 0, 1, 1], [], []>} : vector<256x32xbf16>, vector<32x16xbf16>, vector<256x16xf32> -> vector<256x16xf32>
    %60 = arith.addf %54, %59 : vector<256x16xf32>
    %c0_60 = arith.constant 0 : index
    %c0_61 = arith.constant 0 : index
    %61 = vector.load %arg3[%c0_60, %c0_61] : memref<1x16xf32, #tpu.memory_space<vmem>>, vector<1x16xf32>
    %62 = vector.broadcast %61 : vector<1x16xf32> to vector<256x16xf32>
    %63 = arith.addf %60, %62 : vector<256x16xf32>
    %64 = math.tanh %63 : vector<256x16xf32>
    %65 = arith.truncf %64 : vector<256x16xf32> to vector<256x16xbf16>
    %c0_62 = arith.constant 0 : index
    %c0_63 = arith.constant 0 : index
    %66 = vector.load %arg4[%c0_62, %c0_63] : memref<16x256xbf16, #tpu.memory_space<vmem>>, vector<16x256xbf16>
    %cst_64 = arith.constant dense<0.000000e+00> : vector<256x256xf32>
    %67 = tpu.matmul %65, %66, %cst_64 {dimension_numbers = #tpu.dot_dimension_numbers<[1], [0], [0], [1], [0, 0, 1, 1], [], []>} : vector<256x16xbf16>, vector<16x256xbf16>, vector<256x256xf32> -> vector<256x256xf32>
    %68 = vector.shape_cast %67 : vector<256x256xf32> to vector<8x32x256xf32>
    %69 = vector.extract_strided_slice %68 {offsets = [0, 0, 0], sizes = [8, 32, 128], strides = [1, 1, 1]} : vector<8x32x256xf32> to vector<8x32x128xf32>
    %70 = vector.extract_strided_slice %68 {offsets = [0, 0, 128], sizes = [8, 32, 128], strides = [1, 1, 1]} : vector<8x32x256xf32> to vector<8x32x128xf32>
    %71 = tpu.iota {dimensions = array<i32: 0>} : vector<32x1xi32>
    %c17_i32 = arith.constant 17 : i32
    %72 = vector.broadcast %c17_i32 : i32 to vector<32x1xi32>
    %73 = arith.cmpi slt, %71, %72 : vector<32x1xi32>
    %cst_65 = arith.constant -1.000000e+30 : f32
    %74 = vector.shape_cast %73 : vector<32x1xi1> to vector<1x32x1xi1>
    %75 = vector.broadcast %74 : vector<1x32x1xi1> to vector<8x32x128xi1>
    %76 = vector.broadcast %cst_65 : f32 to vector<8x32x128xf32>
    %77 = arith.select %75, %69, %76 : vector<8x32x128xi1>, vector<8x32x128xf32>
    %cst_66 = arith.constant dense<0xFF800000> : vector<8x128xf32>
    %78 = vector.multi_reduction <maximumf>, %77, %cst_66 [1] : vector<8x32x128xf32> to vector<8x128xf32>
    %79 = vector.shape_cast %78 : vector<8x128xf32> to vector<8x1x128xf32>
    %80 = vector.broadcast %79 : vector<8x1x128xf32> to vector<8x32x128xf32>
    %81 = arith.subf %77, %80 : vector<8x32x128xf32>
    %82 = math.exp %81 : vector<8x32x128xf32>
    %cst_67 = arith.constant dense<0.000000e+00> : vector<8x128xf32>
    %83 = vector.multi_reduction <add>, %82, %cst_67 [1] : vector<8x32x128xf32> to vector<8x128xf32>
    %84 = arith.mulf %82, %70 : vector<8x32x128xf32>
    %cst_68 = arith.constant dense<0.000000e+00> : vector<8x128xf32>
    %85 = vector.multi_reduction <add>, %84, %cst_68 [1] : vector<8x32x128xf32> to vector<8x128xf32>
    %86 = tpu.reciprocal %83 {approx = true} : vector<8x128xf32> -> vector<8x128xf32>
    %87 = arith.mulf %85, %86 : vector<8x128xf32>
    %c0_69 = arith.constant 0 : index
    %c0_70 = arith.constant 0 : index
    %88 = vector.load %arg5[%c0_69, %c0_70] : memref<8x128xf32, #tpu.memory_space<vmem>>, vector<8x128xf32>
    tpu.vector_store %arg5[%c0_69, %c0_70], %87 {strides = array<i32>} : memref<8x128xf32, #tpu.memory_space<vmem>>, vector<8x128xf32>,
    return
  }
  func.func @transform_0(%arg0: i32) -> (i32, i32, i32) {
    %c0_i32 = arith.constant 0 : i32
    %c0_i32_0 = arith.constant 0 : i32
    %c0_i32_1 = arith.constant 0 : i32
    return %arg0, %c0_i32, %c0_i32_0 : i32, i32, i32
  }
  func.func @transform_1(%arg0: i32) -> (i32, i32, i32) {
    %c0_i32 = arith.constant 0 : i32
    %c0_i32_0 = arith.constant 0 : i32
    %c0_i32_1 = arith.constant 0 : i32
    %c0_i32_2 = arith.constant 0 : i32
    return %c0_i32, %c0_i32_0, %c0_i32_1 : i32, i32, i32
  }
  func.func @transform_2(%arg0: i32) -> (i32, i32) {
    %c0_i32 = arith.constant 0 : i32
    %c0_i32_0 = arith.constant 0 : i32
    %c0_i32_1 = arith.constant 0 : i32
    return %c0_i32, %c0_i32_0 : i32, i32
  }
  func.func @transform_3(%arg0: i32) -> (i32, i32) {
    %c0_i32 = arith.constant 0 : i32
    %c0_i32_0 = arith.constant 0 : i32
    %c0_i32_1 = arith.constant 0 : i32
    return %c0_i32, %c0_i32_0 : i32, i32
  }
  func.func @transform_4(%arg0: i32) -> (i32, i32) {
    %c0_i32 = arith.constant 0 : i32
    %c0_i32_0 = arith.constant 0 : i32
    return %arg0, %c0_i32 : i32, i32
  }
}

</mosaic_0001>

<bundles_post_ra>
// kernel: tpu_custom_call.1
= control target key start
LH: loop header
LB: loop body
LE: loop exit
PB: predicated region body
PF: predicated region fallthrough
CT: control target
= control target key end

     0   :  { %9 = vsyncpa [#allocation3], 0  ;;  %s10555_s0 = inlined_call_operand.vmem [shape: bf16[16,41,32], index: 0, kind: input, shape index: {}]   ;;  %s10556_s1 = inlined_call_operand.vmem [shape: bf16[10,32,16], index: 1, kind: input, shape index: {}]   ;;  %s10557_s2 = inlined_call_operand.vmem [shape: f32[1,16], index: 2, kind: input, shape index: {}]   ;;  %s10558_s3 = inlined_call_operand.vmem [shape: bf16[16,256], index: 3, kind: input, shape index: {}]   ;;  %s10559_s4 = inlined_call_operand.hbm [shape: f32[16,128], index: 4, kind: output, shape index: {}]  }
   0x1   :  { %11 = vsyncpa [#allocation3 + $0x1], 0  ;;  %s7357_s15 = smov 0   ;;  %s7359_s16 = smov 0  }
   0x2   :  { %s7361_s17 = smov 0   ;;  %s7363_s18 = smov 0  }
   0x3 LB: > { %s7378_s19 = sadd.s32 4294967295, %s7328_s18   ;;  %s6002_s20 = sadd.s32 4294967294, %s7328_s18   ;;  %s7328_s18 = sphi %s7363_s18, %s11002_s18   ;;  %s7324_s17 = sphi %s7361_s17, %s11001_s17   ;;  %s7320_s16 = sphi %s7359_s16, %s11000_s16   ;;  %s7316_s15 = sphi %s7357_s15, %s10999_s15  }
   0x4   : > { %s7382_s21 = sadd.s32 1, %s7328_s18   ;;  %s113_s22 = sadd.s32 1, %s7324_s17 }
   0x5   : > { %s110_s23 = ssub.s32 %s7328_s18, %s7382_s21  ;;  %p123_p0 = scmp.ne.s32.totalorder %s7324_s17, %s7320_s16 }
   0x6   : > { %p111_p1 = scmp.eq.s32.totalorder %s110_s23, 0  ;;  %p124_p2 = scmp.eq.s32.totalorder %s7378_s19, 1 }
   0x7   : > { %p129_p3 = scmp.ne.s32.totalorder %s7320_s16, %s7316_s15  ;;  %p130_p4 = scmp.eq.s32.totalorder %s6002_s20, 1 }
   0x8   : > { %s7393_s24 = scalar_select %p111_p1, %s7324_s17, %s113_s22  }
   0x9   : > { %p7395_p5 = por %p124_p2, %p123_p0  ;;  %p7399_p6 = por %p130_p4, %p129_p3 }
   0xa   : > { %p6005_p7 = scmp.ge.s32.totalorder %s7328_s18, 1  ;;  %p167_p8 = scmp.lt.s32.totalorder %s7328_s18, 3 }
   0xc   : > { %p168_p9 = pnand %p6005_p7, %p167_p8 }
   0xe   : > { %171 = sbr.rel (%p168_p9) target bundleno = 992 (0x3e0), region = 36 }
  0x13   : > { %v7021_v0 = vld [vmem:[%s10556_s1 + $0x18] sm:$0xff]   ;;  %s6007_s29 = sshll.u32 %s7378_s19, 3  ;;  %v7022_v1 = vld [vmem:[%s10556_s1 + $0x10] sm:$0xff]   ;;  %vm246_vm0 = vsmask.f32 3328  ;;  %v7415_v2 = vld [vmem:[%s10556_s1 + $0x8] sm:$0xff]  }
  0x14   : > { %p195_p10 = scmp.lt.s32.totalorder %s6007_s29, 15  ;;  %6620 = vmatprep.subr.bf16.mxu1 %v7021_v0  ;;  %v7025_v3 = vld [vmem:[%s10556_s1 + $0x28] sm:$0xff]   ;;  %v7026_v4 = vld [vmem:[%s10556_s1 + $0x20] sm:$0xff]   ;;  %vm247_vm1 = vsmask.f32 7440  ;;  %vm666_vm2 = vcmask 261120  }
  0x15   : > { %6621 = vmatpush3.bf16.msra.mxu1 %v7021_v0  ;;  %6692 = vmatprep.subr.bf16.mxu0 %v7025_v3  ;;  %vm7480_vm3 = vmor %vm246_vm0, %vm247_vm1  ;;  %v10687_v32 = vmov 0  ;;  %v7024_v61 = vld [vmem:[%s10556_s1] sm:$0xff]   ;;  %vm1201_vm4 = vcmask 1042432   ;;  %vm1202_vm5 = vcmask 1046532   ;;  %vm1622_vm7 = vsmask.f32 2304 }
  0x16   : > { %s11004_s29 = smov (!%p195_p10, %s6007_s29), 15  ;;  %6622 = vmatprep.subr.bf16.mxu1 %v7022_v1  ;;  %6693 = vmatpush3.bf16.msra.mxu0 %v7025_v3  ;;  %v10688_v32 = vsel %vm7480_vm3, 4294967295, %v10687_v32  ;;  %vm7866_vm6 = vmor %vm1201_vm4, %vm1202_vm5  ;;  %vm1623_vm8 = vsmask.f32 6416  ;;  %vm2219_vm10 = vcmask 1041408   ;;  %vm2220_vm11 = vcmask 1045508  }
  0x17   : > { %s6980_s8 = smul.u32 24, %s11004_s29  ;;  %6694 = vmatprep.subr.bf16.mxu0 %v7026_v4  ;;  %10689 = vst [vmem:[#allocation11_spill] sm:$0xff] %v10688_v32  ;;  %vm8155_vm9 = vmor %vm1622_vm7, %vm1623_vm8  ;;  %vm2640_vm13 = vsmask.f32 1280  ;;  %vm2641_vm14 = vsmask.f32 5392 }
  0x18   : > { %vm8169_vm12 = vmor %vm2219_vm10, %vm2220_vm11  ;;  %vm3237_vm0 = vcmask 1040384   ;;  %vm3238_vm1 = vcmask 1044484   ;;  %vm3658_vm5 = vsmask.f32 256  ;;  %vm5913_vm8 = vcmask 1041409   ;;  %s191_s28 = sand.u32 1, %s7320_s16  }
  0x19   : > { %6623 = vmatpush3.bf16.msra.mxu1 %v7022_v1  ;;  %s7426_s20 = scalar_lea.vmem %s10555_s0, %s6980_s8  ;;  %vm8813_vm15 = vmor %vm2640_vm13, %vm2641_vm14  ;;  %vm5917_vm10 = vcmask 1043459   ;;  %vm5921_vm11 = vcmask 1045509   ;;  %s6006_s29 = sshll.u32 %s191_s28, 3  ;;  %vm5925_vm13 = vcmask 1047559  }
  0x1a   : > { %v7429_v5 = vld [vmem:[%s7426_s20] sm:$0xf]  ;;  %v7432_v6 = vld [vmem:[%s7426_s20 + $0x4] sm:$0xf]  ;;  %v7435_v7 = vld [vmem:[%s7426_s20 + $0x8] sm:$0xf]  ;;  %6656 = vmatprep.subr.bf16.mxu1 %v7415_v2  ;;  %6695 = vmatpush3.bf16.msra.mxu0 %v7026_v4 }
  0x1b   : > { %v250_v8 = vshrl.u32 %v7429_v5, 16  ;;  %v253_v9 = vshll.u32 %v7429_v5, 16  ;;  %v7441_v10 = vshll.u32 %v7432_v6, 16  ;;  %v7444_v11 = vshrl.u32 %v7432_v6, 16  ;;  %v7447_v12 = vld [vmem:[%s7426_s20 + $0xc] sm:$0xf]  ;;  %vm8822_vm4 = vmor %vm3237_vm0, %vm3238_vm1 }
  0x1c   : > { %v7450_v13 = vshll.u32 %v7435_v7, 16  ;;  %v7453_v14 = vshrl.u32 %v7435_v7, 16  ;;  %v7456_v15 = vld [vmem:[%s7426_s20 + $0x10] sm:$0x1]  ;;  %v7459_v16 = vshll.u32 %v7447_v12, 16  ;;  %v7462_v17 = vshrl.u32 %v7447_v12, 16 }
  0x1d   : > { %10681 = vst [vmem:[#allocation5_spill] sm:$0xff] %v7441_v10  ;;  %10682 = vst [vmem:[#allocation6_spill] sm:$0xff] %v7444_v11  ;;  %v252_v18 = vrot.slane %v250_v8, 4  ;;  %v255_v19 = vrot.slane %v253_v9, 5  ;;  %v261_v20 = vrot.slane %v7441_v10, 5  ;;  %v265_v21 = vrot.slane %v7444_v11, 4 }
  0x1e   : > { %10683 = vst [vmem:[#allocation7_spill] sm:$0xff] %v7450_v13  ;;  %10684 = vst [vmem:[#allocation8_spill] sm:$0xff] %v7453_v14  ;;  %v7467_v22 = vld [vmem:[%s7426_s20 + $0x18] sm:$0xf]  ;;  %v271_v23 = vrot.slane %v7450_v13, 5  ;;  %v275_v24 = vrot.slane %v7453_v14, 4 }
  0x1f   : > { %10685 = vst [vmem:[#allocation9_spill] sm:$0xff] %v7459_v16  ;;  %10686 = vst [vmem:[#allocation10_spill] sm:$0xff] %v7462_v17  ;;  %v281_v25 = vrot.slane %v7459_v16, 5  ;;  %v285_v26 = vrot.slane %v7462_v17, 4  ;;  %v7474_v27 = vld [vmem:[%s7426_s20 + $0x1c] sm:$0xf]  ;;  %v256_v28 = vor.u32 %v255_v19, %v252_v18  ;;  %v266_v29 = vor.u32 %v265_v21, %v261_v20 }
  0x20   : > { %v289_v30 = vshll.u32 %v7456_v15, 16  ;;  %v294_v31 = vshrl.u32 %v7467_v22, 16  ;;  %v276_v33 = vor.u32 %v275_v24, %v271_v23  ;;  %v7485_v35 = vld [vmem:[%s7426_s20 + $0x20] sm:$0xf]  ;;  %v297_v36 = vshll.u32 %v7467_v22, 16  ;;  %s6437_s30 = sshll.u32 %s7378_s19, 7 }
  0x21   : > { %v286_v34 = vor.u32 %v285_v26, %v281_v25  ;;  %v7489_v37 = vshll.u32 %v7474_v27, 16  ;;  %v257_v38 = vrot.slane %v256_v28, 4  ;;  %v267_v39 = vrot.slane %v266_v29, 4  ;;  %v7503_v50 = vld [vmem:[%s7426_s20 + $0x24] sm:$0xf]  ;;  %s193_s5 = scalar_lea.vmem [#allocation2], %s6006_s29  ;;  %s10520_s9 = scalar_lea.hbm %s10559_s4, %s6437_s30 }
  0x22   : > { %v291_v40 = vrot.slane %v289_v30, 5  ;;  %v296_v41 = vrot.slane %v294_v31, 4  ;;  %v277_v42 = vrot.slane %v276_v33, 4  ;;  %v299_v44 = vrot.slane %v297_v36, 5  ;;  %v7506_v51 = vld [vmem:[%s7426_s20 + $0x28] sm:$0x1] }
  0x23   : > { %10690 = vst [vmem:[#allocation12_spill] sm:$0xff] %v7489_v37  ;;  %v287_v43 = vrot.slane %v286_v34, 4  ;;  %v305_v45 = vrot.slane %v7489_v37, 5  ;;  %v262_v46 = vsel %vm7480_vm3, %v257_v38, %v261_v20  ;;  %v272_v47 = vsel %vm7480_vm3, %v267_v39, %v271_v23  ;;  %v7513_v56 = vld [vmem:[%s7426_s20 + $0x30] sm:$0xf]  ;;  %v7544_v20 = vld [vmem:[%s10556_s1 + $0x48] sm:$0xff]  }
  0x24   : > { %v7497_v48 = vshrl.u32 %v7474_v27, 16  ;;  %v7500_v49 = vshll.u32 %v7485_v35, 16  ;;  %v6013_v52 = vcombine.low %v262_v46, %v272_v47  ;;  %v282_v53 = vsel %vm7480_vm3, %v277_v42, %v281_v25  ;;  %v7532_v3 = vld [vmem:[%s7426_s20 + $0x34] sm:$0xf]  ;;  %v7537_v9 = vld [vmem:[%s7426_s20 + $0x38] sm:$0xf]  ;;  %6764 = vmatprep.subr.bf16.mxu0 %v7544_v20 }
  0x25   : > { %v292_v54 = vsel %vm7480_vm3, %v287_v43, %v291_v40  ;;  %v300_v55 = vor.u32 %v299_v44, %v296_v41  ;;  %v7518_v60 = vshrl.u32 %v7485_v35, 16  ;;  %v7525_v63 = vshll.u32 %v7503_v50, 16  ;;  %v7554_v31 = vld [vmem:[%s10556_s1 + $0x38] sm:$0xff]   ;;  %v7577_v47 = vld [vmem:[%s7426_s20 + $0x40] sm:$0x1]  ;;  %s5943_s6 = sshll.u32 %s193_s5, 4  ;;  %s5944_s6 = int_to_ptr.vmem [resolvable:$true] %s5943_s6 }
  0x26   : > { %10691 = vst [vmem:[#allocation13_spill] sm:$0xff] %v7497_v48  ;;  %10692 = vst [vmem:[#allocation14_spill] sm:$0xff] %v7500_v49  ;;  %v6014_v57 = vcombine.low %v282_v53, %v292_v54  ;;  %v309_v58 = vrot.slane %v7497_v48, 4  ;;  %v315_v59 = vrot.slane %v7500_v49, 5  ;;  %6624 = vmatprep.mubr.msk.bf16.mxu1 %vm666_vm2, %v6013_v52  ;;  %v7528_v0 = vshrl.u32 %v7503_v50, 16  ;;  %s5930_s10 = scalar_lea.sflag [#allocation3], %s191_s28 }
  0x27   : > { %10693 = vst [vmem:[#allocation15_spill] sm:$0xff] %v7518_v60  ;;  %v301_v62 = vrot.slane %v300_v55, 4  ;;  %10694 = vst [vmem:[#allocation16_spill] sm:$0xff] %v7525_v63  ;;  %v333_v1 = vshll.u32 %v7506_v51, 16  ;;  %v319_v8 = vrot.slane %v7518_v60, 4  ;;  %v338_v18 = vshrl.u32 %v7513_v56, 16 }
  0x28   : > { %10695 = vst [vmem:[#allocation17_spill] sm:$0xff] %v7528_v0  ;;  %6625 = vmatmul.mubr.msk.bf16.vlgmr.msra.gmra.mxu1 %vm666_vm2, %v6014_v57  ;;  %v310_v4 = vor.u32 %v309_v58, %v305_v45  ;;  %v341_v19 = vshll.u32 %v7513_v56, 16  ;;  %v325_v23 = vrot.slane %v7525_v63, 5  ;;  %v329_v24 = vrot.slane %v7528_v0, 4  ;;  %v7569_v41 = vld [vmem:[%s7426_s20 + $0x3c] sm:$0xf] }
  0x29   : > { %6657 = vmatpush3.bf16.msra.mxu1 %v7415_v2  ;;  %v306_v21 = vsel %vm7480_vm3, %v301_v62, %v305_v45  ;;  %v335_v25 = vrot.slane %v333_v1, 5  ;;  %v320_v28 = vor.u32 %v319_v8, %v315_v59  ;;  %v340_v29 = vrot.slane %v338_v18, 4  ;;  %v7584_v57 = vld [vmem:[%s7426_s20 + $0x48] sm:$0xf]  ;;  %v7597_v1 = vld [vmem:[%s7426_s20 + $0x4c] sm:$0xf] }
  0x2a   : > { %v311_v26 = vrot.slane %v310_v4, 4  ;;  %v343_v30 = vrot.slane %v341_v19, 5  ;;  %6658 = vmatprep.subr.bf16.mxu1 %v7024_v61  ;;  %v330_v2 = vor.u32 %v329_v24, %v325_v23  ;;  %v7558_v33 = vshll.u32 %v7532_v3, 16  ;;  %v7759_v63 = vld [vmem:[%s7426_s20 + $0x98] sm:$0xf]  ;;  %s7268_s11 = scalar_lea.vmem %s5944_s6, 128 }
  0x2b   : > { %v7561_v34 = vshrl.u32 %v7532_v3, 16  ;;  %v7564_v36 = vshll.u32 %v7537_v9, 16  ;;  %v321_v39 = vrot.slane %v320_v28, 4  ;;  %v7572_v42 = vshrl.u32 %v7537_v9, 16  ;;  %v7770_v0 = vld [vmem:[%s7426_s20 + $0x9c] sm:$0xf]  ;;  %p7269_p11 = scmp.ne.s32.totalorder %s5944_s6, %s7268_s11 }
  0x2c   : > { %10696 = vst [vmem:[#allocation18_spill] sm:$0xff] %v7558_v33  ;;  %v316_v38 = vsel %vm7480_vm3, %v311_v26, %v315_v59  ;;  %v344_v40 = vor.u32 %v343_v30, %v340_v29  ;;  %v331_v44 = vrot.slane %v330_v2, 4  ;;  %v349_v45 = vrot.slane %v7558_v33, 5  ;;  %v7607_v29 = vld [vmem:[%s7426_s20 + $0x50] sm:$0xf]  ;;  %s7331_s19 = smov [#allocation2]  }
  0x2d   : > { %10697 = vst [vmem:[#allocation19_spill] sm:$0xff] %v7561_v34  ;;  %10698 = vst [vmem:[#allocation20_spill] sm:$0xff] %v7564_v36  ;;  %v6015_v43 = vcombine.low %v306_v21, %v316_v38  ;;  %v353_v46 = vrot.slane %v7561_v34, 4  ;;  %6659 = vmatpush3.bf16.msra.mxu1 %v7024_v61  ;;  %v326_v52 = vsel %vm7480_vm3, %v321_v39, %v325_v23  ;;  %v359_v54 = vrot.slane %v7564_v36, 5  ;;  %v7720_v33 = vld [vmem:[%s7426_s20 + $0x84] sm:$0xf]  ;;  %p7270_p12 = pnand %p7269_p11, %p7395_p5 }
  0x2e   : > { %10699 = vst [vmem:[#allocation21_spill] sm:$0xff] %v7572_v42  ;;  %v345_v53 = vrot.slane %v344_v40, 4  ;;  %v363_v55 = vrot.slane %v7572_v42, 4  ;;  %6728 = vmatprep.subr.bf16.mxu1 %v7554_v31  ;;  %v336_v58 = vsel %vm7480_vm3, %v331_v44, %v335_v25  ;;  %v7591_v61 = vshll.u32 %v7569_v41, 16  ;;  %v7619_v44 = vld [vmem:[%s7426_s20 + $0x54] sm:$0xf] }
  0x2f   : > { %6628 = vmatprep.mubr.msk.bf16.mxu1 %vm666_vm2, %v6015_v43  ;;  %v354_v59 = vor.u32 %v353_v46, %v349_v45  ;;  %v7594_v62 = vshrl.u32 %v7569_v41, 16  ;;  %v6016_v4 = vcombine.low %v326_v52, %v336_v58  ;;  %v377_v19 = vshll.u32 %v7577_v47, 16  ;;  %v7785_v37 = vld [vmem:[%s7426_s20 + $0xa8] sm:$0xf]  ;;  %v7791_v16 = vld [vmem:[%s7426_s20 + $0xac] sm:$0xf]  ;;  %p7271_p13 = pneg %p7270_p12 }
  0x30   : > { %10700 = vst [vmem:[#allocation22_spill] sm:$0xff] %v7591_v61  ;;  %v350_v8 = vsel %vm7480_vm3, %v345_v53, %v349_v45  ;;  %v364_v18 = vor.u32 %v363_v55, %v359_v54  ;;  %v369_v23 = vrot.slane %v7591_v61, 5  ;;  %v382_v25 = vshrl.u32 %v7584_v57, 16  ;;  %v7622_v45 = vld [vmem:[%s7426_s20 + $0x58] sm:$0x1]  ;;  %s7272_s12 = sshll.u32 %s7331_s19, 4  ;;  %s7273_s12 = int_to_ptr.vmem [resolvable:$false] %s7272_s12 }
  0x31   : > { %10701 = vst [vmem:[#allocation23_spill] sm:$0xff] %v7594_v62  ;;  %v355_v21 = vrot.slane %v354_v59, 4  ;;  %v373_v24 = vrot.slane %v7594_v62, 4  ;;  %6629 = vmatmul.mubr.msk.bf16.gmra.mxu1 %vm666_vm2, %v6016_v4  ;;  %v379_v28 = vrot.slane %v377_v19, 5  ;;  %v385_v30 = vshll.u32 %v7584_v57, 16  ;;  %s7274_s13 = scalar_lea.vmem %s7273_s12, 256  ;;  %p7275_p0 = scmp.lt.s32.totalorder %s5944_s6, %s7273_s12 }
  0x32   : > { %v365_v26 = vrot.slane %v364_v18, 4  ;;  %v7611_v2 = vshll.u32 %v7597_v1, 16  ;;  %v384_v40 = vrot.slane %v382_v25, 4  ;;  %v7616_v43 = vshrl.u32 %v7597_v1, 16  ;;  %v7655_v62 = vld [vmem:[%s7426_s20 + $0x68] sm:$0xf]  ;;  %p7276_p1 = scmp.lt.s32.totalorder %s7274_s13, %s7268_s11 }
  0x33   : > { %v360_v38 = vsel %vm7480_vm3, %v355_v21, %v359_v54  ;;  %v374_v39 = vor.u32 %v373_v24, %v369_v23  ;;  %v387_v53 = vrot.slane %v385_v30, 5  ;;  %v7629_v59 = vshll.u32 %v7607_v29, 16 }
  0x34   : > { %10702 = vst [vmem:[#allocation24_spill] sm:$0xff] %v7611_v2  ;;  %10703 = vst [vmem:[#allocation25_spill] sm:$0xff] %v7616_v43  ;;  %v6017_v46 = vcombine.low %v350_v8, %v360_v38  ;;  %v370_v52 = vsel %vm7480_vm3, %v365_v26, %v369_v23  ;;  %v393_v55 = vrot.slane %v7611_v2, 5  ;;  %v397_v54 = vrot.slane %v7616_v43, 4  ;;  %v7643_v23 = vld [vmem:[%s7426_s20 + $0x60] sm:$0xf]  ;;  %p7277_p2 = por %p7276_p1, %p7275_p0 }
  0x35   : > { %v375_v58 = vrot.slane %v374_v39, 4  ;;  %10704 = vst [vmem:[#allocation26_spill] sm:$0xff] %v7629_v59  ;;  %v7632_v4 = vshrl.u32 %v7607_v29, 16  ;;  %v388_v18 = vor.u32 %v387_v53, %v384_v40  ;;  %v7636_v8 = vshll.u32 %v7619_v44, 16  ;;  %v7650_v38 = vld [vmem:[%s7426_s20 + $0x64] sm:$0xf] }
  0x36   : > { %6632 = vmatprep.mubr.msk.bf16.mxu1 %vm666_vm2, %v6017_v46  ;;  %v7639_v19 = vshrl.u32 %v7619_v44, 16  ;;  %v421_v21 = vshll.u32 %v7622_v45, 16  ;;  %v398_v25 = vor.u32 %v397_v54, %v393_v55  ;;  %v403_v26 = vrot.slane %v7629_v59, 5  ;;  %p7278_p3 = pnand %p7277_p2, %p7271_p13 }
  0x37   : > { %10705 = vst [vmem:[#allocation27_spill] sm:$0xff] %v7632_v4  ;;  %10706 = vst [vmem:[#allocation28_spill] sm:$0xff] %v7636_v8  ;;  %v380_v24 = vsel %vm7480_vm3, %v375_v58, %v379_v28  ;;  %v407_v30 = vrot.slane %v7632_v4, 4  ;;  %v389_v40 = vrot.slane %v388_v18, 4  ;;  %v413_v46 = vrot.slane %v7636_v8, 5 }
  0x38   : > { %10707 = vst [vmem:[#allocation29_spill] sm:$0xff] %v7639_v19  ;;  %v6018_v39 = vcombine.low %v370_v52, %v380_v24  ;;  %v417_v53 = vrot.slane %v7639_v19, 4  ;;  %v399_v2 = vrot.slane %v398_v25, 4  ;;  %v423_v61 = vrot.slane %v421_v21, 5  ;;  %v7671_v8 = vld [vmem:[%s7426_s20 + $0x6c] sm:$0xf] }
  0x39   : > { %v408_v43 = vor.u32 %v407_v30, %v403_v26  ;;  %v426_v28 = vshrl.u32 %v7643_v23, 16  ;;  %v394_v58 = vsel %vm7480_vm3, %v389_v40, %v393_v55  ;;  %v429_v54 = vshll.u32 %v7643_v23, 16  ;;  %v7675_v19 = vld [vmem:[%s7426_s20 + $0x70] sm:$0x1] }
  0x3a   : > { %6633 = vmatmul.mubr.msk.bf16.gmra.mxu1 %vm666_vm2, %v6018_v39  ;;  %v418_v52 = vor.u32 %v417_v53, %v413_v46  ;;  %v7663_v18 = vshll.u32 %v7650_v38, 16  ;;  %v404_v21 = vsel %vm7480_vm3, %v399_v2, %v403_v26  ;;  %v7668_v30 = vshrl.u32 %v7650_v38, 16 }
  0x3b   : > { %v409_v24 = vrot.slane %v408_v43, 4  ;;  %v428_v25 = vrot.slane %v426_v28, 4  ;;  %v6019_v39 = vcombine.low %v394_v58, %v404_v21  ;;  %v431_v40 = vrot.slane %v429_v54, 5  ;;  %v7687_v28 = vld [vmem:[%s7426_s20 + $0x78] sm:$0xf] }
  0x3c   : > { %10708 = vst [vmem:[#allocation30_spill] sm:$0xff] %v7663_v18  ;;  %10709 = vst [vmem:[#allocation31_spill] sm:$0xff] %v7668_v30  ;;  %v419_v55 = vrot.slane %v418_v52, 4  ;;  %v437_v53 = vrot.slane %v7663_v18, 5  ;;  %v441_v2 = vrot.slane %v7668_v30, 4  ;;  %v7681_v43 = vshll.u32 %v7655_v62, 16 }
  0x3d   : > { %v414_v59 = vsel %vm7480_vm3, %v409_v24, %v413_v46  ;;  %v7684_v26 = vshrl.u32 %v7655_v62, 16  ;;  %6636 = vmatprep.mubr.msk.bf16.mxu1 %vm666_vm2, %v6019_v39  ;;  %v432_v52 = vor.u32 %v431_v40, %v428_v25  ;;  %v7693_v54 = vshll.u32 %v7671_v8, 16  ;;  %v7699_v21 = vld [vmem:[%s7426_s20 + $0x7c] sm:$0xf] }
  0x3e   : > { %10710 = vst [vmem:[#allocation32_spill] sm:$0xff] %v7681_v43  ;;  %v424_v58 = vsel %vm7480_vm3, %v419_v55, %v423_v61  ;;  %v7696_v46 = vshrl.u32 %v7671_v8, 16  ;;  %v442_v18 = vor.u32 %v441_v2, %v437_v53  ;;  %v447_v30 = vrot.slane %v7681_v43, 5 }
  0x3f   : > { %10711 = vst [vmem:[#allocation33_spill] sm:$0xff] %v7684_v26  ;;  %10712 = vst [vmem:[#allocation34_spill] sm:$0xff] %v7693_v54  ;;  %v6020_v24 = vcombine.low %v414_v59, %v424_v58  ;;  %v451_v4 = vrot.slane %v7684_v26, 4  ;;  %v433_v39 = vrot.slane %v432_v52, 4  ;;  %v457_v36 = vrot.slane %v7693_v54, 5 }
  0x40   : > { %10713 = vst [vmem:[#allocation35_spill] sm:$0xff] %v7696_v46  ;;  %v461_v61 = vrot.slane %v7696_v46, 4  ;;  %v465_v25 = vshll.u32 %v7675_v19, 16  ;;  %v443_v55 = vrot.slane %v442_v18, 4  ;;  %v470_v42 = vshrl.u32 %v7687_v28, 16 }
  0x41   : > { %v452_v40 = vor.u32 %v451_v4, %v447_v30  ;;  %v473_v59 = vshll.u32 %v7687_v28, 16  ;;  %v438_v2 = vsel %vm7480_vm3, %v433_v39, %v437_v53  ;;  %v7712_v54 = vld [vmem:[%s7426_s20 + $0x80] sm:$0xf]  ;;  %v7715_v46 = vshll.u32 %v7699_v21, 16 }
  0x42   : > { %6637 = vmatmul.mubr.msk.bf16.gmra.mxu1 %vm666_vm2, %v6020_v24  ;;  %v462_v58 = vor.u32 %v461_v61, %v457_v36  ;;  %v467_v52 = vrot.slane %v465_v25, 5  ;;  %v448_v4 = vsel %vm7480_vm3, %v443_v55, %v447_v30  ;;  %v472_v43 = vrot.slane %v470_v42, 4  ;;  %v7732_v42 = vld [vmem:[%s7426_s20 + $0x88] sm:$0x1] }
  0x43   : > { %10714 = vst [vmem:[#allocation36_spill] sm:$0xff] %v7715_v46  ;;  %v453_v18 = vrot.slane %v452_v40, 4  ;;  %v475_v26 = vrot.slane %v473_v59, 5  ;;  %v6021_v24 = vcombine.low %v438_v2, %v448_v4  ;;  %v481_v53 = vrot.slane %v7715_v46, 5 }
  0x44   : > { %v463_v34 = vrot.slane %v462_v58, 4  ;;  %v7724_v39 = vshrl.u32 %v7699_v21, 16  ;;  %v7729_v30 = vshll.u32 %v7712_v54, 16  ;;  %v7735_v55 = vshrl.u32 %v7712_v54, 16 }
  0x45   : > { %v458_v61 = vsel %vm7480_vm3, %v453_v18, %v457_v36  ;;  %v476_v25 = vor.u32 %v475_v26, %v472_v43  ;;  %6640 = vmatprep.mubr.msk.bf16.mxu1 %vm666_vm2, %v6021_v24  ;;  %v7742_v2 = vshll.u32 %v7720_v33, 16  ;;  %v7745_v36 = vshrl.u32 %v7720_v33, 16  ;;  %v7748_v43 = vld [vmem:[%s7426_s20 + $0x90] sm:$0xf]  ;;  %v7753_v24 = vld [vmem:[%s7426_s20 + $0x94] sm:$0xf] }
  0x46   : > { %10715 = vst [vmem:[#allocation37_spill] sm:$0xff] %v7724_v39  ;;  %10716 = vst [vmem:[#allocation38_spill] sm:$0xff] %v7729_v30  ;;  %v468_v40 = vsel %vm7480_vm3, %v463_v34, %v467_v52  ;;  %v485_v59 = vrot.slane %v7724_v39, 4  ;;  %v491_v4 = vrot.slane %v7729_v30, 5  ;;  %v495_v18 = vrot.slane %v7735_v55, 4 }
  0x47   : > { %10717 = vst [vmem:[#allocation39_spill] sm:$0xff] %v7735_v55  ;;  %10718 = vst [vmem:[#allocation40_spill] sm:$0xff] %v7742_v2  ;;  %v6022_v26 = vcombine.low %v458_v61, %v468_v40  ;;  %v477_v58 = vrot.slane %v476_v25, 4  ;;  %v501_v52 = vrot.slane %v7742_v2, 5  ;;  %v505_v46 = vrot.slane %v7745_v36, 4 }
  0x48   : > { %10719 = vst [vmem:[#allocation41_spill] sm:$0xff] %v7745_v36  ;;  %v486_v34 = vor.u32 %v485_v59, %v481_v53  ;;  %v509_v39 = vshll.u32 %v7732_v42, 16  ;;  %v496_v25 = vor.u32 %v495_v18, %v491_v4  ;;  %v514_v40 = vshrl.u32 %v7748_v43, 16  ;;  %v7776_v18 = vld [vmem:[%s7426_s20 + $0xa0] sm:$0x1] }
  0x49   : > { %v482_v61 = vsel %vm7480_vm3, %v477_v58, %v481_v53  ;;  %v517_v30 = vshll.u32 %v7748_v43, 16  ;;  %v506_v2 = vor.u32 %v505_v46, %v501_v52  ;;  %v7767_v36 = vshll.u32 %v7753_v24, 16 }
  0x4a   : > { %6641 = vmatmul.mubr.msk.bf16.gmra.mxu1 %vm666_vm2, %v6022_v26  ;;  %v487_v59 = vrot.slane %v486_v34, 4  ;;  %v511_v55 = vrot.slane %v509_v39, 5  ;;  %v497_v49 = vrot.slane %v496_v25, 4  ;;  %v516_v60 = vrot.slane %v514_v40, 4 }
  0x4b   : > { %10720 = vst [vmem:[#allocation42_spill] sm:$0xff] %v7767_v36  ;;  %v519_v53 = vrot.slane %v517_v30, 5  ;;  %v7773_v58 = vshrl.u32 %v7753_v24, 16  ;;  %v507_v34 = vrot.slane %v506_v2, 4  ;;  %v525_v46 = vrot.slane %v7767_v36, 5 }
  0x4c   : > { %v492_v26 = vsel %vm7480_vm3, %v487_v59, %v491_v4  ;;  %v7782_v39 = vshll.u32 %v7759_v63, 16  ;;  %v502_v30 = vsel %vm7480_vm3, %v497_v49, %v501_v52  ;;  %v7797_v59 = vshrl.u32 %v7759_v63, 16 }
  0x4d   : > { %10721 = vst [vmem:[#allocation43_spill] sm:$0xff] %v7773_v58  ;;  %v6023_v48 = vcombine.low %v482_v61, %v492_v26  ;;  %v520_v25 = vor.u32 %v519_v53, %v516_v60  ;;  %v529_v40 = vrot.slane %v7773_v58, 4  ;;  %v512_v2 = vsel %vm7480_vm3, %v507_v34, %v511_v55  ;;  %v7810_v34 = vld [vmem:[%s7426_s20 + $0xb0] sm:$0xf] }
  0x4e   : > { %10722 = vst [vmem:[#allocation44_spill] sm:$0xff] %v7782_v39  ;;  %v535_v4 = vrot.slane %v7782_v39, 5  ;;  %10723 = vst [vmem:[#allocation45_spill] sm:$0xff] %v7797_v59  ;;  %v7800_v36 = vshll.u32 %v7770_v0, 16  ;;  %v6024_v49 = vcombine.low %v502_v30, %v512_v2  ;;  %v7804_v61 = vshrl.u32 %v7770_v0, 16 }
  0x4f   : > { %6644 = vmatprep.mubr.msk.bf16.mxu1 %vm666_vm2, %v6023_v48  ;;  %v521_v60 = vrot.slane %v520_v25, 4  ;;  %v530_v52 = vor.u32 %v529_v40, %v525_v46  ;;  %v539_v55 = vrot.slane %v7797_v59, 4  ;;  %v553_v26 = vshll.u32 %v7776_v18, 16  ;;  %10726 = vst [vmem:[#allocation48_spill] sm:$0xff] %v7810_v34  ;;  %v7818_v39 = vld [vmem:[%s7426_s20 + $0xb4] sm:$0xf] }
  0x50   : > { %10724 = vst [vmem:[#allocation46_spill] sm:$0xff] %v7800_v36  ;;  %10725 = vst [vmem:[#allocation47_spill] sm:$0xff] %v7804_v61  ;;  %v545_v53 = vrot.slane %v7800_v36, 5  ;;  %v558_v48 = vshrl.u32 %v7785_v37, 16  ;;  %v549_v40 = vrot.slane %v7804_v61, 4  ;;  %v561_v2 = vshll.u32 %v7785_v37, 16 }
  0x51   : > { %v526_v30 = vsel %vm7480_vm3, %v521_v60, %v525_v46  ;;  %v531_v25 = vrot.slane %v530_v52, 4  ;;  %10727 = vst [vmem:[#allocation49_spill] sm:$0xff] %v7818_v39  ;;  %v540_v36 = vor.u32 %v539_v55, %v535_v4  ;;  %v555_v59 = vrot.slane %v553_v26, 5  ;;  %v7830_v61 = vld [vmem:[%s7426_s20 + $0xb8] sm:$0x1] }
  0x52   : > { %6645 = vmatmul.mubr.msk.bf16.gmra.mxu1 %vm666_vm2, %v6024_v49  ;;  %v560_v58 = vrot.slane %v558_v48, 4  ;;  %v7822_v17 = vshll.u32 %v7791_v16, 16  ;;  %v550_v46 = vor.u32 %v549_v40, %v545_v53  ;;  %v563_v60 = vrot.slane %v561_v2, 5 }
  0x53   : > { %v536_v13 = vsel %vm7480_vm3, %v531_v25, %v535_v4  ;;  %v7827_v52 = vshrl.u32 %v7791_v16, 16  ;;  %v541_v10 = vrot.slane %v540_v36, 4  ;;  %v7834_v55 = vshll.u32 %v7810_v34, 16  ;;  %v1177_v25 = vld [vmem:[%s7426_s20] sm:$0xe] }
  0x54   : > { %10728 = vst [vmem:[#allocation50_spill] sm:$0xff] %v7822_v17  ;;  %v6025_v14 = vcombine.low %v526_v30, %v536_v13  ;;  %v569_v49 = vrot.slane %v7822_v17, 5  ;;  %v551_v26 = vrot.slane %v550_v46, 4  ;;  %v564_v48 = vor.u32 %v563_v60, %v560_v58 }
  0x55   : > { %10729 = vst [vmem:[#allocation51_spill] sm:$0xff] %v7827_v52  ;;  %10730 = vst [vmem:[#allocation52_spill] sm:$0xff] %v7834_v55  ;;  %v573_v11 = vrot.slane %v7827_v52, 4  ;;  %v7838_v4 = vshrl.u32 %v7810_v34, 16  ;;  %v546_v40 = vsel %vm7480_vm3, %v541_v10, %v545_v53  ;;  %v579_v13 = vrot.slane %v7834_v55, 5 }
  0x56   : > { %6648 = vmatprep.mubr.msk.bf16.mxu1 %vm666_vm2, %v6025_v14  ;;  %v7846_v36 = vshll.u32 %v7818_v39, 16  ;;  %v7849_v30 = vshrl.u32 %v7818_v39, 16  ;;  %v556_v58 = vsel %vm7480_vm3, %v551_v26, %v555_v59  ;;  %v565_v2 = vrot.slane %v564_v48, 4  ;;  %v8165_v48 = vld [vmem:[%s7426_s20] sm:$0xc] }
  0x57   : > { %10731 = vst [vmem:[#allocation53_spill] sm:$0xff] %v7838_v4  ;;  %v574_v46 = vor.u32 %v573_v11, %v569_v49  ;;  %v583_v60 = vrot.slane %v7838_v4, 4  ;;  %v6026_v17 = vcombine.low %v546_v40, %v556_v58  ;;  %v597_v53 = vshll.u32 %v7830_v61, 16 }
  0x58   : > { %10732 = vst [vmem:[#allocation54_spill] sm:$0xff] %v7846_v36  ;;  %10733 = vst [vmem:[#allocation55_spill] sm:$0xff] %v7849_v30  ;;  %v589_v14 = vrot.slane %v7846_v36, 5  ;;  %v593_v10 = vrot.slane %v7849_v30, 4  ;;  %v570_v55 = vsel %vm7480_vm3, %v565_v2, %v569_v49  ;;  %v6047_v39 = vcombine.low %v7429_v5, %v7432_v6 }
  0x59   : > { %v575_v52 = vrot.slane %v574_v46, 4  ;;  %v584_v34 = vor.u32 %v583_v60, %v579_v13  ;;  %v599_v59 = vrot.slane %v597_v53, 5  ;;  %v6081_v40 = vrot.slane %v1177_v25, 9 }
  0x5a   : > { %6649 = vmatmul.mubr.msk.bf16.gmra.mxu1 %vm666_vm2, %v6026_v17  ;;  %v594_v11 = vor.u32 %v593_v10, %v589_v14  ;;  %v1206_v5 = vrot.slane %v7432_v6, 5  ;;  %v1209_v17 = vrot.slane %v7435_v7, 5  ;;  %v1626_v60 = vshrl.u32 %v1177_v25, 16 }
  0x5b   : > { %v580_v49 = vsel %vm7480_vm3, %v575_v52, %v579_v13  ;;  %v585_v58 = vrot.slane %v584_v34, 4  ;;  %v1629_v10 = vshll.u32 %v1177_v25, 16  ;;  %v7887_v25 = vld [vmem:[%s7426_s20 + $0x18] sm:$0xe] }
  0x5c   : > { %v6027_v2 = vcombine.low %v570_v55, %v580_v49  ;;  %v595_v46 = vrot.slane %v594_v11, 4  ;;  %v1207_v26 = vsel %vm7866_vm6, %v6081_v40, %v1206_v5  ;;  %v1208_v36 = vrot.slane %v1206_v5, 4 }
  0x5d   : > { %v590_v53 = vsel %vm7480_vm3, %v585_v58, %v589_v14  ;;  %v1211_v30 = vrot.slane %v1209_v17, 4  ;;  %v7881_v6 = vrot.slane %v1626_v60, 5  ;;  %v7883_v52 = vrot.slane %v1629_v10, 6 }
  0x5e   : > { %6652 = vmatprep.mubr.msk.bf16.mxu1 %vm666_vm2, %v6027_v2  ;;  %v600_v34 = vsel %vm7480_vm3, %v595_v46, %v599_v59  ;;  %v1212_v55 = vrot.slane %v7447_v12, 5  ;;  %v1210_v14 = vsel %vm7866_vm6, %v1208_v36, %v1209_v17  ;;  %v1215_v11 = vrot.slane %v7456_v15, 5  ;;  %v7903_v15 = vld [vmem:[%s7426_s20 + $0x30] sm:$0xe] }
  0x5f   : > { %v6028_v13 = vcombine.low %v590_v53, %v600_v34  ;;  %v6049_v40 = vcombine.low %v7467_v22, %v7474_v27  ;;  %v6093_v49 = vcombine.low %v1207_v26, %v1210_v14  ;;  %v6050_v5 = vcombine.low %v7485_v35, %v7503_v50 }
  0x60   : > { %v1213_v59 = vsel %vm7866_vm6, %v1211_v30, %v1212_v55  ;;  %v1214_v58 = vrot.slane %v1212_v55, 4  ;;  %v6082_v2 = vrot.slane %v7887_v25, 9  ;;  %v1219_v46 = vrot.slane %v7474_v27, 5  ;;  %v7046_v55 = vld [vmem:[%s10556_s1 + $0x40] sm:$0xff]  }
  0x61   : > { %v1222_v60 = vrot.slane %v7485_v35, 5  ;;  %v1225_v36 = vrot.slane %v7503_v50, 5  ;;  %6696 = vmatprep.mubr.msk.bf16.mxu0 %vm666_vm2, %v6093_v49  ;;  %v1228_v30 = vrot.slane %v7506_v51, 5  ;;  %v6051_v26 = vcombine.low %v7513_v56, %v7532_v3 }
  0x62   : > { %6653 = vmatmul.mubr.msk.bf16.gmra.mxu1 %vm666_vm2, %v6028_v13  ;;  %v1216_v22 = vsel %vm7866_vm6, %v1214_v58, %v1215_v11  ;;  %v1220_v10 = vsel %vm7866_vm6, %v6082_v2, %v1219_v46  ;;  %v1221_v53 = vrot.slane %v1219_v46, 4  ;;  %v6083_v13 = vrot.slane %v7903_v15, 9  ;;  %v7931_v2 = vld [vmem:[%s7426_s20 + $0x48] sm:$0xe] }
  0x63   : > { %6660 = vmatprep.mubr.msk.bf16.mxu1 %vm666_vm2, %v6047_v39  ;;  %v6094_v17 = vcombine.low %v1213_v59, %v1216_v22  ;;  %v1224_v34 = vrot.slane %v1222_v60, 4  ;;  %v1227_v51 = vrot.slane %v1225_v36, 4  ;;  %v1232_v14 = vrot.slane %v7532_v3, 5 }
  0x64   : > { %v1235_v11 = vrot.slane %v7537_v9, 5  ;;  %v1223_v39 = vsel %vm7866_vm6, %v1221_v53, %v1222_v60  ;;  %v1238_v59 = vrot.slane %v7569_v41, 5  ;;  %v1241_v58 = vrot.slane %v7577_v47, 5 }
  0x65   : > { %6697 = vmatmul.mubr.msk.bf16.vlgmr.msra.gmra.mxu0 %vm666_vm2, %v6094_v17  ;;  %v1226_v49 = vsel %vm7866_vm6, %v1224_v34, %v1225_v36  ;;  %v6095_v46 = vcombine.low %v1220_v10, %v1223_v39  ;;  %v1229_v22 = vsel %vm7866_vm6, %v1227_v51, %v1228_v30  ;;  %v1233_v27 = vsel %vm7866_vm6, %v6083_v13, %v1232_v14  ;;  %v7037_v51 = vld [vmem:[%s10556_s1 + $0x30] sm:$0xff]   ;;  %v7953_v13 = vld [vmem:[%s10556_s1 + $0x68] sm:$0xff]  }
  0x66   : > { %v1234_v17 = vrot.slane %v1232_v14, 4  ;;  %6765 = vmatpush3.bf16.msra.mxu0 %v7544_v20  ;;  %v6096_v60 = vcombine.low %v1226_v49, %v1229_v22  ;;  %v1237_v53 = vrot.slane %v1235_v11, 4  ;;  %v1240_v36 = vrot.slane %v1238_v59, 4  ;;  %v10747_v30 = vld [vmem:[#allocation9_spill] sm:$0xff] }
  0x67   : > { %v6053_v34 = vcombine.low %v7584_v57, %v7597_v1  ;;  %6766 = vmatprep.subr.bf16.mxu0 %v7046_v55  ;;  %6700 = vmatprep.mubr.msk.bf16.mxu0 %vm666_vm2, %v6095_v46  ;;  %v6084_v10 = vrot.slane %v7931_v2, 9  ;;  %v1245_v20 = vrot.slane %v7597_v1, 5  ;;  %v1248_v49 = vrot.slane %v7607_v29, 5  ;;  %v7965_v46 = vld [vmem:[%s7426_s20 + $0x60] sm:$0xe]  ;;  %v10746_v57 = vld [vmem:[#allocation10_spill] sm:$0xff] }
  0x68   : > { %v1236_v47 = vsel %vm7866_vm6, %v1234_v17, %v1235_v11  ;;  %v7957_v11 = vsel %vm7866_vm6, %v1237_v53, %v1238_v59  ;;  %v7961_v39 = vsel %vm7866_vm6, %v1240_v36, %v1241_v58  ;;  %v10736_v22 = vcombine.low %v7435_v7, %v7447_v12 }
  0x69   : > { %v6097_v14 = vcombine.low %v1233_v27, %v1236_v47  ;;  %v6098_v27 = vcombine.low %v7957_v11, %v7961_v39  ;;  %v7975_v59 = vsel %vm7866_vm6, %v6084_v10, %v1245_v20  ;;  %v1247_v17 = vrot.slane %v1245_v20, 4 }
  0x6a   : > { %6661 = vmatmul.mubr.msk.bf16.vlgmr.msra.gmra.mxu1 %vm666_vm2, %v10736_v22  ;;  %v1251_v58 = vrot.slane %v7619_v44, 5  ;;  %6767 = vmatpush3.bf16.msra.mxu0 %v7046_v55  ;;  %v1250_v53 = vrot.slane %v1248_v49, 4  ;;  %v1254_v7 = vrot.slane %v7622_v45, 5  ;;  %v6085_v55 = vrot.slane %v7965_v46, 9 }
  0x6b   : > { %6729 = vmatpush3.bf16.msra.mxu1 %v7554_v31  ;;  %6664 = vmatprep.mubr.msk.bf16.mxu1 %vm666_vm2, %v6049_v40  ;;  %v1249_v47 = vsel %vm7866_vm6, %v1247_v17, %v1248_v49  ;;  %v1258_v31 = vrot.slane %v7650_v38, 5  ;;  %v7992_v40 = vld [vmem:[%s10556_s1 + $0x58] sm:$0xff]   ;;  %v1261_v11 = vrot.slane %v7655_v62, 5  ;;  %v1264_v39 = vrot.slane %v7671_v8, 5 }
  0x6c   : > { %v1253_v10 = vrot.slane %v1251_v58, 4  ;;  %6730 = vmatprep.subr.bf16.mxu1 %v7037_v51  ;;  %6836 = vmatprep.subr.bf16.mxu0 %v7953_v13  ;;  %v6099_v45 = vcombine.low %v7975_v59, %v1249_v47  ;;  %v7999_v20 = vsel %vm7866_vm6, %v1250_v53, %v1251_v58  ;;  %v8004_v49 = vld [vmem:[%s7426_s20 + $0x78] sm:$0xe]  ;;  %v1267_v17 = vrot.slane %v7675_v19, 5 }
  0x6d   : > { %6701 = vmatmul.mubr.msk.bf16.gmra.mxu0 %vm666_vm2, %v6096_v60  ;;  %v8013_v60 = vsel %vm7866_vm6, %v6085_v55, %v1258_v31  ;;  %v1260_v59 = vrot.slane %v1258_v31, 4  ;;  %v1263_v53 = vrot.slane %v1261_v11, 4  ;;  %v1266_v47 = vrot.slane %v1264_v39, 4 }
  0x6e   : > { %6704 = vmatprep.mubr.msk.bf16.mxu0 %vm666_vm2, %v6097_v14  ;;  %v8009_v22 = vsel %vm7866_vm6, %v1253_v10, %v1254_v7  ;;  %v6086_v55 = vrot.slane %v8004_v49, 9  ;;  %v1271_v19 = vrot.slane %v7699_v21, 5  ;;  %v8041_v10 = vld [vmem:[%s7426_s20 + $0x90] sm:$0xe]  ;;  %v1280_v35 = vrot.slane %v7732_v42, 5 }
  0x6f   : > { %v6100_v58 = vcombine.low %v7999_v20, %v8009_v22  ;;  %6731 = vmatpush3.bf16.msra.mxu1 %v7037_v51  ;;  %v8022_v7 = vsel %vm7866_vm6, %v1260_v59, %v1261_v11  ;;  %v8033_v31 = vsel %vm7866_vm6, %v1263_v53, %v1264_v39  ;;  %v8037_v11 = vsel %vm7866_vm6, %v1266_v47, %v1267_v17 }
  0x70   : > { %6800 = vmatprep.subr.bf16.mxu1 %v7992_v40  ;;  %v6101_v51 = vcombine.low %v8013_v60, %v8022_v7  ;;  %v1274_v59 = vrot.slane %v7712_v54, 5  ;;  %v8051_v39 = vsel %vm7866_vm6, %v6086_v55, %v1271_v19  ;;  %v1273_v53 = vrot.slane %v1271_v19, 4  ;;  %v1614_v60 = vld [vmem:[%s7426_s20 + $0x10] sm:$0x3] }
  0x71   : > { %v1277_v17 = vrot.slane %v7720_v33, 5  ;;  %v6087_v19 = vrot.slane %v8041_v10, 9  ;;  %v1284_v56 = vrot.slane %v7753_v24, 5  ;;  %v1645_v32 = vrot.slane %v10747_v30, 6  ;;  %v8179_v30 = vld [vmem:[%s7426_s20 + $0x4] sm:$0xf] }
  0x72   : > { %6665 = vmatmul.mubr.msk.bf16.gmra.mxu1 %vm666_vm2, %v6050_v5  ;;  %v1276_v47 = vrot.slane %v1274_v59, 4  ;;  %v8065_v7 = vsel %vm7866_vm6, %v1273_v53, %v1274_v59  ;;  %v1290_v5 = vrot.slane %v7770_v0, 5  ;;  %v8079_v59 = vld [vmem:[%s7426_s20 + $0xa8] sm:$0xe]  ;;  %v2644_v20 = vshrl.u32 %v8165_v48, 16 }
  0x73   : > { %6668 = vmatprep.mubr.msk.bf16.mxu1 %vm666_vm2, %v6051_v26  ;;  %v1279_v55 = vrot.slane %v1277_v17, 4  ;;  %v1287_v26 = vrot.slane %v7759_v63, 5  ;;  %v1286_v50 = vrot.slane %v1284_v56, 4 }
  0x74   : > { %v8074_v42 = vsel %vm7866_vm6, %v1276_v47, %v1277_v17  ;;  %v1293_v17 = vrot.slane %v7776_v18, 5  ;;  %v1292_v36 = vrot.slane %v1290_v5, 4 }
  0x75   : > { %6705 = vmatmul.mubr.msk.bf16.gmra.mxu0 %vm666_vm2, %v6098_v27  ;;  %v8084_v53 = vsel %vm7866_vm6, %v1279_v55, %v1280_v35  ;;  %v8088_v27 = vsel %vm7866_vm6, %v6087_v19, %v1284_v56  ;;  %v1289_v14 = vrot.slane %v1287_v26, 4  ;;  %v10737_v35 = vld [vmem:[#allocation49_spill] sm:$0xff]  ;;  %v10738_v55 = vld [vmem:[#allocation48_spill] sm:$0xff]  ;;  %v6088_v19 = vrot.slane %v8079_v59, 9 }
  0x76   : > { %6708 = vmatprep.mubr.msk.bf16.mxu0 %vm666_vm2, %v6099_v45  ;;  %v8097_v45 = vsel %vm7866_vm6, %v1286_v50, %v1287_v26  ;;  %v1297_v56 = vrot.slane %v7791_v16, 5  ;;  %v8111_v3 = vsel %vm7866_vm6, %v1292_v36, %v1293_v17  ;;  %v1300_v50 = vrot.slane %v10738_v55, 5  ;;  %10751 = vst [vmem:[#allocation49_spill] sm:$0xff] %v8179_v30 }
  0x77   : > { %v8107_v47 = vsel %vm7866_vm6, %v1289_v14, %v1290_v5  ;;  %v10739_v26 = vcombine.low %v7537_v9, %v7569_v41  ;;  %v1303_v5 = vrot.slane %v10737_v35, 5  ;;  %v1306_v9 = vrot.slane %v7830_v61, 5  ;;  %v10741_v61 = vld [vmem:[#allocation5_spill] sm:$0xff] }
  0x78   : > { %v8122_v18 = vsel %vm7866_vm6, %v6088_v19, %v1297_v56  ;;  %v1299_v14 = vrot.slane %v1297_v56, 4  ;;  %v1302_v36 = vrot.slane %v1300_v50, 4  ;;  %v1632_v19 = vor.u32 %v7883_v52, %v7881_v6  ;;  %v10740_v56 = vld [vmem:[#allocation6_spill] sm:$0xff] }
  0x79   : > { %v1305_v17 = vrot.slane %v1303_v5, 4 }
  0x7a   : > { %6669 = vmatmul.mubr.msk.bf16.gmra.mxu1 %vm666_vm2, %v10739_v26  ;;  %v8132_v41 = vsel %vm7866_vm6, %v1299_v14, %v1300_v50  ;;  %v1634_v26 = vrot.slane %v10740_v56, 5  ;;  %v8146_v1 = vsel %vm7866_vm6, %v1302_v36, %v1303_v5  ;;  %v10742_v50 = vld [vmem:[#allocation8_spill] sm:$0xff]  ;;  %v1633_v22 = vrot.slane %v1632_v19, 4 }
  0x7b   : > { %6672 = vmatprep.mubr.msk.bf16.mxu1 %vm666_vm2, %v6053_v34  ;;  %v1635_v34 = vrot.slane %v10741_v61, 6  ;;  %v1639_v6 = vrot.slane %v10742_v50, 5  ;;  %v8153_v52 = vsel %vm7866_vm6, %v1305_v17, %v1306_v9  ;;  %v1644_v5 = vrot.slane %v10746_v57, 5 }
  0x7c   : > { %v1653_v17 = vshll.u32 %v1614_v60, 16  ;;  %v6165_v36 = vrot.slane %v8165_v48, 10  ;;  %v10764_v61 = vcombine.low %v7687_v28, %v7699_v21  ;;  %vm3659_vm6 = vsmask.f32 4368 }
  0x7d   : > { %6709 = vmatmul.mubr.msk.bf16.gmra.mxu0 %vm666_vm2, %v6100_v58  ;;  %v10745_v58 = vld [vmem:[#allocation7_spill] sm:$0xff]  ;;  %v1636_v12 = vor.u32 %v1635_v34, %v1634_v26  ;;  %v10750_v34 = vcombine.low %v7607_v29, %v7619_v44  ;;  %v8189_v29 = vld [vmem:[%s7426_s20 + $0x8] sm:$0xf]  ;;  %vm9237_vm7 = vmor %vm3658_vm5, %vm3659_vm6 }
  0x7e   : > { %6712 = vmatprep.mubr.msk.bf16.mxu0 %vm666_vm2, %v6101_v51  ;;  %v1640_v14 = vrot.slane %v10745_v58, 6  ;;  %v1650_v51 = vshrl.u32 %v1614_v60, 16  ;;  %v1646_v58 = vor.u32 %v1645_v32, %v1644_v5  ;;  %v10752_v32 = vcombine.low %v7643_v23, %v7650_v38  ;;  %10753 = vst [vmem:[#allocation48_spill] sm:$0xff] %v8189_v29 }
  0x7f   : > { %v1637_v19 = vsel %vm8155_vm9, %v1633_v22, %v1636_v12  ;;  %v1638_v57 = vrot.slane %v1636_v12, 4  ;;  %v2224_v22 = vrot.slane %v8179_v30, 6  ;;  %v2227_v44 = vrot.slane %v8189_v29, 6 }
  0x80   : > { %v1641_v9 = vor.u32 %v1640_v14, %v1639_v6  ;;  %v1652_v50 = vrot.slane %v1650_v51, 5  ;;  %v1655_v14 = vrot.slane %v1653_v17, 6  ;;  %v1648_v5 = vrot.slane %v1646_v58, 4  ;;  %v8193_v51 = vld [vmem:[%s7426_s20 + $0xc] sm:$0xf] }
  0x81   : > { %10754 = vst [vmem:[#allocation6_spill] sm:$0xff] %v8193_v51  ;;  %v2230_v17 = vrot.slane %v8193_v51, 6  ;;  %v8204_v38 = vsel %vm8169_vm12, %v6165_v36, %v2224_v22  ;;  %v1659_v36 = vshrl.u32 %v7887_v25, 16 }
  0x82   : > { %6673 = vmatmul.mubr.msk.bf16.gmra.mxu1 %vm666_vm2, %v10750_v34  ;;  %v1643_v6 = vrot.slane %v1641_v9, 4  ;;  %v1642_v12 = vsel %vm8155_vm9, %v1638_v57, %v1641_v9  ;;  %v1656_v23 = vor.u32 %v1655_v14, %v1652_v50  ;;  %v10755_v57 = vcombine.low %v8033_v31, %v8037_v11  ;;  %v10757_v11 = vld [vmem:[#allocation13_spill] sm:$0xff] }
  0x83   : > { %6676 = vmatprep.mubr.msk.bf16.mxu1 %vm666_vm2, %v10752_v32  ;;  %v8196_v34 = vcombine.low %v1637_v19, %v1642_v12  ;;  %v2226_v9 = vrot.slane %v2224_v22, 4  ;;  %v2229_v32 = vrot.slane %v2227_v44, 4  ;;  %v2232_v51 = vrot.slane %v2230_v17, 4  ;;  %v1615_v22 = vld [vmem:[%s7426_s20 + $0x28] sm:$0x3] }
  0x84   : > { %v8200_v30 = vsel %vm8155_vm9, %v1643_v6, %v1646_v58  ;;  %v2233_v19 = vrot.slane %v1614_v60, 6  ;;  %v10756_v58 = vcombine.low %v8051_v39, %v8065_v7  ;;  %v8216_v50 = vsel %vm8155_vm9, %v1648_v5, %v1656_v23  ;;  %v10763_v12 = vld [vmem:[#allocation16_spill] sm:$0xff] }
  0x85   : > { %6713 = vmatmul.mubr.msk.bf16.gmra.mxu0 %vm666_vm2, %v10755_v57  ;;  %v1662_v31 = vshll.u32 %v7887_v25, 16  ;;  %v1667_v6 = vrot.slane %v10757_v11, 5  ;;  %v8225_v60 = vsel %vm8169_vm12, %v2226_v9, %v2227_v44  ;;  %v8229_v39 = vsel %vm8169_vm12, %v2229_v32, %v2230_v17  ;;  %v8241_v44 = vld [vmem:[%s7426_s20 + $0x18] sm:$0xc]  ;;  %v10758_v57 = vld [vmem:[#allocation12_spill] sm:$0xff]  ;;  %v10759_v17 = vld [vmem:[#allocation15_spill] sm:$0xff] }
  0x86   : > { %6716 = vmatprep.mubr.msk.bf16.mxu0 %vm666_vm2, %v10756_v58  ;;  %v8233_v7 = vsel %vm8169_vm12, %v2232_v51, %v2233_v19  ;;  %v1661_v5 = vrot.slane %v1659_v36, 5  ;;  %v1668_v9 = vrot.slane %v10758_v57, 6  ;;  %v1672_v32 = vrot.slane %v10759_v17, 5  ;;  %v10760_v58 = vld [vmem:[#allocation14_spill] sm:$0xff]  ;;  %v10761_v51 = vld [vmem:[#allocation17_spill] sm:$0xff] }
  0x87   : > { %v1664_v23 = vrot.slane %v1662_v31, 6  ;;  %v1673_v14 = vrot.slane %v10760_v58, 6  ;;  %v1677_v19 = vrot.slane %v10761_v51, 5  ;;  %v10762_v11 = vcombine.low %v7655_v62, %v7671_v8  ;;  %v8258_v51 = vld [vmem:[%s7426_s20 + $0x1c] sm:$0xf] }
  0x88   : > { %v1678_v36 = vrot.slane %v10763_v12, 6  ;;  %v1683_v29 = vshrl.u32 %v1615_v22, 16  ;;  %v1686_v31 = vshll.u32 %v1615_v22, 16  ;;  %v1669_v17 = vor.u32 %v1668_v9, %v1667_v6 }
  0x89   : > { %v1665_v25 = vor.u32 %v1664_v23, %v1661_v5  ;;  %v1674_v57 = vor.u32 %v1673_v14, %v1672_v32  ;;  %v6166_v58 = vrot.slane %v8241_v44, 10  ;;  %v2237_v62 = vrot.slane %v8258_v51, 6 }
  0x8a   : > { %6677 = vmatmul.mubr.msk.bf16.gmra.mxu1 %vm666_vm2, %v10762_v11  ;;  %v1679_v11 = vor.u32 %v1678_v36, %v1677_v19  ;;  %v1685_v5 = vrot.slane %v1683_v29, 5  ;;  %v1688_v23 = vrot.slane %v1686_v31, 6  ;;  %v10765_v12 = vcombine.low %v8074_v42, %v8084_v53  ;;  %v8276_v42 = vld [vmem:[%s7426_s20 + $0x20] sm:$0xf] }
  0x8b   : > { %6680 = vmatprep.mubr.msk.bf16.mxu1 %vm666_vm2, %v10764_v61  ;;  %v1666_v8 = vrot.slane %v1665_v25, 4  ;;  %v1671_v28 = vrot.slane %v1669_v17, 4  ;;  %v1676_v21 = vrot.slane %v1674_v57, 4  ;;  %v8267_v61 = vsel %vm8169_vm12, %v6166_v58, %v2237_v62  ;;  %v8286_v58 = vld [vmem:[%s7426_s20 + $0x24] sm:$0xf] }
  0x8c   : > { %v2239_v6 = vrot.slane %v2237_v62, 4  ;;  %v10766_v14 = vcombine.low %v8088_v27, %v8097_v45  ;;  %v1681_v25 = vrot.slane %v1679_v11, 4  ;;  %v1689_v9 = vor.u32 %v1688_v23, %v1685_v5 }
  0x8d   : > { %6717 = vmatmul.mubr.msk.bf16.gmra.mxu0 %vm666_vm2, %v10765_v12  ;;  %v1670_v29 = vsel %vm8155_vm9, %v1666_v8, %v1669_v17  ;;  %v2240_v53 = vrot.slane %v8276_v42, 6  ;;  %v1675_v12 = vsel %vm8155_vm9, %v1671_v28, %v1674_v57  ;;  %v8283_v32 = vsel %vm8155_vm9, %v1676_v21, %v1679_v11  ;;  %v10768_v28 = vld [vmem:[#allocation19_spill] sm:$0xff] }
  0x8e   : > { %6720 = vmatprep.mubr.msk.bf16.mxu0 %vm666_vm2, %v10766_v14  ;;  %v2243_v27 = vrot.slane %v8286_v58, 6  ;;  %v2246_v45 = vrot.slane %v1615_v22, 6  ;;  %v8289_v17 = vcombine.low %v1670_v29, %v1675_v12  ;;  %v8293_v19 = vsel %vm8155_vm9, %v1681_v25, %v1689_v9  ;;  %v1616_v29 = vld [vmem:[%s7426_s20 + $0x40] sm:$0x3]  ;;  %v10771_v9 = vld [vmem:[#allocation21_spill] sm:$0xff]  ;;  %v10772_v12 = vld [vmem:[#allocation20_spill] sm:$0xff] }
  0x8f   : > { %v8297_v36 = vsel %vm8169_vm12, %v2239_v6, %v2240_v53  ;;  %v2242_v57 = vrot.slane %v2240_v53, 4  ;;  %v1692_v22 = vshrl.u32 %v7903_v15, 16  ;;  %v10767_v11 = vcombine.low %v7712_v54, %v7720_v33  ;;  %v10769_v6 = vld [vmem:[#allocation18_spill] sm:$0xff] }
  0x90   : > { %v2245_v8 = vrot.slane %v2243_v27, 4  ;;  %v1695_v23 = vshll.u32 %v7903_v15, 16  ;;  %v1700_v21 = vrot.slane %v10768_v28, 5  ;;  %v1701_v14 = vrot.slane %v10769_v6, 6 }
  0x91   : > { %v8310_v5 = vsel %vm8169_vm12, %v2242_v57, %v2243_v27  ;;  %v10770_v25 = vcombine.low %v7748_v43, %v7753_v24  ;;  %v1694_v54 = vrot.slane %v1692_v22, 5  ;;  %v1705_v53 = vrot.slane %v10771_v9, 5  ;;  %v8327_v27 = vld [vmem:[%s7426_s20 + $0x30] sm:$0xc]  ;;  %v10773_v43 = vld [vmem:[#allocation23_spill] sm:$0xff] }
  0x92   : > { %6681 = vmatmul.mubr.msk.bf16.gmra.mxu1 %vm666_vm2, %v10767_v11  ;;  %v8322_v33 = vsel %vm8169_vm12, %v2245_v8, %v2246_v45  ;;  %v1706_v15 = vrot.slane %v10772_v12, 6  ;;  %v1697_v11 = vrot.slane %v1695_v23, 6  ;;  %v1702_v31 = vor.u32 %v1701_v14, %v1700_v21  ;;  %v10775_v8 = vld [vmem:[#allocation22_spill] sm:$0xff]  ;;  %v8343_v14 = vld [vmem:[%s7426_s20 + $0x34] sm:$0xf] }
  0x93   : > { %6684 = vmatprep.mubr.msk.bf16.mxu1 %vm666_vm2, %v10770_v25  ;;  %v1710_v24 = vrot.slane %v10773_v43, 5  ;;  %v10774_v25 = vcombine.low %v8107_v47, %v8111_v3  ;;  %v1711_v22 = vrot.slane %v10775_v8, 6  ;;  %v1716_v62 = vshrl.u32 %v1616_v29, 16  ;;  %10777 = vst [vmem:[#allocation19_spill] sm:$0xff] %v8343_v14  ;;  %v8357_v43 = vld [vmem:[%s7426_s20 + $0x38] sm:$0xf] }
  0x94   : > { %v1707_v45 = vor.u32 %v1706_v15, %v1705_v53  ;;  %v1719_v9 = vshll.u32 %v1616_v29, 16  ;;  %v10776_v12 = vcombine.low %v8122_v18, %v8132_v41  ;;  %v1698_v57 = vor.u32 %v1697_v11, %v1694_v54 }
  0x95   : > { %6721 = vmatmul.mubr.msk.bf16.gmra.mxu0 %vm666_vm2, %v10774_v25  ;;  %v1704_v23 = vrot.slane %v1702_v31, 4  ;;  %v6167_v21 = vrot.slane %v8327_v27, 10  ;;  %v2250_v3 = vrot.slane %v8343_v14, 6  ;;  %v1712_v53 = vor.u32 %v1711_v22, %v1710_v24  ;;  %v8367_v24 = vld [vmem:[%s7426_s20 + $0x3c] sm:$0xf] }
  0x96   : > { %6724 = vmatprep.mubr.msk.bf16.mxu0 %vm666_vm2, %v10776_v12  ;;  %v1709_v47 = vrot.slane %v1707_v45, 4  ;;  %v1718_v15 = vrot.slane %v1716_v62, 5  ;;  %v1721_v25 = vrot.slane %v1719_v9, 6  ;;  %v1699_v8 = vrot.slane %v1698_v57, 4 }
  0x97   : > { %v1708_v18 = vsel %vm8155_vm9, %v1704_v23, %v1707_v45  ;;  %v8350_v41 = vsel %vm8169_vm12, %v6167_v21, %v2250_v3  ;;  %v2252_v54 = vrot.slane %v2250_v3, 4  ;;  %v1714_v11 = vrot.slane %v1712_v53, 4 }
  0x98   : > { %v8354_v12 = vsel %vm8155_vm9, %v1709_v47, %v1712_v53  ;;  %v1722_v14 = vor.u32 %v1721_v25, %v1718_v15  ;;  %v2253_v62 = vrot.slane %v8357_v43, 6  ;;  %v10778_v9 = vcombine.low %v7759_v63, %v7770_v0  ;;  %v8390_v47 = vld [vmem:[%s7426_s20 + $0x58] sm:$0x3]  ;;  %v10781_v25 = vld [vmem:[#allocation25_spill] sm:$0xff] }
  0x99   : > { %v1703_v57 = vsel %vm8155_vm9, %v1699_v8, %v1702_v31  ;;  %v2256_v45 = vrot.slane %v8367_v24, 6  ;;  %v2259_v22 = vrot.slane %v1616_v29, 6  ;;  %v1725_v23 = vshrl.u32 %v7931_v2, 16 }
  0x9a   : > { %6685 = vmatmul.mubr.msk.bf16.gmra.mxu1 %vm666_vm2, %v10778_v9  ;;  %v10779_v21 = vcombine.low %v7785_v37, %v7791_v16  ;;  %v8375_v63 = vcombine.low %v1703_v57, %v1708_v18  ;;  %v8379_v0 = vsel %vm8155_vm9, %v1714_v11, %v1722_v14  ;;  %v8383_v31 = vsel %vm8169_vm12, %v2252_v54, %v2253_v62  ;;  %v10782_v54 = vld [vmem:[#allocation24_spill] sm:$0xff] }
  0x9b   : > { %v2255_v8 = vrot.slane %v2253_v62, 4  ;;  %v2258_v37 = vrot.slane %v2256_v45, 4  ;;  %v1727_v3 = vrot.slane %v1725_v23, 5  ;;  %v10780_v53 = vcombine.low %v8146_v1, %v8153_v52  ;;  %v8404_v62 = vld [vmem:[%s7426_s20 + $0x48] sm:$0xc]  ;;  %v10784_v52 = vld [vmem:[#allocation27_spill] sm:$0xff] }
  0x9c   : > { %6688 = vmatprep.mubr.msk.bf16.mxu1 %vm666_vm2, %v10779_v21  ;;  %v1728_v15 = vshll.u32 %v7931_v2, 16  ;;  %v1733_v18 = vrot.slane %v10781_v25, 5  ;;  %v1734_v11 = vrot.slane %v10782_v54, 6  ;;  %v10783_v9 = vcombine.low %v8204_v38, %v8225_v60  ;;  %v10786_v23 = vld [vmem:[#allocation29_spill] sm:$0xff]  ;;  %v10787_v38 = vld [vmem:[#allocation28_spill] sm:$0xff] }
  0x9d   : > { %6725 = vmatmul.mubr.msk.bf16.gmra.mxu0 %vm666_vm2, %v10780_v53  ;;  %v8398_v14 = vsel %vm8169_vm12, %v2255_v8, %v2256_v45  ;;  %v8412_v1 = vsel %vm8169_vm12, %v2258_v37, %v2259_v22  ;;  %v1738_v57 = vrot.slane %v10784_v52, 5  ;;  %v10785_v45 = vld [vmem:[#allocation26_spill] sm:$0xff]  ;;  %v1743_v21 = vrot.slane %v10786_v23, 5  ;;  %v8424_v25 = vld [vmem:[%s7426_s20 + $0x4c] sm:$0xf] }
  0x9e   : > { %6768 = vmatprep.mubr.msk.bf16.mxu0 %vm666_vm2, %v10783_v9  ;;  %v1739_v2 = vrot.slane %v10785_v45, 6  ;;  %v1730_v53 = vrot.slane %v1728_v15, 6  ;;  %v1735_v29 = vor.u32 %v1734_v11, %v1733_v18  ;;  %v1744_v60 = vrot.slane %v10787_v38, 6 }
  0x9f   : > { %v1749_v16 = vshrl.u32 %v8390_v47, 16  ;;  %v1752_v22 = vshll.u32 %v8390_v47, 16  ;;  %v6168_v37 = vrot.slane %v8404_v62, 10  ;;  %v2263_v23 = vrot.slane %v8424_v25, 6 }
  0xa0   : > { %v1740_v9 = vor.u32 %v1739_v2, %v1738_v57  ;;  %v1731_v52 = vor.u32 %v1730_v53, %v1727_v3  ;;  %v1737_v54 = vrot.slane %v1735_v29, 4  ;;  %v1745_v45 = vor.u32 %v1744_v60, %v1743_v21  ;;  %v8432_v2 = vld [vmem:[%s7426_s20 + $0x50] sm:$0xf] }
  0xa1   : > { %v10788_v15 = vcombine.low %v10738_v55, %v10737_v35  ;;  %v1751_v11 = vrot.slane %v1749_v16, 5  ;;  %v1754_v57 = vrot.slane %v1752_v22, 6  ;;  %v2266_v8 = vrot.slane %v8432_v2, 6  ;;  %v7050_v55 = vld [vmem:[%s10556_s1 + $0x60] sm:$0xff]  }
  0xa2   : > { %v1742_v18 = vrot.slane %v1740_v9, 4  ;;  %v1732_v3 = vrot.slane %v1731_v52, 4  ;;  %v1741_v21 = vsel %vm8155_vm9, %v1737_v54, %v1740_v9  ;;  %v1747_v53 = vrot.slane %v1745_v45, 4  ;;  %v8457_v9 = vld [vmem:[%s7426_s20 + $0x54] sm:$0xf] }
  0xa3   : > { %6689 = vmatmul.mubr.msk.bf16.gmra.mxu1 %vm666_vm2, %v10788_v15  ;;  %v8441_v35 = vsel %vm8169_vm12, %v6168_v37, %v2263_v23  ;;  %v1755_v60 = vor.u32 %v1754_v57, %v1751_v11  ;;  %v2265_v22 = vrot.slane %v2263_v23, 4  ;;  %v10789_v52 = vcombine.low %v8229_v39, %v8233_v7  ;;  %10790 = vst [vmem:[#allocation18_spill] sm:$0xff] %v8457_v9  ;;  %v8490_v57 = vld [vmem:[%s7426_s20 + $0x70] sm:$0x3] }
  0xa4   : > { %6732 = vmatprep.mubr.msk.bf16.mxu1 %vm666_vm2, %v8196_v34  ;;  %v8448_v16 = vsel %vm8155_vm9, %v1742_v18, %v1745_v45  ;;  %v2268_v34 = vrot.slane %v2266_v8, 4  ;;  %v1736_v54 = vsel %vm8155_vm9, %v1732_v3, %v1735_v29  ;;  %v2269_v37 = vrot.slane %v8457_v9, 6  ;;  %v10792_v3 = vld [vmem:[#allocation31_spill] sm:$0xff]  ;;  %v10798_v9 = vld [vmem:[#allocation34_spill] sm:$0xff] }
  0xa5   : > { %6769 = vmatmul.mubr.msk.bf16.vlgmr.msra.gmra.mxu0 %vm666_vm2, %v10789_v52  ;;  %v2272_v15 = vrot.slane %v8390_v47, 6  ;;  %v1758_v45 = vshrl.u32 %v7965_v46, 16  ;;  %v10791_v23 = vcombine.low %v8267_v61, %v8297_v36  ;;  %v8466_v39 = vcombine.low %v1736_v54, %v1741_v21  ;;  %v10794_v52 = vld [vmem:[#allocation33_spill] sm:$0xff]  ;;  %v10796_v61 = vld [vmem:[#allocation35_spill] sm:$0xff] }
  0xa6   : > { %v8470_v7 = vsel %vm8155_vm9, %v1747_v53, %v1755_v60  ;;  %v8474_v29 = vsel %vm8169_vm12, %v2265_v22, %v2266_v8  ;;  %v1761_v47 = vshll.u32 %v7965_v46, 16  ;;  %6837 = vmatpush3.bf16.msra.mxu0 %v7953_v13  ;;  %v8484_v18 = vsel %vm8169_vm12, %v2268_v34, %v2269_v37  ;;  %v7048_v8 = vld [vmem:[%s10556_s1 + $0x50] sm:$0xff]   ;;  %v10793_v53 = vld [vmem:[#allocation30_spill] sm:$0xff]  ;;  %v8495_v22 = vld [vmem:[%s7426_s20 + $0x60] sm:$0xc] }
  0xa7   : > { %6772 = vmatprep.mubr.msk.bf16.mxu0 %vm666_vm2, %v10791_v23  ;;  %v2271_v11 = vrot.slane %v2269_v37, 4  ;;  %6838 = vmatprep.subr.bf16.mxu0 %v7050_v55  ;;  %v1760_v46 = vrot.slane %v1758_v45, 5  ;;  %v1766_v21 = vrot.slane %v10792_v3, 5  ;;  %v1767_v60 = vrot.slane %v10793_v53, 6  ;;  %v10795_v37 = vld [vmem:[#allocation32_spill] sm:$0xff] }
  0xa8   : > { %v1763_v13 = vrot.slane %v1761_v47, 6  ;;  %v1771_v54 = vrot.slane %v10794_v52, 5  ;;  %v1772_v23 = vrot.slane %v10795_v37, 6  ;;  %v1776_v36 = vrot.slane %v10796_v61, 5 }
  0xa9   : > { %v8499_v34 = vsel %vm8169_vm12, %v2271_v11, %v2272_v15  ;;  %v10797_v45 = vcombine.low %v8200_v30, %v8216_v50  ;;  %v1768_v3 = vor.u32 %v1767_v60, %v1766_v21  ;;  %v1777_v15 = vrot.slane %v10798_v9, 6 }
  0xaa   : > { %v1764_v53 = vor.u32 %v1763_v13, %v1760_v46  ;;  %6839 = vmatpush3.bf16.msra.mxu0 %v7050_v55  ;;  %v1773_v11 = vor.u32 %v1772_v23, %v1771_v54  ;;  %v1782_v30 = vshrl.u32 %v8490_v57, 16  ;;  %v1785_v50 = vshll.u32 %v8490_v57, 16  ;;  %v8518_v13 = vld [vmem:[%s7426_s20 + $0x64] sm:$0xf]  ;;  %v8536_v54 = vld [vmem:[%s7426_s20 + $0x68] sm:$0xf] }
  0xab   : > { %6733 = vmatmul.mubr.msk.bf16.vlgmr.msra.gmra.mxu1 %vm666_vm2, %v10797_v45  ;;  %v6169_v45 = vrot.slane %v8495_v22, 10  ;;  %v1770_v47 = vrot.slane %v1768_v3, 4  ;;  %v1778_v46 = vor.u32 %v1777_v15, %v1776_v36  ;;  %10799 = vst [vmem:[#allocation56_spill] sm:$0xff] %v8518_v13  ;;  %v2276_v55 = vrot.slane %v8518_v13, 6 }
  0xac   : > { %6801 = vmatpush3.bf16.msra.mxu1 %v7992_v40  ;;  %6736 = vmatprep.mubr.msk.bf16.mxu1 %vm666_vm2, %v8289_v17  ;;  %v1765_v61 = vrot.slane %v1764_v53, 4  ;;  %v8524_v40 = vld [vmem:[%s10556_s1 + $0x78] sm:$0xff]   ;;  %v8529_v17 = vld [vmem:[%s10556_s1 + $0x88] sm:$0xff]   ;;  %v10800_v21 = vcombine.low %v8310_v5, %v8322_v33  ;;  %v1775_v36 = vrot.slane %v1773_v11, 4  ;;  %v1784_v53 = vrot.slane %v1782_v30, 5 }
  0xad   : > { %6802 = vmatprep.subr.bf16.mxu1 %v7048_v8  ;;  %v1787_v60 = vrot.slane %v1785_v50, 6  ;;  %v2279_v23 = vrot.slane %v8536_v54, 6  ;;  %v10801_v15 = vcombine.low %v8350_v41, %v8383_v31  ;;  %v1774_v5 = vsel %vm8155_vm9, %v1770_v47, %v1773_v11  ;;  %6908 = vmatprep.subr.bf16.mxu0 %v8529_v17 }
  0xae   : > { %6773 = vmatmul.mubr.msk.bf16.gmra.mxu0 %vm666_vm2, %v10800_v21  ;;  %v1769_v13 = vsel %vm8155_vm9, %v1765_v61, %v1768_v3  ;;  %v1780_v33 = vrot.slane %v1778_v46, 4  ;;  %v8549_v30 = vsel %vm8169_vm12, %v6169_v45, %v2276_v55  ;;  %v8556_v41 = vsel %vm8155_vm9, %v1775_v36, %v1778_v46  ;;  %v8559_v3 = vld [vmem:[%s7426_s20 + $0x6c] sm:$0xf] }
  0xaf   : > { %6776 = vmatprep.mubr.msk.bf16.mxu0 %vm666_vm2, %v10801_v15  ;;  %v8552_v50 = vcombine.low %v1769_v13, %v1774_v5  ;;  %v1788_v31 = vor.u32 %v1787_v60, %v1784_v53  ;;  %v2278_v21 = vrot.slane %v2276_v55, 4  ;;  %v2281_v61 = vrot.slane %v2279_v23, 4  ;;  %10802 = vst [vmem:[#allocation57_spill] sm:$0xff] %v8559_v3  ;;  %v10803_v55 = vld [vmem:[#allocation37_spill] sm:$0xff]  ;;  %v8588_v5 = vld [vmem:[%s7426_s20 + $0x88] sm:$0x3] }
  0xb0   : > { %6803 = vmatpush3.bf16.msra.mxu1 %v7048_v8  ;;  %v2282_v47 = vrot.slane %v8559_v3, 6  ;;  %v2285_v11 = vrot.slane %v8490_v57, 6  ;;  %v1791_v45 = vshrl.u32 %v8004_v49, 16  ;;  %v1794_v13 = vshll.u32 %v8004_v49, 16 }
  0xb1   : > { %6872 = vmatprep.subr.bf16.mxu1 %v8524_v40  ;;  %v8567_v46 = vsel %vm8155_vm9, %v1780_v33, %v1788_v31  ;;  %v8571_v8 = vsel %vm8169_vm12, %v2278_v21, %v2279_v23  ;;  %v1799_v36 = vrot.slane %v10803_v55, 5  ;;  %v10804_v57 = vcombine.low %v8283_v32, %v8293_v19  ;;  %v10805_v19 = vld [vmem:[#allocation36_spill] sm:$0xff]  ;;  %v10806_v31 = vld [vmem:[#allocation39_spill] sm:$0xff] }
  0xb2   : > { %v6185_v60 = vcombine.low %v8549_v30, %v8571_v8  ;;  %v8585_v15 = vsel %vm8169_vm12, %v2281_v61, %v2282_v47  ;;  %v2284_v23 = vrot.slane %v2282_v47, 4  ;;  %v1793_v49 = vrot.slane %v1791_v45, 5  ;;  %v10807_v61 = vld [vmem:[#allocation38_spill] sm:$0xff]  ;;  %v10808_v47 = vld [vmem:[#allocation41_spill] sm:$0xff]  ;;  %v10809_v55 = vld [vmem:[#allocation40_spill] sm:$0xff] }
  0xb3   : > { %6737 = vmatmul.mubr.msk.bf16.gmra.mxu1 %vm666_vm2, %v10804_v57  ;;  %v1796_v32 = vrot.slane %v1794_v13, 6  ;;  %v1800_v33 = vrot.slane %v10805_v19, 6  ;;  %v1804_v21 = vrot.slane %v10806_v31, 5  ;;  %v8595_v57 = vld [vmem:[%s7426_s20 + $0x78] sm:$0xc]  ;;  %v1805_v8 = vrot.slane %v10807_v61, 6 }
  0xb4   : > { %6740 = vmatprep.mubr.msk.bf16.mxu1 %vm666_vm2, %v8375_v63  ;;  %v8599_v30 = vsel %vm8169_vm12, %v2284_v23, %v2285_v11  ;;  %v1809_v53 = vrot.slane %v10808_v47, 5  ;;  %v1810_v3 = vrot.slane %v10809_v55, 6  ;;  %v10810_v63 = vcombine.low %v8398_v14, %v8412_v1  ;;  %v8618_v45 = vld [vmem:[%s7426_s20 + $0x7c] sm:$0xf] }
  0xb5   : > { %v1797_v13 = vor.u32 %v1796_v32, %v1793_v49  ;;  %v1801_v31 = vor.u32 %v1800_v33, %v1799_v36  ;;  %v1815_v11 = vshrl.u32 %v8588_v5, 16  ;;  %v10811_v23 = vcombine.low %v8441_v35, %v8474_v29  ;;  %10812 = vst [vmem:[#allocation58_spill] sm:$0xff] %v8618_v45  ;;  %v8622_v35 = vld [vmem:[%s7426_s20 + $0x80] sm:$0xf] }
  0xb6   : > { %6777 = vmatmul.mubr.msk.bf16.gmra.mxu0 %vm666_vm2, %v10810_v63  ;;  %v1806_v47 = vor.u32 %v1805_v8, %v1804_v21  ;;  %v1811_v55 = vor.u32 %v1810_v3, %v1809_v53  ;;  %v1818_v61 = vshll.u32 %v8588_v5, 16  ;;  %v6170_v14 = vrot.slane %v8595_v57, 10  ;;  %10813 = vst [vmem:[#allocation59_spill] sm:$0xff] %v8622_v35 }
  0xb7   : > { %6780 = vmatprep.mubr.msk.bf16.mxu0 %vm666_vm2, %v10811_v23  ;;  %v1798_v1 = vrot.slane %v1797_v13, 4  ;;  %v1803_v63 = vrot.slane %v1801_v31, 4  ;;  %v1817_v19 = vrot.slane %v1815_v11, 5  ;;  %v2289_v36 = vrot.slane %v8618_v45, 6  ;;  %v8692_v45 = vld [vmem:[%s7426_s20 + $0x94] sm:$0xf] }
  0xb8   : > { %v1808_v49 = vrot.slane %v1806_v47, 4  ;;  %v1813_v32 = vrot.slane %v1811_v55, 4  ;;  %v1820_v33 = vrot.slane %v1818_v61, 6  ;;  %v2292_v29 = vrot.slane %v8622_v35, 6 }
  0xb9   : > { %v1802_v3 = vsel %vm8155_vm9, %v1798_v1, %v1801_v31  ;;  %v1807_v53 = vsel %vm8155_vm9, %v1803_v63, %v1806_v47  ;;  %v8631_v21 = vsel %vm8169_vm12, %v6170_v14, %v2289_v36  ;;  %v2291_v8 = vrot.slane %v2289_v36, 4  ;;  %v8648_v14 = vld [vmem:[%s7426_s20 + $0x84] sm:$0xf] }
  0xba   : > { %v10814_v13 = vcombine.low %v8354_v12, %v8379_v0  ;;  %v8637_v61 = vcombine.low %v1802_v3, %v1807_v53  ;;  %v8641_v11 = vsel %vm8155_vm9, %v1808_v49, %v1811_v55  ;;  %v1821_v31 = vor.u32 %v1820_v33, %v1817_v19  ;;  %10815 = vst [vmem:[#allocation60_spill] sm:$0xff] %v8648_v14  ;;  %v10816_v63 = vld [vmem:[#allocation43_spill] sm:$0xff]  ;;  %v10818_v53 = vld [vmem:[#allocation42_spill] sm:$0xff] }
  0xbb   : > { %v2294_v23 = vrot.slane %v2292_v29, 4  ;;  %v2293_v47 = vsel %vm8169_vm12, %v2291_v8, %v2292_v29  ;;  %v2295_v12 = vrot.slane %v8648_v14, 6  ;;  %v2298_v0 = vrot.slane %v8588_v5, 6  ;;  %v1620_v49 = vld [vmem:[%s7426_s20 + $0xa0] sm:$0x3]  ;;  %v10819_v8 = vld [vmem:[#allocation45_spill] sm:$0xff] }
  0xbc   : > { %6741 = vmatmul.mubr.msk.bf16.gmra.mxu1 %vm666_vm2, %v10814_v13  ;;  %v1824_v1 = vshrl.u32 %v8041_v10, 16  ;;  %v8655_v55 = vsel %vm8155_vm9, %v1813_v32, %v1821_v31  ;;  %v6187_v19 = vcombine.low %v8631_v21, %v2293_v47  ;;  %v1832_v36 = vrot.slane %v10816_v63, 5  ;;  %v10820_v31 = vld [vmem:[#allocation44_spill] sm:$0xff] }
  0xbd   : > { %6744 = vmatprep.mubr.msk.bf16.mxu1 %vm666_vm2, %v8466_v39  ;;  %v1827_v39 = vshll.u32 %v8041_v10, 16  ;;  %v10817_v33 = vcombine.low %v8484_v18, %v8499_v34  ;;  %v8669_v29 = vsel %vm8169_vm12, %v2294_v23, %v2295_v12  ;;  %v2297_v32 = vrot.slane %v2295_v12, 4  ;;  %v8676_v34 = vld [vmem:[%s7426_s20 + $0x90] sm:$0xc]  ;;  %v10822_v12 = vld [vmem:[#allocation46_spill] sm:$0xff] }
  0xbe   : > { %v1826_v3 = vrot.slane %v1824_v1, 5  ;;  %v1833_v21 = vrot.slane %v10818_v53, 6  ;;  %v1837_v13 = vrot.slane %v10819_v8, 5  ;;  %v1838_v18 = vrot.slane %v10820_v31, 6 }
  0xbf   : > { %6781 = vmatmul.mubr.msk.bf16.gmra.mxu0 %vm666_vm2, %v10817_v33  ;;  %v1829_v10 = vrot.slane %v1827_v39, 6  ;;  %v8680_v47 = vsel %vm8169_vm12, %v2297_v32, %v2298_v0  ;;  %v10821_v33 = vld [vmem:[#allocation47_spill] sm:$0xff]  ;;  %v1843_v1 = vrot.slane %v10822_v12, 6  ;;  %v1848_v5 = vshrl.u32 %v1620_v49, 16 }
  0xc0   : > { %6784 = vmatprep.mubr.msk.bf16.mxu0 %vm666_vm2, %v6185_v60  ;;  %v1842_v23 = vrot.slane %v10821_v33, 5  ;;  %v1834_v8 = vor.u32 %v1833_v21, %v1832_v36  ;;  %v1839_v53 = vor.u32 %v1838_v18, %v1837_v13  ;;  %v1851_v14 = vshll.u32 %v1620_v49, 16  ;;  %v8702_v13 = vld [vmem:[%s7426_s20 + $0x9c] sm:$0xf] }
  0xc1   : > { %v1830_v39 = vor.u32 %v1829_v10, %v1826_v3  ;;  %v1850_v63 = vrot.slane %v1848_v5, 5  ;;  %v6171_v0 = vrot.slane %v8676_v34, 10  ;;  %v10823_v32 = vcombine.low %v8448_v16, %v8470_v7  ;;  %v8698_v10 = vld [vmem:[%s7426_s20 + $0x98] sm:$0xf] }
  0xc2   : > { %v1844_v31 = vor.u32 %v1843_v1, %v1842_v23  ;;  %v1836_v33 = vrot.slane %v1834_v8, 4  ;;  %v1841_v35 = vrot.slane %v1839_v53, 4  ;;  %v2302_v3 = vrot.slane %v8692_v45, 6 }
  0xc3   : > { %v1831_v12 = vrot.slane %v1830_v39, 4  ;;  %v1853_v5 = vrot.slane %v1851_v14, 6  ;;  %v2305_v21 = vrot.slane %v8698_v10, 6  ;;  %v2308_v16 = vrot.slane %v8702_v13, 6 }
  0xc4   : > { %6745 = vmatmul.mubr.msk.bf16.gmra.mxu1 %vm666_vm2, %v10823_v32  ;;  %v1846_v36 = vrot.slane %v1844_v31, 4  ;;  %v1840_v18 = vsel %vm8155_vm9, %v1836_v33, %v1839_v53  ;;  %v8711_v23 = vsel %vm8155_vm9, %v1841_v35, %v1844_v31  ;;  %v10824_v14 = vcombine.low %v8585_v15, %v8599_v30 }
  0xc5   : > { %6748 = vmatprep.mubr.msk.bf16.mxu1 %vm666_vm2, %v8552_v50  ;;  %v1835_v7 = vsel %vm8155_vm9, %v1831_v12, %v1834_v8  ;;  %v2303_v50 = vsel %vm8169_vm12, %v6171_v0, %v2302_v3  ;;  %v1854_v39 = vor.u32 %v1853_v5, %v1850_v63  ;;  %v2304_v8 = vrot.slane %v2302_v3, 4  ;;  %v10825_v63 = vld [vmem:[#allocation51_spill] sm:$0xff] }
  0xc6   : > { %v8719_v1 = vcombine.low %v1835_v7, %v1840_v18  ;;  %v2307_v12 = vrot.slane %v2305_v21, 4  ;;  %v2310_v53 = vrot.slane %v2308_v16, 4  ;;  %v2311_v35 = vrot.slane %v1620_v49, 6  ;;  %v10826_v18 = vld [vmem:[#allocation50_spill] sm:$0xff] }
  0xc7   : > { %6785 = vmatmul.mubr.msk.bf16.gmra.mxu0 %vm666_vm2, %v10824_v14  ;;  %v1857_v31 = vshrl.u32 %v8079_v59, 16  ;;  %v1860_v33 = vshll.u32 %v8079_v59, 16  ;;  %v8726_v0 = vsel %vm8155_vm9, %v1846_v36, %v1854_v39  ;;  %v2306_v15 = vsel %vm8169_vm12, %v2304_v8, %v2305_v21  ;;  %v8741_v36 = vld [vmem:[%s7426_s20 + $0xa8] sm:$0xc] }
  0xc8   : > { %6788 = vmatprep.mubr.msk.bf16.mxu0 %vm666_vm2, %v6187_v19  ;;  %v8732_v30 = vsel %vm8169_vm12, %v2307_v12, %v2308_v16  ;;  %v1865_v32 = vrot.slane %v10825_v63, 5  ;;  %v1621_v19 = vld [vmem:[%s7426_s20 + $0xb8] sm:$0x3]  ;;  %v6189_v3 = vcombine.low %v2303_v50, %v2306_v15  ;;  %v2312_v59 = vsel %vm8169_vm12, %v2310_v53, %v2311_v35  ;;  %v10828_v50 = vld [vmem:[#allocation52_spill] sm:$0xff]  ;;  %v10829_v12 = vld [vmem:[#allocation55_spill] sm:$0xff] }
  0xc9   : > { %v1859_v5 = vrot.slane %v1857_v31, 5  ;;  %v6190_v7 = vcombine.low %v8732_v30, %v2312_v59  ;;  %v1862_v21 = vrot.slane %v1860_v33, 6  ;;  %v1866_v16 = vrot.slane %v10826_v18, 6  ;;  %v10830_v35 = vld [vmem:[#allocation54_spill] sm:$0xff] }
  0xca   : > { %v1870_v14 = vrot.slane %v7838_v4, 5  ;;  %v10827_v39 = vcombine.low %v8556_v41, %v8567_v46  ;;  %v1871_v8 = vrot.slane %v10828_v50, 6  ;;  %v1875_v53 = vrot.slane %v10829_v12, 5 }
  0xcb   : > { %v1876_v31 = vrot.slane %v10830_v35, 6  ;;  %v1881_v15 = vshrl.u32 %v1621_v19, 16  ;;  %v1863_v33 = vor.u32 %v1862_v21, %v1859_v5  ;;  %v1867_v30 = vor.u32 %v1866_v16, %v1865_v32  ;;  %v8765_v32 = vld [vmem:[%s7426_s20 + $0xb0] sm:$0xf] }
  0xcc   : > { %6749 = vmatmul.mubr.msk.bf16.gmra.mxu1 %vm666_vm2, %v10827_v39  ;;  %v1884_v59 = vshll.u32 %v1621_v19, 16  ;;  %v6172_v49 = vrot.slane %v8741_v36, 10  ;;  %v1872_v60 = vor.u32 %v1871_v8, %v1870_v14  ;;  %v8757_v39 = vld [vmem:[%s7426_s20 + $0xac] sm:$0xf]  ;;  %v10831_v35 = vcombine.low %v8669_v29, %v8680_v47 }
  0xcd   : > { %6752 = vmatprep.mubr.msk.bf16.mxu1 %vm666_vm2, %v8637_v61  ;;  %v1877_v41 = vor.u32 %v1876_v31, %v1875_v53  ;;  %v1883_v46 = vrot.slane %v1881_v15, 5  ;;  %v2315_v50 = vrot.slane %v8757_v39, 6  ;;  %v1864_v12 = vrot.slane %v1863_v33, 4  ;;  %v8782_v33 = vld [vmem:[%s7426_s20 + $0xb4] sm:$0xf] }
  0xce   : > { %v1869_v4 = vrot.slane %v1867_v30, 4  ;;  %v1886_v61 = vrot.slane %v1884_v59, 6  ;;  %v2318_v5 = vrot.slane %v8765_v32, 6  ;;  %v1874_v21 = vrot.slane %v1872_v60, 4 }
  0xcf   : > { %6789 = vmatmul.mubr.msk.bf16.gmra.mxu0 %vm666_vm2, %v10831_v35  ;;  %v1879_v16 = vrot.slane %v1877_v41, 4  ;;  %v2316_v14 = vsel %vm8169_vm12, %v6172_v49, %v2315_v50  ;;  %v2317_v8 = vrot.slane %v2315_v50, 4  ;;  %v1868_v29 = vsel %vm8155_vm9, %v1864_v12, %v1867_v30  ;;  %v8819_v30 = vld [vmem:[%s7426_s20] sm:$0x8] }
  0xd0   : > { %6792 = vmatprep.mubr.msk.bf16.mxu0 %vm666_vm2, %v6189_v3  ;;  %v1873_v47 = vsel %vm8155_vm9, %v1869_v4, %v1872_v60  ;;  %v1887_v53 = vor.u32 %v1886_v61, %v1883_v46  ;;  %v2320_v35 = vrot.slane %v2318_v5, 4  ;;  %v8777_v15 = vsel %vm8155_vm9, %v1874_v21, %v1877_v41  ;;  %v2632_v61 = vld [vmem:[%s7426_s20 + $0x10] sm:$0x7]  ;;  %v10834_v21 = vld [vmem:[#allocation8_spill] sm:$0xff] }
  0xd1   : > { %v6145_v31 = vcombine.low %v1868_v29, %v1873_v47  ;;  %v2319_v3 = vsel %vm8169_vm12, %v2317_v8, %v2318_v5  ;;  %v2321_v49 = vrot.slane %v8782_v33, 6  ;;  %v2324_v60 = vrot.slane %v1621_v19, 6  ;;  %v10836_v29 = vld [vmem:[#allocation10_spill] sm:$0xff] }
  0xd2   : > { %v8787_v50 = vsel %vm8155_vm9, %v1879_v16, %v1887_v53  ;;  %v6191_v4 = vcombine.low %v2316_v14, %v2319_v3  ;;  %v10832_v12 = vcombine.low %v8641_v11, %v8655_v55  ;;  %v2647_v19 = vshll.u32 %v8165_v48, 16  ;;  %v10833_v11 = vld [vmem:[#allocation5_spill] sm:$0xff]  ;;  %v10835_v14 = vld [vmem:[#allocation7_spill] sm:$0xff] }
  0xd3   : > { %v2322_v59 = vsel %vm8169_vm12, %v2320_v35, %v2321_v49  ;;  %v2323_v41 = vrot.slane %v2321_v49, 4  ;;  %v2652_v46 = vrot.slane %v10740_v56, 6  ;;  %v2653_v55 = vrot.slane %v10833_v11, 7  ;;  %v10839_v49 = vld [vmem:[#allocation9_spill] sm:$0xff]  ;;  %v10851_v11 = vld [vmem:[#allocation16_spill] sm:$0xff] }
  0xd4   : > { %6753 = vmatmul.mubr.msk.bf16.gmra.mxu1 %vm666_vm2, %v10832_v12  ;;  %v2657_v16 = vrot.slane %v10834_v21, 6  ;;  %v2658_v8 = vrot.slane %v10835_v14, 7  ;;  %v2662_v47 = vrot.slane %v10836_v29, 6  ;;  %v2646_v53 = vrot.slane %v2644_v20, 6 }
  0xd5   : > { %6756 = vmatprep.mubr.msk.bf16.mxu1 %vm666_vm2, %v8719_v1  ;;  %v2325_v5 = vsel %vm8169_vm12, %v2323_v41, %v2324_v60  ;;  %v2649_v48 = vrot.slane %v2647_v19, 7  ;;  %v2654_v35 = vor.u32 %v2653_v55, %v2652_v46  ;;  %v2663_v60 = vrot.slane %v10839_v49, 7  ;;  %v10842_v49 = vld [vmem:[#allocation49_spill] sm:$0xff] }
  0xd6   : > { %v6192_v1 = vcombine.low %v2322_v59, %v2325_v5  ;;  %v2659_v3 = vor.u32 %v2658_v8, %v2657_v16  ;;  %v2668_v12 = vshrl.u32 %v2632_v61, 16  ;;  %v2671_v41 = vshll.u32 %v2632_v61, 16 }
  0xd7   : > { %6793 = vmatmul.mubr.msk.bf16.gmra.mxu0 %vm666_vm2, %v6190_v7  ;;  %v2650_v7 = vor.u32 %v2649_v48, %v2646_v53  ;;  %v2656_v59 = vrot.slane %v2654_v35, 4  ;;  %v2664_v19 = vor.u32 %v2663_v60, %v2662_v47  ;;  %v6249_v8 = vrot.slane %v8819_v30, 11 }
  0xd8   : > { %6796 = vmatprep.mubr.msk.bf16.mxu0 %vm666_vm2, %v6191_v4  ;;  %v2661_v20 = vrot.slane %v2659_v3, 4  ;;  %v2670_v4 = vrot.slane %v2668_v12, 6  ;;  %v2673_v46 = vrot.slane %v2671_v41, 7  ;;  %v3242_v53 = vrot.slane %v10842_v49, 7  ;;  %v10844_v41 = vld [vmem:[#allocation48_spill] sm:$0xff] }
  0xd9   : > { %v2651_v5 = vrot.slane %v2650_v7, 4  ;;  %v2660_v16 = vsel %vm8813_vm15, %v2656_v59, %v2659_v3  ;;  %v10843_v48 = vcombine.low %v8711_v23, %v8726_v0  ;;  %v2666_v60 = vrot.slane %v2664_v19, 4  ;;  %v10845_v0 = vld [vmem:[#allocation6_spill] sm:$0xff] }
  0xda   : > { %v8836_v47 = vsel %vm8813_vm15, %v2661_v20, %v2664_v19  ;;  %v2674_v12 = vor.u32 %v2673_v46, %v2670_v4  ;;  %v3245_v7 = vrot.slane %v10844_v41, 7  ;;  %v3243_v49 = vsel %vm8822_vm4, %v6249_v8, %v3242_v53 }
  0xdb   : > { %v2655_v3 = vsel %vm8813_vm15, %v2651_v5, %v2654_v35  ;;  %v3244_v23 = vrot.slane %v3242_v53, 4  ;;  %v3248_v59 = vrot.slane %v10845_v0, 7  ;;  %v3251_v4 = vrot.slane %v2632_v61, 7  ;;  %v2633_v61 = vld [vmem:[%s7426_s20 + $0x28] sm:$0x7] }
  0xdc   : > { %6757 = vmatmul.mubr.msk.bf16.gmra.mxu1 %vm666_vm2, %v10843_v48  ;;  %v6215_v48 = vcombine.low %v2655_v3, %v2660_v16  ;;  %v8847_v20 = vsel %vm8813_vm15, %v2666_v60, %v2674_v12  ;;  %v3247_v19 = vrot.slane %v3245_v7, 4  ;;  %v2677_v5 = vshrl.u32 %v8241_v44, 16  ;;  %v10846_v60 = vld [vmem:[#allocation13_spill] sm:$0xff]  ;;  %v10847_v3 = vld [vmem:[#allocation12_spill] sm:$0xff] }
  0xdd   : > { %6760 = vmatprep.mubr.msk.bf16.mxu1 %vm666_vm2, %v6145_v31  ;;  %v3246_v35 = vsel %vm8822_vm4, %v3244_v23, %v3245_v7  ;;  %v3250_v46 = vrot.slane %v3248_v59, 4  ;;  %v2680_v53 = vshll.u32 %v8241_v44, 16  ;;  %v2685_v12 = vrot.slane %v10846_v60, 6  ;;  %v10848_v31 = vld [vmem:[#allocation15_spill] sm:$0xff]  ;;  %v8865_v23 = vld [vmem:[%s7426_s20 + $0x18] sm:$0x8] }
  0xde   : > { %v6261_v8 = vcombine.low %v3243_v49, %v3246_v35  ;;  %v3249_v16 = vsel %vm8822_vm4, %v3247_v19, %v3248_v59  ;;  %v2679_v41 = vrot.slane %v2677_v5, 6  ;;  %v2686_v0 = vrot.slane %v10847_v3, 7  ;;  %v10849_v59 = vld [vmem:[#allocation14_spill] sm:$0xff]  ;;  %v10850_v44 = vld [vmem:[#allocation17_spill] sm:$0xff] }
  0xdf   : > { %6797 = vmatmul.mubr.msk.bf16.gmra.mxu0 %vm666_vm2, %v6192_v1  ;;  %v3252_v1 = vsel %vm8822_vm4, %v3250_v46, %v3251_v4  ;;  %v2690_v7 = vrot.slane %v10848_v31, 6  ;;  %v2682_v35 = vrot.slane %v2680_v53, 7  ;;  %v2691_v19 = vrot.slane %v10849_v59, 7 }
  0xe0   : > { %6840 = vmatprep.mubr.msk.bf16.mxu0 %vm666_vm2, %v6261_v8  ;;  %v6262_v49 = vcombine.low %v3249_v16, %v3252_v1  ;;  %v2695_v14 = vrot.slane %v10850_v44, 6  ;;  %v2687_v60 = vor.u32 %v2686_v0, %v2685_v12  ;;  %v2696_v29 = vrot.slane %v10851_v11, 7  ;;  %v7054_v11 = vld [vmem:[%s10556_s1 + $0x80] sm:$0xff]  }
  0xe1   : > { %v2701_v21 = vshrl.u32 %v2633_v61, 16  ;;  %v2704_v4 = vshll.u32 %v2633_v61, 16  ;;  %v10852_v46 = vcombine.low %v8777_v15, %v8787_v50  ;;  %v2683_v5 = vor.u32 %v2682_v35, %v2679_v41 }
  0xe2   : > { %v2692_v3 = vor.u32 %v2691_v19, %v2690_v7  ;;  %v6250_v8 = vrot.slane %v8865_v23, 11  ;;  %v3255_v16 = vrot.slane %v8258_v51, 7  ;;  %v2689_v53 = vrot.slane %v2687_v60, 4 }
  0xe3   : > { %v2697_v1 = vor.u32 %v2696_v29, %v2695_v14  ;;  %v2703_v12 = vrot.slane %v2701_v21, 6  ;;  %v2706_v0 = vrot.slane %v2704_v4, 7  ;;  %v2684_v59 = vrot.slane %v2683_v5, 4 }
  0xe4   : > { %6761 = vmatmul.mubr.msk.bf16.gmra.mxu1 %vm666_vm2, %v10852_v46  ;;  %v2694_v15 = vrot.slane %v2692_v3, 4  ;;  %v3256_v50 = vsel %vm8822_vm4, %v6250_v8, %v3255_v16  ;;  %v3257_v41 = vrot.slane %v3255_v16, 4  ;;  %v2693_v51 = vsel %vm8813_vm15, %v2689_v53, %v2692_v3  ;;  %v7052_v46 = vld [vmem:[%s10556_s1 + $0x70] sm:$0xff]  }
  0xe5   : > { %6804 = vmatprep.mubr.msk.bf16.mxu1 %vm666_vm2, %v6215_v48  ;;  %v2699_v48 = vrot.slane %v2697_v1, 4  ;;  %v2707_v7 = vor.u32 %v2706_v0, %v2703_v12  ;;  %v3258_v21 = vrot.slane %v8276_v42, 7  ;;  %v2688_v14 = vsel %vm8813_vm15, %v2684_v59, %v2687_v60 }
  0xe6   : > { %v8891_v29 = vsel %vm8813_vm15, %v2694_v15, %v2697_v1  ;;  %v3261_v35 = vrot.slane %v8286_v58, 7  ;;  %v3264_v19 = vrot.slane %v2633_v61, 7  ;;  %v2713_v8 = vshll.u32 %v8327_v27, 16  ;;  %v8915_v1 = vld [vmem:[%s7426_s20 + $0x40] sm:$0x7] }
  0xe7   : > { %6841 = vmatmul.mubr.msk.bf16.vlgmr.msra.gmra.mxu0 %vm666_vm2, %v6262_v49  ;;  %v6217_v49 = vcombine.low %v2688_v14, %v2693_v51  ;;  %v8897_v3 = vsel %vm8813_vm15, %v2699_v48, %v2707_v7  ;;  %v3259_v42 = vsel %vm8822_vm4, %v3257_v41, %v3258_v21  ;;  %v3260_v4 = vrot.slane %v3258_v21, 4  ;;  %v10855_v51 = vld [vmem:[#allocation20_spill] sm:$0xff]  ;;  %v8929_v7 = vld [vmem:[%s7426_s20 + $0x30] sm:$0x8]  ;;  %v10856_v14 = vld [vmem:[#allocation23_spill] sm:$0xff] }
  0xe8   : > { %6909 = vmatpush3.bf16.msra.mxu0 %v8529_v17  ;;  %v8901_v60 = vpop.f32.mrf.mxu1  ;;  %v6218_v59 = vcombine.low %v8891_v29, %v8897_v3  ;;  %v6263_v58 = vcombine.low %v3256_v50, %v3259_v42  ;;  %v3263_v61 = vrot.slane %v3261_v35, 4  ;;  %v2710_v17 = vshrl.u32 %v8327_v27, 16  ;;  %v10854_v27 = vld [vmem:[#allocation21_spill] sm:$0xff] }
  0xe9   : > { %6910 = vmatprep.subr.bf16.mxu0 %v7054_v11  ;;  %v3262_v5 = vsel %vm8822_vm4, %v3260_v4, %v3261_v35  ;;  %v2718_v16 = vrot.slane %v10768_v28, 6  ;;  %v2719_v53 = vrot.slane %v10769_v6, 7  ;;  %v10853_v12 = vcombine.low %v8836_v47, %v8847_v20 }
  0xea   : > { %v8921_v0 = vpop.f32.mrf.mxu1  ;;  %6844 = vmatprep.mubr.msk.bf16.mxu0 %vm666_vm2, %v6263_v58  ;;  %v3265_v15 = vsel %vm8822_vm4, %v3263_v61, %v3264_v19  ;;  %v2712_v50 = vrot.slane %v2710_v17, 6  ;;  %v2723_v41 = vrot.slane %v10854_v27, 6  ;;  %v2724_v48 = vrot.slane %v10855_v51, 7  ;;  %v10857_v19 = vld [vmem:[#allocation22_spill] sm:$0xff] }
  0xeb   : > { %v6264_v47 = vcombine.low %v3262_v5, %v3265_v15  ;;  %v2715_v20 = vrot.slane %v2713_v8, 7  ;;  %v2720_v21 = vor.u32 %v2719_v53, %v2718_v16  ;;  %v2728_v29 = vrot.slane %v10856_v14, 6  ;;  %v10858_v5 = vld [vmem:[#allocation19_spill] sm:$0xff] }
  0xec   : > { %6805 = vmatmul.mubr.msk.bf16.vlgmr.msra.gmra.mxu1 %vm666_vm2, %v10853_v12  ;;  %v8934_v35 = vpop.f32.mrf.mxu1  ;;  %v2725_v3 = vor.u32 %v2724_v48, %v2723_v41  ;;  %v2729_v42 = vrot.slane %v10857_v19, 7  ;;  %v2734_v4 = vshrl.u32 %v8915_v1, 16  ;;  %v2737_v58 = vshll.u32 %v8915_v1, 16  ;;  %6911 = vmatpush3.bf16.msra.mxu0 %v7054_v11 }
  0xed   : > { %6873 = vmatpush3.bf16.msra.mxu1 %v8524_v40  ;;  %6808 = vmatprep.mubr.msk.bf16.mxu1 %vm666_vm2, %v6217_v49  ;;  %v8942_v40 = vld [vmem:[%s10556_s1 + $0x98] sm:$0xff]   ;;  %v2716_v49 = vor.u32 %v2715_v20, %v2712_v50  ;;  %v2722_v61 = vrot.slane %v2720_v21, 4  ;;  %v6251_v17 = vrot.slane %v8929_v7, 11  ;;  %v3268_v8 = vrot.slane %v10858_v5, 7 }
  0xee   : > { %6874 = vmatprep.subr.bf16.mxu1 %v7052_v46  ;;  %v8947_v16 = vpop.f32.mrf.mxu1  ;;  %v2727_v53 = vrot.slane %v2725_v3, 4  ;;  %v2730_v12 = vor.u32 %v2729_v42, %v2728_v29  ;;  %v2736_v15 = vrot.slane %v2734_v4, 6  ;;  %v2739_v41 = vrot.slane %v2737_v58, 7 }
  0xef   : > { %6845 = vmatmul.mubr.msk.bf16.gmra.mxu0 %vm666_vm2, %v6264_v47  ;;  %v2717_v11 = vrot.slane %v2716_v49, 4  ;;  %v2726_v48 = vsel %vm8813_vm15, %v2722_v61, %v2725_v3  ;;  %v3269_v19 = vsel %vm8822_vm4, %v6251_v17, %v3268_v8  ;;  %v3270_v47 = vrot.slane %v3268_v8, 4 }
  0xf0   : > { %v2731_v50 = vsel %vm8813_vm15, %v2727_v53, %v2730_v12  ;;  %v2732_v20 = vrot.slane %v2730_v12, 4  ;;  %v2740_v5 = vor.u32 %v2739_v41, %v2736_v15  ;;  %v3271_v51 = vrot.slane %v8357_v43, 7  ;;  %v10859_v15 = vld [vmem:[#allocation25_spill] sm:$0xff] }
  0xf1   : > { %6875 = vmatpush3.bf16.msra.mxu1 %v7052_v46  ;;  %v2721_v29 = vsel %vm8813_vm15, %v2717_v11, %v2720_v21  ;;  %v3274_v3 = vrot.slane %v8367_v24, 7  ;;  %v3277_v42 = vrot.slane %v8915_v1, 7  ;;  %v2743_v4 = vshrl.u32 %v8404_v62, 16  ;;  %v8962_v46 = vpop.f32.mrf.mxu1  ;;  %v8970_v1 = vld [vmem:[%s7426_s20 + $0x58] sm:$0x7]  ;;  %v10860_v11 = vld [vmem:[#allocation24_spill] sm:$0xff] }
  0xf2   : > { %6944 = vmatprep.subr.bf16.mxu1 %v8942_v40  ;;  %v6219_v58 = vcombine.low %v2721_v29, %v2726_v48  ;;  %v2741_v43 = vsel %vm8813_vm15, %v2732_v20, %v2740_v5  ;;  %v3272_v49 = vsel %vm8822_vm4, %v3270_v47, %v3271_v51  ;;  %v3273_v61 = vrot.slane %v3271_v51, 4  ;;  %v8981_v51 = vld [vmem:[%s7426_s20 + $0x48] sm:$0x8]  ;;  %v10861_v47 = vld [vmem:[#allocation27_spill] sm:$0xff]  ;;  %v10862_v20 = vld [vmem:[#allocation26_spill] sm:$0xff] }
  0xf3   : > { %v6220_v21 = vcombine.low %v2731_v50, %v2741_v43  ;;  %v6265_v17 = vcombine.low %v3269_v19, %v3272_v49  ;;  %v3276_v24 = vrot.slane %v3274_v3, 4  ;;  %v2745_v8 = vrot.slane %v2743_v4, 6  ;;  %v8972_v53 = vpop.f32.mrf.mxu1  ;;  %v10863_v29 = vld [vmem:[#allocation29_spill] sm:$0xff] }
  0xf4   : > { %6809 = vmatmul.mubr.msk.bf16.gmra.mxu1 %vm666_vm2, %v6218_v59  ;;  %v3275_v59 = vsel %vm8822_vm4, %v3273_v61, %v3274_v3  ;;  %v2746_v12 = vshll.u32 %v8404_v62, 16  ;;  %v2751_v41 = vrot.slane %v10859_v15, 6  ;;  %v2752_v48 = vrot.slane %v10860_v11, 7 }
  0xf5   : > { %6812 = vmatprep.mubr.msk.bf16.mxu1 %vm666_vm2, %v6219_v58  ;;  %6848 = vmatprep.mubr.msk.bf16.mxu0 %vm666_vm2, %v6265_v17  ;;  %v3278_v19 = vsel %vm8822_vm4, %v3276_v24, %v3277_v42  ;;  %v2756_v50 = vrot.slane %v10861_v47, 6  ;;  %v2757_v5 = vrot.slane %v10862_v20, 7  ;;  %v2761_v4 = vrot.slane %v10863_v29, 6  ;;  %v8989_v3 = vpop.f32.mrf.mxu1 }
  0xf6   : > { %v6266_v62 = vcombine.low %v3275_v59, %v3278_v19  ;;  %v2748_v58 = vrot.slane %v2746_v12, 7  ;;  %v2753_v43 = vor.u32 %v2752_v48, %v2751_v41  ;;  %v2762_v49 = vrot.slane %v10787_v38, 7 }
  0xf7   : > { %v2758_v61 = vor.u32 %v2757_v5, %v2756_v50  ;;  %v2767_v11 = vshrl.u32 %v8970_v1, 16  ;;  %v2770_v17 = vshll.u32 %v8970_v1, 16  ;;  %v6252_v42 = vrot.slane %v8981_v51, 11  ;;  %v8995_v24 = vpop.f32.mrf.mxu1 }
  0xf8   : > { %6849 = vmatmul.mubr.msk.bf16.gmra.mxu0 %vm666_vm2, %v6266_v62  ;;  %v2749_v20 = vor.u32 %v2748_v58, %v2745_v8  ;;  %v2755_v29 = vrot.slane %v2753_v43, 4  ;;  %v2763_v47 = vor.u32 %v2762_v49, %v2761_v4  ;;  %v3281_v59 = vrot.slane %v8424_v25, 7 }
  0xf9   : > { %v2760_v12 = vrot.slane %v2758_v61, 4  ;;  %v2769_v41 = vrot.slane %v2767_v11, 6  ;;  %v2772_v48 = vrot.slane %v2770_v17, 7  ;;  %v3284_v19 = vrot.slane %v8432_v2, 7 }
  0xfa   : > { %v9000_v50 = vpop.f32.mrf.mxu1  ;;  %v2750_v5 = vrot.slane %v2749_v20, 4  ;;  %v2759_v38 = vsel %vm8813_vm15, %v2755_v29, %v2758_v61  ;;  %v2765_v15 = vrot.slane %v2763_v47, 4  ;;  %v3282_v8 = vsel %vm8822_vm4, %v6252_v42, %v3281_v59  ;;  %v10864_v20 = vld [vmem:[#allocation18_spill] sm:$0xff] }
  0xfb   : > { %v2764_v25 = vsel %vm8813_vm15, %v2760_v12, %v2763_v47  ;;  %v2773_v4 = vor.u32 %v2772_v48, %v2769_v41  ;;  %v3283_v11 = vrot.slane %v3281_v59, 4  ;;  %v3286_v62 = vrot.slane %v3284_v19, 4  ;;  %v9026_v48 = vld [vmem:[%s7426_s20 + $0x70] sm:$0x7] }
  0xfc   : > { %6813 = vmatmul.mubr.msk.bf16.gmra.mxu1 %vm666_vm2, %v6220_v21  ;;  %v9009_v2 = vpop.f32.mrf.mxu1  ;;  %v2754_v21 = vsel %vm8813_vm15, %v2750_v5, %v2753_v43  ;;  %v3287_v58 = vrot.slane %v10864_v20, 7  ;;  %v3290_v29 = vrot.slane %v8970_v1, 7  ;;  %v2776_v49 = vshrl.u32 %v8495_v22, 16  ;;  %v10868_v20 = vld [vmem:[#allocation35_spill] sm:$0xff] }
  0xfd   : > { %v6221_v61 = vcombine.low %v2754_v21, %v2759_v38  ;;  %v2774_v47 = vsel %vm8813_vm15, %v2765_v15, %v2773_v4  ;;  %v3285_v17 = vsel %vm8822_vm4, %v3283_v11, %v3284_v19  ;;  %v2779_v42 = vshll.u32 %v8495_v22, 16  ;;  %v10865_v15 = vld [vmem:[#allocation31_spill] sm:$0xff]  ;;  %v10866_v21 = vld [vmem:[#allocation30_spill] sm:$0xff] }
  0xfe   : > { %v9021_v59 = vpop.f32.mrf.mxu1  ;;  %v6222_v12 = vcombine.low %v2764_v25, %v2774_v47  ;;  %v6267_v43 = vcombine.low %v3282_v8, %v3285_v17  ;;  %v3288_v41 = vsel %vm8822_vm4, %v3286_v62, %v3287_v58  ;;  %v3289_v1 = vrot.slane %v3287_v58, 4  ;;  %v9032_v11 = vld [vmem:[%s7426_s20 + $0x60] sm:$0x8] }
  0xff   : > { %6816 = vmatprep.mubr.msk.bf16.mxu1 %vm666_vm2, %v6221_v61  ;;  %v2778_v38 = vrot.slane %v2776_v49, 6  ;;  %v2781_v5 = vrot.slane %v2779_v42, 7  ;;  %v2784_v4 = vrot.slane %v10865_v15, 6  ;;  %v2785_v19 = vrot.slane %v10866_v21, 7  ;;  %10867 = vst [vmem:[#allocation51_spill] sm:$0xff] %v9032_v11 }
 0x100   : > { %v9034_v22 = vpop.f32.mrf.mxu1  ;;  %6852 = vmatprep.mubr.msk.bf16.mxu0 %vm666_vm2, %v6267_v43  ;;  %v3291_v8 = vsel %vm8822_vm4, %v3289_v1, %v3290_v29  ;;  %v2789_v25 = vrot.slane %v10794_v52, 6  ;;  %v2790_v62 = vrot.slane %v10795_v37, 7  ;;  %v2794_v58 = vrot.slane %v10868_v20, 6 }
 0x101   : > { %v6268_v49 = vcombine.low %v3288_v41, %v3291_v8  ;;  %v2782_v61 = vor.u32 %v2781_v5, %v2778_v38  ;;  %v2786_v47 = vor.u32 %v2785_v19, %v2784_v4  ;;  %v2795_v17 = vrot.slane %v10798_v9, 7  ;;  %v10869_v38 = vld [vmem:[#allocation56_spill] sm:$0xff] }
 0x102   : > { %v9043_v42 = vpop.f32.mrf.mxu1  ;;  %v2791_v21 = vor.u32 %v2790_v62, %v2789_v25  ;;  %v2800_v43 = vshrl.u32 %v9026_v48, 16  ;;  %v2803_v29 = vshll.u32 %v9026_v48, 16  ;;  %v6253_v1 = vrot.slane %v9032_v11, 11  ;;  %v10876_v11 = vld [vmem:[#allocation39_spill] sm:$0xff] }
 0x103   : > { %6853 = vmatmul.mubr.msk.bf16.gmra.mxu0 %vm666_vm2, %v6268_v49  ;;  %v2783_v37 = vrot.slane %v2782_v61, 4  ;;  %v2788_v20 = vrot.slane %v2786_v47, 4  ;;  %v2796_v41 = vor.u32 %v2795_v17, %v2794_v58  ;;  %v3294_v5 = vrot.slane %v10869_v38, 7  ;;  %v10871_v38 = vld [vmem:[#allocation57_spill] sm:$0xff] }
 0x104   : > { %6817 = vmatmul.mubr.msk.bf16.gmra.mxu1 %vm666_vm2, %v6222_v12  ;;  %v9051_v4 = vpop.f32.mrf.mxu1  ;;  %v2793_v19 = vrot.slane %v2791_v21, 4  ;;  %v2802_v8 = vrot.slane %v2800_v43, 6  ;;  %v2805_v9 = vrot.slane %v2803_v29, 7  ;;  %v3297_v12 = vrot.slane %v8536_v54, 7 }
 0x105   : > { %v2787_v25 = vsel %vm8813_vm15, %v2783_v37, %v2786_v47  ;;  %v2792_v62 = vsel %vm8813_vm15, %v2788_v20, %v2791_v21  ;;  %v2798_v52 = vrot.slane %v2796_v41, 4  ;;  %v3295_v49 = vsel %vm8822_vm4, %v6253_v1, %v3294_v5 }
 0x106   : > { %v9060_v58 = vpop.f32.mrf.mxu1  ;;  %v6223_v61 = vcombine.low %v2787_v25, %v2792_v62  ;;  %v2797_v17 = vsel %vm8813_vm15, %v2793_v19, %v2796_v41  ;;  %v2806_v43 = vor.u32 %v2805_v9, %v2802_v8  ;;  %v3296_v29 = vrot.slane %v3294_v5, 4  ;;  %v10873_v41 = vld [vmem:[#allocation37_spill] sm:$0xff]  ;;  %v9079_v62 = vld [vmem:[%s7426_s20 + $0x88] sm:$0x7] }
 0x107   : > { %10870 = vst [vmem:[#allocation49_spill] sm:$0xff] %v9060_v58  ;;  %v3299_v54 = vrot.slane %v3297_v12, 4  ;;  %v3300_v15 = vrot.slane %v10871_v38, 7  ;;  %v3303_v37 = vrot.slane %v9026_v48, 7  ;;  %v2809_v21 = vshrl.u32 %v8595_v57, 16 }
 0x108   : > { %v9067_v20 = vpop.f32.mrf.mxu1  ;;  %6820 = vmatprep.mubr.msk.bf16.mxu1 %vm666_vm2, %v6223_v61  ;;  %v2807_v47 = vsel %vm8813_vm15, %v2798_v52, %v2806_v43  ;;  %v3298_v9 = vsel %vm8822_vm4, %v3296_v29, %v3297_v12  ;;  %v2812_v1 = vshll.u32 %v8595_v57, 16  ;;  %v2817_v5 = vrot.slane %v10873_v41, 6  ;;  %v10875_v52 = vld [vmem:[#allocation36_spill] sm:$0xff]  ;;  %v9086_v29 = vld [vmem:[%s7426_s20 + $0x78] sm:$0x8] }
 0x109   : > { %10872 = vst [vmem:[#allocation48_spill] sm:$0xff] %v9067_v20  ;;  %v6224_v19 = vcombine.low %v2797_v17, %v2807_v47  ;;  %v6269_v8 = vcombine.low %v3295_v49, %v3298_v9  ;;  %v3301_v48 = vsel %vm8822_vm4, %v3299_v54, %v3300_v15  ;;  %v3302_v25 = vrot.slane %v3300_v15, 4  ;;  %10877 = vst [vmem:[#allocation15_spill] sm:$0xff] %v9086_v29  ;;  %v10878_v15 = vld [vmem:[#allocation38_spill] sm:$0xff]  ;;  %v10879_v17 = vld [vmem:[#allocation41_spill] sm:$0xff] }
 0x10a   : > { %v9081_v38 = vpop.f32.mrf.mxu1  ;;  %v2811_v61 = vrot.slane %v2809_v21, 6  ;;  %v2814_v20 = vrot.slane %v2812_v1, 7  ;;  %v2818_v43 = vrot.slane %v10875_v52, 7  ;;  %v2822_v12 = vrot.slane %v10876_v11, 6  ;;  %v10880_v47 = vld [vmem:[#allocation40_spill] sm:$0xff] }
 0x10b   : > { %10874 = vst [vmem:[#allocation6_spill] sm:$0xff] %v9081_v38  ;;  %6856 = vmatprep.mubr.msk.bf16.mxu0 %vm666_vm2, %v6269_v8  ;;  %v3304_v57 = vsel %vm8822_vm4, %v3302_v25, %v3303_v37  ;;  %v2823_v49 = vrot.slane %v10878_v15, 7  ;;  %v2827_v54 = vrot.slane %v10879_v17, 6  ;;  %v2828_v21 = vrot.slane %v10880_v47, 7  ;;  %v10883_v17 = vld [vmem:[#allocation58_spill] sm:$0xff] }
 0x10c   : > { %6821 = vmatmul.mubr.msk.bf16.gmra.mxu1 %vm666_vm2, %v6224_v19  ;;  %v9095_v9 = vpop.f32.mrf.mxu1  ;;  %v6270_v1 = vcombine.low %v3301_v48, %v3304_v57  ;;  %v2815_v52 = vor.u32 %v2814_v20, %v2811_v61  ;;  %v2819_v11 = vor.u32 %v2818_v43, %v2817_v5  ;;  %v2833_v41 = vshrl.u32 %v9079_v62, 16  ;;  %v10884_v61 = vld [vmem:[#allocation59_spill] sm:$0xff] }
 0x10d   : > { %10881 = vst [vmem:[#allocation17_spill] sm:$0xff] %v9095_v9  ;;  %v2824_v38 = vor.u32 %v2823_v49, %v2822_v12  ;;  %v2829_v19 = vor.u32 %v2828_v21, %v2827_v54  ;;  %v2836_v8 = vshll.u32 %v9079_v62, 16  ;;  %v6254_v58 = vrot.slane %v9086_v29, 11 }
 0x10e   : > { %6857 = vmatmul.mubr.msk.bf16.gmra.mxu0 %vm666_vm2, %v6270_v1  ;;  %v9101_v37 = vpop.f32.mrf.mxu1  ;;  %v2816_v25 = vrot.slane %v2815_v52, 4  ;;  %v2821_v15 = vrot.slane %v2819_v11, 4  ;;  %v2835_v47 = vrot.slane %v2833_v41, 6  ;;  %v3307_v9 = vrot.slane %v10883_v17, 7 }
 0x10f   : > { %10882 = vst [vmem:[#allocation21_spill] sm:$0xff] %v9101_v37  ;;  %v2826_v48 = vrot.slane %v2824_v38, 4  ;;  %v2831_v20 = vrot.slane %v2829_v19, 4  ;;  %v2838_v5 = vrot.slane %v2836_v8, 7  ;;  %v3310_v43 = vrot.slane %v10884_v61, 7 }
 0x110   : > { %v9105_v12 = vpop.f32.mrf.mxu1  ;;  %v2820_v57 = vsel %vm8813_vm15, %v2816_v25, %v2819_v11  ;;  %v2825_v49 = vsel %vm8813_vm15, %v2821_v15, %v2824_v38  ;;  %v3308_v52 = vsel %vm8822_vm4, %v6254_v58, %v3307_v9  ;;  %v3309_v41 = vrot.slane %v3307_v9, 4  ;;  %v10887_v11 = vld [vmem:[#allocation60_spill] sm:$0xff] }
 0x111   : > { %10885 = vst [vmem:[#allocation23_spill] sm:$0xff] %v9105_v12  ;;  %v6225_v54 = vcombine.low %v2820_v57, %v2825_v49  ;;  %v2830_v17 = vsel %vm8813_vm15, %v2826_v48, %v2829_v19  ;;  %v2839_v21 = vor.u32 %v2838_v5, %v2835_v47  ;;  %v3312_v1 = vrot.slane %v3310_v43, 4  ;;  %v10888_v19 = vld [vmem:[#allocation43_spill] sm:$0xff] }
 0x112   : > { %v9115_v8 = vpop.f32.mrf.mxu1  ;;  %v3311_v61 = vsel %vm8822_vm4, %v3309_v41, %v3310_v43  ;;  %v3313_v25 = vrot.slane %v10887_v11, 7  ;;  %v3316_v38 = vrot.slane %v9079_v62, 7  ;;  %v2842_v15 = vshrl.u32 %v8676_v34, 16  ;;  %v2638_v5 = vld [vmem:[%s7426_s20 + $0xa0] sm:$0x7]  ;;  %v10890_v11 = vld [vmem:[#allocation42_spill] sm:$0xff] }
 0x113   : > { %10886 = vst [vmem:[#allocation19_spill] sm:$0xff] %v9115_v8  ;;  %6824 = vmatprep.mubr.msk.bf16.mxu1 %vm666_vm2, %v6225_v54  ;;  %v2840_v58 = vsel %vm8813_vm15, %v2831_v20, %v2839_v21  ;;  %v6271_v9 = vcombine.low %v3308_v52, %v3311_v61  ;;  %v2845_v47 = vshll.u32 %v8676_v34, 16  ;;  %v2850_v48 = vrot.slane %v10888_v19, 6  ;;  %v10891_v20 = vld [vmem:[#allocation45_spill] sm:$0xff]  ;;  %v10892_v21 = vld [vmem:[#allocation44_spill] sm:$0xff] }
 0x114   : > { %v6226_v57 = vcombine.low %v2830_v17, %v2840_v58  ;;  %v9128_v43 = vpop.f32.mrf.mxu1  ;;  %v3314_v62 = vsel %vm8822_vm4, %v3312_v1, %v3313_v25  ;;  %v3315_v49 = vrot.slane %v3313_v25, 4  ;;  %v2844_v41 = vrot.slane %v2842_v15, 6  ;;  %v9137_v61 = vld [vmem:[%s7426_s20 + $0x90] sm:$0x8]  ;;  %v10894_v1 = vld [vmem:[#allocation47_spill] sm:$0xff]  ;;  %v10895_v15 = vld [vmem:[#allocation46_spill] sm:$0xff] }
 0x115   : > { %10889 = vst [vmem:[#allocation18_spill] sm:$0xff] %v9128_v43  ;;  %6860 = vmatprep.mubr.msk.bf16.mxu0 %vm666_vm2, %v6271_v9  ;;  %v2847_v54 = vrot.slane %v2845_v47, 7  ;;  %v2851_v8 = vrot.slane %v10890_v11, 7  ;;  %v2855_v52 = vrot.slane %v10891_v20, 6  ;;  %v2856_v34 = vrot.slane %v10892_v21, 7 }
 0x116   : > { %6825 = vmatmul.mubr.msk.bf16.gmra.mxu1 %vm666_vm2, %v6226_v57  ;;  %v3317_v17 = vsel %vm8822_vm4, %v3315_v49, %v3316_v38  ;;  %v9142_v58 = vpop.f32.mrf.mxu1  ;;  %v2860_v25 = vrot.slane %v10894_v1, 6  ;;  %v2861_v9 = vrot.slane %v10895_v15, 7  ;;  %v2866_v47 = vshrl.u32 %v2638_v5, 16 }
 0x117   : > { %10893 = vst [vmem:[#allocation56_spill] sm:$0xff] %v9142_v58  ;;  %v6272_v19 = vcombine.low %v3314_v62, %v3317_v17  ;;  %v2848_v11 = vor.u32 %v2847_v54, %v2844_v41  ;;  %v2852_v43 = vor.u32 %v2851_v8, %v2850_v48  ;;  %v2857_v20 = vor.u32 %v2856_v34, %v2855_v52 }
 0x118   : > { %v9146_v12 = vpop.f32.mrf.mxu1  ;;  %v2862_v21 = vor.u32 %v2861_v9, %v2860_v25  ;;  %v2868_v37 = vrot.slane %v2866_v47, 6  ;;  %v2869_v29 = vshll.u32 %v2638_v5, 16  ;;  %v6255_v57 = vrot.slane %v9137_v61, 11 }
 0x119   : > { %6861 = vmatmul.mubr.msk.bf16.gmra.mxu0 %vm666_vm2, %v6272_v19  ;;  %v2849_v38 = vrot.slane %v2848_v11, 4  ;;  %v2854_v49 = vrot.slane %v2852_v43, 4  ;;  %v2859_v58 = vrot.slane %v2857_v20, 4  ;;  %v3320_v1 = vrot.slane %v8692_v45, 7 }
 0x11a   : > { %v9151_v15 = vpop.f32.mrf.mxu1  ;;  %v2864_v62 = vrot.slane %v2862_v21, 4  ;;  %v2871_v41 = vrot.slane %v2869_v29, 7  ;;  %v3323_v8 = vrot.slane %v8698_v10, 7  ;;  %v3326_v48 = vrot.slane %v8702_v13, 7 }
 0x11b   : > { %v2853_v54 = vsel %vm8813_vm15, %v2849_v38, %v2852_v43  ;;  %v2858_v52 = vsel %vm8813_vm15, %v2854_v49, %v2857_v20  ;;  %v2863_v19 = vsel %vm8813_vm15, %v2859_v58, %v2862_v21  ;;  %v3321_v45 = vsel %vm8822_vm4, %v6255_v57, %v3320_v1  ;;  %v9183_v49 = vld [vmem:[%s7426_s20 + $0xa8] sm:$0x8] }
 0x11c   : > { %v6227_v11 = vcombine.low %v2853_v54, %v2858_v52  ;;  %v2872_v34 = vor.u32 %v2871_v41, %v2868_v37  ;;  %v3322_v29 = vrot.slane %v3320_v1, 4  ;;  %v9163_v17 = vpop.f32.mrf.mxu1  ;;  %v3325_v10 = vrot.slane %v3323_v8, 4  ;;  %v10897_v54 = vld [vmem:[#allocation53_spill] sm:$0xff] }
 0x11d   : > { %v3328_v13 = vrot.slane %v3326_v48, 4  ;;  %v3329_v25 = vrot.slane %v2638_v5, 7  ;;  %v2875_v43 = vshrl.u32 %v8741_v36, 16  ;;  %v2878_v20 = vshll.u32 %v8741_v36, 16  ;;  %v9178_v5 = vld [vmem:[%s7426_s20 + $0xb8] sm:$0x7] }
 0x11e   : > { %6828 = vmatprep.mubr.msk.bf16.mxu1 %vm666_vm2, %v6227_v11  ;;  %v2873_v21 = vsel %vm8813_vm15, %v2864_v62, %v2872_v34  ;;  %v3324_v58 = vsel %vm8822_vm4, %v3322_v29, %v3323_v8  ;;  %v3327_v37 = vsel %vm8822_vm4, %v3325_v10, %v3326_v48  ;;  %v9174_v1 = vpop.f32.mrf.mxu1  ;;  %v2883_v9 = vrot.slane %v10825_v63, 6  ;;  %v10899_v11 = vld [vmem:[#allocation55_spill] sm:$0xff]  ;;  %v10900_v29 = vld [vmem:[#allocation54_spill] sm:$0xff] }
 0x11f   : > { %v6228_v47 = vcombine.low %v2863_v19, %v2873_v21  ;;  %v6273_v57 = vcombine.low %v3321_v45, %v3324_v58  ;;  %v3330_v36 = vsel %vm8822_vm4, %v3328_v13, %v3329_v25  ;;  %v2877_v38 = vrot.slane %v2875_v43, 6  ;;  %v10898_v19 = vld [vmem:[#allocation52_spill] sm:$0xff] }
 0x120   : > { %v6274_v62 = vcombine.low %v3327_v37, %v3330_v36  ;;  %v9185_v41 = vpop.f32.mrf.mxu1  ;;  %v2880_v8 = vrot.slane %v2878_v20, 7  ;;  %v2884_v48 = vrot.slane %v10826_v18, 7  ;;  %v2888_v52 = vrot.slane %v10897_v54, 6 }
 0x121   : > { %10896 = vst [vmem:[#allocation57_spill] sm:$0xff] %v9185_v41  ;;  %6829 = vmatmul.mubr.msk.bf16.gmra.mxu1 %vm666_vm2, %v6228_v47  ;;  %6864 = vmatprep.mubr.msk.bf16.mxu0 %vm666_vm2, %v6273_v57  ;;  %v2889_v45 = vrot.slane %v10898_v19, 7  ;;  %v2893_v34 = vrot.slane %v10899_v11, 6  ;;  %v2894_v10 = vrot.slane %v10900_v29, 7  ;;  %v2899_v13 = vshrl.u32 %v9178_v5, 16 }
 0x122   : > { %6865 = vmatmul.mubr.msk.bf16.gmra.mxu0 %vm666_vm2, %v6274_v62  ;;  %v2881_v25 = vor.u32 %v2880_v8, %v2877_v38  ;;  %v2885_v43 = vor.u32 %v2884_v48, %v2883_v9  ;;  %v9196_v20 = vpop.f32.mrf.mxu1  ;;  %v2902_v21 = vshll.u32 %v9178_v5, 16  ;;  %v6256_v58 = vrot.slane %v9183_v49, 11 }
 0x123   : > { %v2890_v37 = vor.u32 %v2889_v45, %v2888_v52  ;;  %v2895_v47 = vor.u32 %v2894_v10, %v2893_v34  ;;  %v2901_v57 = vrot.slane %v2899_v13, 6  ;;  %v3333_v36 = vrot.slane %v8757_v39, 7 }
 0x124   : > { %v2882_v19 = vrot.slane %v2881_v25, 4  ;;  %v2887_v18 = vrot.slane %v2885_v43, 4  ;;  %v2904_v29 = vrot.slane %v2902_v21, 7  ;;  %v3336_v41 = vrot.slane %v8765_v32, 7  ;;  %v9202_v11 = vpop.f32.mrf.mxu1 }
 0x125   : > { %v2892_v38 = vrot.slane %v2890_v37, 4  ;;  %v2897_v9 = vrot.slane %v2895_v47, 4  ;;  %v3334_v62 = vsel %vm8822_vm4, %v6256_v58, %v3333_v36  ;;  %v3335_v8 = vrot.slane %v3333_v36, 4  ;;  %v6698_v48 = vpop.f32.mrf.mxu0  ;;  %v10903_v36 = vld [vmem:[#allocation8_spill] sm:$0xff] }
 0x126   : > { %v2886_v52 = vsel %vm8813_vm15, %v2882_v19, %v2885_v43  ;;  %v2891_v39 = vsel %vm8813_vm15, %v2887_v18, %v2890_v37  ;;  %v2905_v45 = vor.u32 %v2904_v29, %v2901_v57  ;;  %v3338_v34 = vrot.slane %v3336_v41, 4  ;;  %v9210_v10 = vpop.f32.mrf.mxu1  ;;  %v9223_v37 = vld [vmem:[%s7426_s20 + $0x10] sm:$0xf] }
 0x127   : > { %10901 = vst [vmem:[#allocation58_spill] sm:$0xff] %v9210_v10  ;;  %v6229_v32 = vcombine.low %v2886_v52, %v2891_v39  ;;  %v2896_v13 = vsel %vm8813_vm15, %v2892_v38, %v2895_v47  ;;  %v3337_v25 = vsel %vm8822_vm4, %v3335_v8, %v3336_v41  ;;  %v3339_v21 = vrot.slane %v8782_v33, 7  ;;  %v1455_v58 = vpop.f32.mrf.mxu0  ;;  %v9262_v10 = vld [vmem:[%s7426_s20 + $0x28] sm:$0xf] }
 0x128   : > { %v2906_v19 = vsel %vm8813_vm15, %v2897_v9, %v2905_v45  ;;  %v6275_v43 = vcombine.low %v3334_v62, %v3337_v25  ;;  %v3342_v18 = vrot.slane %v9178_v5, 7  ;;  %v9220_v29 = vpop.f32.mrf.mxu1  ;;  %v3662_v26 = vshrl.u32 %v8819_v30, 16  ;;  %v10904_v9 = vld [vmem:[#allocation10_spill] sm:$0xff]  ;;  %v10907_v25 = vld [vmem:[#allocation5_spill] sm:$0xff] }
 0x129   : > { %10902 = vst [vmem:[#allocation59_spill] sm:$0xff] %v9220_v29  ;;  %6832 = vmatprep.mubr.msk.bf16.mxu1 %vm666_vm2, %v6229_v32  ;;  %v6230_v47 = vcombine.low %v2896_v13, %v2906_v19  ;;  %v3340_v41 = vsel %vm8822_vm4, %v3338_v34, %v3339_v21  ;;  %v3341_v57 = vrot.slane %v3339_v21, 4  ;;  %v6699_v33 = vpop.f32.mrf.mxu0  ;;  %v3666_v5 = vrot.slane %v10740_v56, 7 }
 0x12a   : > { %6868 = vmatprep.mubr.msk.bf16.mxu0 %vm666_vm2, %v6275_v43  ;;  %v3670_v38 = vrot.slane %v10903_v36, 7  ;;  %v3674_v62 = vrot.slane %v10904_v9, 7  ;;  %v6662_v8 = vpop.f32.mrf.mxu1  ;;  %v3679_v45 = vshrl.u32 %v9223_v37, 16  ;;  %v3682_v30 = vshll.u32 %v9223_v37, 16  ;;  %v10908_v43 = vld [vmem:[#allocation7_spill] sm:$0xff] }
 0x12b   : > { %6833 = vmatmul.mubr.msk.bf16.gmra.mxu1 %vm666_vm2, %v6230_v47  ;;  %v3343_v52 = vsel %vm8822_vm4, %v3341_v57, %v3342_v18  ;;  %v1059_v56 = vadd.f32 %v6662_v8, %v8901_v60  ;;  %v1458_v34 = vpop.f32.mrf.mxu0  ;;  %v6295_v13 = vrot.slane %v3662_v26, 11  ;;  %v3667_v21 = vor.u32 %v3666_v5, %v10907_v25  ;;  %v10909_v57 = vld [vmem:[#allocation9_spill] sm:$0xff]  ;;  %v7244_v26 = vld [vmem:[%s7426_s20 + $0x4] sm:$0xf]  ;;  %v7245_v8 = vld [vmem:[%s7426_s20 + $0x8] sm:$0xf] }
 0x12c   : > { %v6276_v32 = vcombine.low %v3340_v41, %v3343_v52  ;;  %v3669_v55 = vrot.slane %v3666_v5, 4  ;;  %v1050_v19 = vpop.f32.mrf.mxu1  ;;  %v3671_v18 = vor.u32 %v3670_v38, %v10908_v43  ;;  %v3673_v47 = vrot.slane %v3670_v38, 4 }
 0x12d   : > { %v3675_v36 = vor.u32 %v3674_v62, %v10909_v57  ;;  %v3677_v9 = vrot.slane %v3674_v62, 4  ;;  %v6702_v29 = vpop.f32.mrf.mxu0  ;;  %v3668_v60 = vsel %vm9237_vm7, %v6295_v13, %v3667_v21  ;;  %v3681_v41 = vrot.slane %v3679_v45, 7  ;;  %v7246_v57 = vld [vmem:[%s7426_s20 + $0xc] sm:$0xf] }
 0x12e   : > { %6869 = vmatmul.mubr.msk.bf16.gmra.mxu0 %vm666_vm2, %v6276_v32  ;;  %v6345_v52 = vcombine.low %v7244_v26, %v7245_v8  ;;  %v1051_v5 = vadd.f32 %v1050_v19, %v8921_v0  ;;  %v6663_v25 = vpop.f32.mrf.mxu1  ;;  %v3672_v38 = vsel %vm9237_vm7, %v3669_v55, %v3671_v18  ;;  %v9257_v62 = vadd.f32 %v6698_v48, %v1059_v56  ;;  %v10910_v56 = vld [vmem:[#allocation13_spill] sm:$0xff] }
 0x12f   : > { %v3676_v43 = vsel %vm9237_vm7, %v3673_v47, %v3675_v36  ;;  %v6346_v32 = vcombine.low %v7246_v57, %v9223_v37  ;;  %v1471_v45 = vpop.f32.mrf.mxu0  ;;  %v3684_v13 = vor.u32 %v3682_v30, %v3681_v41  ;;  %v6307_v21 = vcombine.low %v3668_v60, %v3672_v38 }
 0x130   : > { %6912 = vmatprep.mubr.msk.bf16.mxu0 %vm666_vm2, %v6345_v52  ;;  %v1062_v0 = vadd.f32 %v6663_v25, %v8934_v35  ;;  %v9266_v19 = vadd.f32 %v1455_v58, %v1051_v5  ;;  %v1053_v55 = vpop.f32.mrf.mxu1  ;;  %v3687_v48 = vshrl.u32 %v8865_v23, 16  ;;  %v3691_v47 = vrot.slane %v10910_v56, 7  ;;  %v10911_v23 = vld [vmem:[#allocation12_spill] sm:$0xff]  ;;  %v7248_v56 = vld [vmem:[%s7426_s20 + $0x20] sm:$0xf] }
 0x131   : > { %v1054_v18 = vadd.f32 %v1053_v55, %v8947_v16  ;;  %v3695_v37 = vrot.slane %v10848_v31, 7  ;;  %v6703_v36 = vpop.f32.mrf.mxu0  ;;  %v3685_v30 = vsel %vm9237_vm7, %v3677_v9, %v3684_v13  ;;  %6876 = vmatprep.mubr.msk.bf16.mxu1 %vm666_vm2, %v6307_v21  ;;  %v3699_v58 = vrot.slane %v10850_v44, 7  ;;  %v7064_v31 = vld [vmem:[%s10556_s1 + $0x90] sm:$0xff]   ;;  %v10912_v9 = vld [vmem:[#allocation14_spill] sm:$0xff]  ;;  %v10913_v13 = vld [vmem:[#allocation16_spill] sm:$0xff] }
 0x132   : > { %v9275_v60 = vadd.f32 %v6699_v33, %v1062_v0  ;;  %v6666_v35 = vpop.f32.mrf.mxu1  ;;  %v3704_v41 = vshrl.u32 %v9262_v10, 16  ;;  %v6308_v16 = vcombine.low %v3676_v43, %v3685_v30  ;;  %v6296_v26 = vrot.slane %v3687_v48, 11 }
 0x133   : > { %v3692_v8 = vor.u32 %v3691_v47, %v10911_v23  ;;  %v3694_v52 = vrot.slane %v3691_v47, 4  ;;  %v1474_v5 = vpop.f32.mrf.mxu0  ;;  %v3696_v25 = vor.u32 %v3695_v37, %v10912_v9  ;;  %v3698_v33 = vrot.slane %v3695_v37, 4 }
 0x134   : > { %v1075_v38 = vadd.f32 %v6666_v35, %v8962_v46  ;;  %v9285_v44 = vadd.f32 %v1458_v34, %v1054_v18  ;;  %v1066_v57 = vpop.f32.mrf.mxu1  ;;  %6877 = vmatmul.mubr.msk.bf16.vlgmr.msra.gmra.mxu1 %vm666_vm2, %v6308_v16  ;;  %v3700_v21 = vor.u32 %v3699_v58, %v10913_v13  ;;  %v3702_v0 = vrot.slane %v3699_v58, 4  ;;  %v7247_v18 = vld [vmem:[%s7426_s20 + $0x1c] sm:$0xf]  ;;  %v9306_v16 = vld [vmem:[%s7426_s20 + $0x40] sm:$0xf] }
 0x135   : > { %v3693_v43 = vsel %vm9237_vm7, %v6296_v26, %v3692_v8  ;;  %v3706_v55 = vrot.slane %v3704_v41, 7  ;;  %v6706_v48 = vpop.f32.mrf.mxu0  ;;  %6945 = vmatpush3.bf16.msra.mxu1 %v8942_v40  ;;  %v3697_v46 = vsel %vm9237_vm7, %v3694_v52, %v3696_v25  ;;  %v3707_v34 = vshll.u32 %v9262_v10, 16  ;;  %v7249_v40 = vld [vmem:[%s7426_s20 + $0x24] sm:$0xf] }
 0x136   : > { %6913 = vmatmul.mubr.msk.bf16.vlgmr.msra.gmra.mxu0 %vm666_vm2, %v6346_v32  ;;  %v6347_v47 = vcombine.low %v7247_v18, %v7248_v56  ;;  %v1067_v37 = vadd.f32 %v1066_v57, %v8972_v53  ;;  %v6667_v30 = vpop.f32.mrf.mxu1  ;;  %v6309_v35 = vcombine.low %v3693_v43, %v3697_v46  ;;  %v3701_v58 = vsel %vm9237_vm7, %v3698_v33, %v3700_v21 }
 0x137   : > { %v9301_v41 = vadd.f32 %v6702_v29, %v1075_v38  ;;  %v6348_v32 = vcombine.low %v7249_v40, %v9262_v10  ;;  %v1487_v26 = vpop.f32.mrf.mxu0  ;;  %6946 = vmatprep.subr.bf16.mxu1 %v7064_v31  ;;  %v3709_v23 = vor.u32 %v3707_v34, %v3706_v55  ;;  %v1078_v8 = vadd.f32 %v6667_v30, %v8989_v3 }
 0x138   : > { %6916 = vmatprep.mubr.msk.bf16.mxu0 %vm666_vm2, %v6347_v47  ;;  %v9310_v53 = vadd.f32 %v1471_v45, %v1067_v37  ;;  %v1069_v52 = vpop.f32.mrf.mxu1  ;;  %v3712_v9 = vshrl.u32 %v8929_v7, 16  ;;  %6880 = vmatprep.mubr.msk.bf16.mxu1 %vm666_vm2, %v6309_v35  ;;  %v3716_v10 = vrot.slane %v10768_v28, 7  ;;  %v3720_v25 = vrot.slane %v10854_v27, 7  ;;  %v10914_v28 = vld [vmem:[#allocation20_spill] sm:$0xff]  ;;  %v7250_v35 = vld [vmem:[%s7426_s20 + $0x34] sm:$0xf] }
 0x139   : > { %v1070_v29 = vadd.f32 %v1069_v52, %v8995_v24  ;;  %v3724_v33 = vrot.slane %v10856_v14, 7  ;;  %v6707_v38 = vpop.f32.mrf.mxu0  ;;  %v3710_v57 = vsel %vm9237_vm7, %v3702_v0, %v3709_v23  ;;  %v9320_v3 = vadd.f32 %v6703_v36, %v1078_v8  ;;  %6947 = vmatpush3.bf16.msra.mxu1 %v7064_v31  ;;  %v10915_v36 = vld [vmem:[#allocation22_spill] sm:$0xff] }
 0x13a   : > { %v6297_v45 = vrot.slane %v3712_v9, 11  ;;  %v6670_v43 = vpop.f32.mrf.mxu1  ;;  %v3729_v7 = vshrl.u32 %v9306_v16, 16  ;;  %v6310_v13 = vcombine.low %v3701_v58, %v3710_v57  ;;  %v3717_v24 = vor.u32 %v3716_v10, %v10769_v6  ;;  %v7251_v58 = vld [vmem:[%s7426_s20 + $0x38] sm:$0xf]  ;;  %v7252_v9 = vld [vmem:[%s7426_s20 + $0x3c] sm:$0xf] }
 0x13b   : > { %v3719_v21 = vrot.slane %v3716_v10, 4  ;;  %v3721_v55 = vor.u32 %v3720_v25, %v10914_v28  ;;  %v1490_v27 = vpop.f32.mrf.mxu0  ;;  %v3723_v14 = vrot.slane %v3720_v25, 4  ;;  %v1091_v46 = vadd.f32 %v6670_v43, %v9000_v50 }
 0x13c   : > { %v9326_v0 = vadd.f32 %v1474_v5, %v1070_v29  ;;  %v3725_v34 = vor.u32 %v3724_v33, %v10915_v36  ;;  %v1082_v18 = vpop.f32.mrf.mxu1  ;;  %6881 = vmatmul.mubr.msk.bf16.gmra.mxu1 %vm666_vm2, %v6310_v13  ;;  %v3718_v6 = vsel %vm9237_vm7, %v6297_v45, %v3717_v24  ;;  %v3727_v56 = vrot.slane %v3724_v33, 4  ;;  %v10916_v45 = vld [vmem:[#allocation25_spill] sm:$0xff] }
 0x13d   : > { %v3722_v31 = vsel %vm9237_vm7, %v3719_v21, %v3721_v55  ;;  %v3731_v47 = vrot.slane %v3729_v7, 7  ;;  %v6710_v37 = vpop.f32.mrf.mxu0  ;;  %v3732_v30 = vshll.u32 %v9306_v16, 16  ;;  %v6349_v40 = vcombine.low %v7250_v35, %v7251_v58 }
 0x13e   : > { %6917 = vmatmul.mubr.msk.bf16.gmra.mxu0 %vm666_vm2, %v6348_v32  ;;  %v6311_v50 = vcombine.low %v3718_v6, %v3722_v31  ;;  %v3726_v5 = vsel %vm9237_vm7, %v3723_v14, %v3725_v34  ;;  %v6671_v23 = vpop.f32.mrf.mxu1  ;;  %v1083_v8 = vadd.f32 %v1082_v18, %v9009_v2  ;;  %v9341_v52 = vadd.f32 %v6706_v48, %v1091_v46  ;;  %v10917_v2 = vld [vmem:[#allocation27_spill] sm:$0xff]  ;;  %v10919_v14 = vld [vmem:[#allocation24_spill] sm:$0xff]  ;;  %v9361_v34 = vld [vmem:[%s7426_s20 + $0x58] sm:$0xf] }
 0x13f   : > { %v6350_v29 = vcombine.low %v7252_v9, %v9306_v16  ;;  %v1094_v10 = vadd.f32 %v6671_v23, %v9021_v59  ;;  %v1503_v32 = vpop.f32.mrf.mxu0  ;;  %v3734_v25 = vor.u32 %v3732_v30, %v3731_v47  ;;  %6920 = vmatprep.mubr.msk.bf16.mxu0 %vm666_vm2, %v6349_v40  ;;  %v3737_v57 = vshrl.u32 %v8981_v51, 16  ;;  %v10918_v59 = vld [vmem:[#allocation29_spill] sm:$0xff]  ;;  %v10920_v18 = vld [vmem:[#allocation26_spill] sm:$0xff]  ;;  %v7253_v23 = vld [vmem:[%s7426_s20 + $0x4c] sm:$0xf] }
 0x140   : > { %6884 = vmatprep.mubr.msk.bf16.mxu1 %vm666_vm2, %v6311_v50  ;;  %v1085_v33 = vpop.f32.mrf.mxu1  ;;  %v3741_v43 = vrot.slane %v10916_v45, 7  ;;  %v3745_v48 = vrot.slane %v10917_v2, 7  ;;  %v9351_v7 = vadd.f32 %v1487_v26, %v1083_v8  ;;  %v3749_v24 = vrot.slane %v10918_v59, 7  ;;  %v10921_v50 = vld [vmem:[#allocation28_spill] sm:$0xff]  ;;  %v7254_v8 = vld [vmem:[%s7426_s20 + $0x50] sm:$0xf] }
 0x141   : > { %v1086_v16 = vadd.f32 %v1085_v33, %v9034_v22  ;;  %v9354_v13 = vadd.f32 %v6707_v38, %v1094_v10  ;;  %v6711_v21 = vpop.f32.mrf.mxu0  ;;  %v3735_v28 = vsel %vm9237_vm7, %v3727_v56, %v3734_v25  ;;  %v6298_v55 = vrot.slane %v3737_v57, 11  ;;  %v7255_v2 = vld [vmem:[%s7426_s20 + $0x54] sm:$0xf] }
 0x142   : > { %v3742_v46 = vor.u32 %v3741_v43, %v10919_v14  ;;  %v3744_v51 = vrot.slane %v3741_v43, 4  ;;  %v6674_v36 = vpop.f32.mrf.mxu1  ;;  %v6312_v26 = vcombine.low %v3726_v5, %v3735_v28  ;;  %v3746_v22 = vor.u32 %v3745_v48, %v10920_v18 }
 0x143   : > { %v3748_v38 = vrot.slane %v3745_v48, 4  ;;  %v1107_v6 = vadd.f32 %v6674_v36, %v9043_v42  ;;  %v1506_v31 = vpop.f32.mrf.mxu0  ;;  %v9367_v56 = vadd.f32 %v1490_v27, %v1086_v16  ;;  %v3750_v30 = vor.u32 %v3749_v24, %v10921_v50  ;;  %v10922_v16 = vld [vmem:[#allocation49_spill] sm:$0xff]  ;;  %v10926_v36 = vld [vmem:[#allocation35_spill] sm:$0xff]  ;;  %v10928_v50 = vld [vmem:[#allocation30_spill] sm:$0xff] }
 0x144   : > { %v3743_v47 = vsel %vm9237_vm7, %v6298_v55, %v3742_v46  ;;  %v3752_v35 = vrot.slane %v3749_v24, 4  ;;  %v1098_v58 = vpop.f32.mrf.mxu1  ;;  %6885 = vmatmul.mubr.msk.bf16.gmra.mxu1 %vm666_vm2, %v6312_v26  ;;  %v3747_v5 = vsel %vm9237_vm7, %v3744_v51, %v3746_v22  ;;  %v3754_v40 = vshrl.u32 %v9361_v34, 16  ;;  %v10923_v24 = vld [vmem:[#allocation51_spill] sm:$0xff]  ;;  %v10925_v46 = vld [vmem:[#allocation33_spill] sm:$0xff]  ;;  %v10927_v22 = vld [vmem:[#allocation48_spill] sm:$0xff] }
 0x145   : > { %v3757_v42 = vshll.u32 %v9361_v34, 16  ;;  %v6351_v9 = vcombine.low %v7253_v23, %v7254_v8  ;;  %v6714_v10 = vpop.f32.mrf.mxu0  ;;  %v6313_v27 = vcombine.low %v3743_v47, %v3747_v5  ;;  %v3751_v25 = vsel %vm9237_vm7, %v3748_v38, %v3750_v30  ;;  %v10929_v5 = vld [vmem:[#allocation32_spill] sm:$0xff]  ;;  %v9400_v8 = vld [vmem:[%s7426_s20 + $0x70] sm:$0xf] }
 0x146   : > { %6921 = vmatmul.mubr.msk.bf16.gmra.mxu0 %vm666_vm2, %v6350_v29  ;;  %v1099_v33 = vadd.f32 %v1098_v58, %v9051_v4  ;;  %v9381_v57 = vadd.f32 %v6710_v37, %v1107_v6  ;;  %v6675_v45 = vpop.f32.mrf.mxu1  ;;  %v3756_v43 = vrot.slane %v3754_v40, 7  ;;  %v6352_v48 = vcombine.low %v7255_v2, %v9361_v34  ;;  %v10924_v37 = vld [vmem:[#allocation31_spill] sm:$0xff] }
 0x147   : > { %6924 = vmatprep.mubr.msk.bf16.mxu0 %vm666_vm2, %v6351_v9  ;;  %v1110_v59 = vadd.f32 %v6675_v45, %v10922_v16  ;;  %v3762_v28 = vshrl.u32 %v10923_v24, 16  ;;  %v1519_v29 = vpop.f32.mrf.mxu0  ;;  %6888 = vmatprep.mubr.msk.bf16.mxu1 %vm666_vm2, %v6313_v27  ;;  %v3766_v14 = vrot.slane %v10924_v37, 7  ;;  %v3770_v51 = vrot.slane %v10925_v46, 7  ;;  %v10930_v27 = vld [vmem:[#allocation6_spill] sm:$0xff]  ;;  %v7257_v46 = vld [vmem:[%s7426_s20 + $0x68] sm:$0xf] }
 0x148   : > { %v9389_v55 = vadd.f32 %v1503_v32, %v1099_v33  ;;  %v1101_v4 = vpop.f32.mrf.mxu1  ;;  %v3774_v26 = vrot.slane %v10926_v36, 7  ;;  %v3759_v18 = vor.u32 %v3757_v42, %v3756_v43  ;;  %v3782_v37 = vshll.u32 %v9400_v8, 16  ;;  %v10932_v36 = vld [vmem:[#allocation17_spill] sm:$0xff] }
 0x149   : > { %v1102_v34 = vadd.f32 %v1101_v4, %v10927_v22  ;;  %v9395_v38 = vadd.f32 %v6711_v21, %v1110_v59  ;;  %v6299_v6 = vrot.slane %v3762_v28, 11  ;;  %v6715_v47 = vpop.f32.mrf.mxu0  ;;  %v3767_v30 = vor.u32 %v3766_v14, %v10928_v50  ;;  %v10931_v21 = vld [vmem:[#allocation34_spill] sm:$0xff] }
 0x14a   : > { %v3769_v58 = vrot.slane %v3766_v14, 4  ;;  %v3771_v32 = vor.u32 %v3770_v51, %v10929_v5  ;;  %v3773_v40 = vrot.slane %v3770_v51, 4  ;;  %v6678_v23 = vpop.f32.mrf.mxu1  ;;  %v3760_v9 = vsel %vm9237_vm7, %v3752_v35, %v3759_v18  ;;  %v10934_v5 = vld [vmem:[#allocation21_spill] sm:$0xff] }
 0x14b   : > { %v1123_v42 = vadd.f32 %v6678_v23, %v10930_v27  ;;  %v9405_v33 = vadd.f32 %v1506_v31, %v1102_v34  ;;  %v3775_v45 = vor.u32 %v3774_v26, %v10931_v21  ;;  %v9408_v43 = vpop.f32.mrf.mxu0  ;;  %v6314_v2 = vcombine.low %v3751_v25, %v3760_v9  ;;  %v7256_v25 = vld [vmem:[%s7426_s20 + $0x64] sm:$0xf] }
 0x14c   : > { %v3768_v16 = vsel %vm9237_vm7, %v6299_v6, %v3767_v30  ;;  %v3772_v59 = vsel %vm9237_vm7, %v3769_v58, %v3771_v32  ;;  %v3777_v24 = vrot.slane %v3774_v26, 4  ;;  %v1114_v28 = vpop.f32.mrf.mxu1  ;;  %v3779_v4 = vshrl.u32 %v9400_v8, 16  ;;  %v10933_v34 = vld [vmem:[#allocation15_spill] sm:$0xff]  ;;  %v7258_v30 = vld [vmem:[%s7426_s20 + $0x6c] sm:$0xf] }
 0x14d   : > { %v6315_v35 = vcombine.low %v3768_v16, %v3772_v59  ;;  %v3776_v31 = vsel %vm9237_vm7, %v3773_v40, %v3775_v45  ;;  %v6718_v14 = vpop.f32.mrf.mxu0  ;;  %6889 = vmatmul.mubr.msk.bf16.gmra.mxu1 %vm666_vm2, %v6314_v2  ;;  %v6353_v51 = vcombine.low %v7256_v25, %v7257_v46  ;;  %v1115_v26 = vadd.f32 %v1114_v28, %v10932_v36  ;;  %v10935_v40 = vld [vmem:[#allocation37_spill] sm:$0xff]  ;;  %v10938_v59 = vld [vmem:[#allocation23_spill] sm:$0xff]  ;;  %v10940_v36 = vld [vmem:[#allocation38_spill] sm:$0xff] }
 0x14e   : > { %6925 = vmatmul.mubr.msk.bf16.gmra.mxu0 %vm666_vm2, %v6352_v48  ;;  %v9423_v18 = vadd.f32 %v6714_v10, %v1123_v42  ;;  %v6679_v22 = vpop.f32.mrf.mxu1  ;;  %v3787_v6 = vshrl.u32 %v10933_v34, 16  ;;  %v3781_v50 = vrot.slane %v3779_v4, 7  ;;  %v6354_v58 = vcombine.low %v7258_v30, %v9400_v8  ;;  %v10936_v42 = vld [vmem:[#allocation39_spill] sm:$0xff]  ;;  %v10937_v45 = vld [vmem:[#allocation41_spill] sm:$0xff]  ;;  %v10941_v34 = vld [vmem:[#allocation40_spill] sm:$0xff] }
 0x14f   : > { %6892 = vmatprep.mubr.msk.bf16.mxu1 %vm666_vm2, %v6315_v35  ;;  %v1126_v32 = vadd.f32 %v6679_v22, %v10934_v5  ;;  %v3791_v48 = vrot.slane %v10935_v40, 7  ;;  %v1535_v23 = vpop.f32.mrf.mxu0  ;;  %6928 = vmatprep.mubr.msk.bf16.mxu0 %vm666_vm2, %v6353_v51  ;;  %v9432_v9 = vadd.f32 %v1519_v29, %v1115_v26  ;;  %v3795_v21 = vrot.slane %v10936_v42, 7  ;;  %v10939_v35 = vld [vmem:[#allocation36_spill] sm:$0xff] }
 0x150   : > { %v1117_v10 = vpop.f32.mrf.mxu1  ;;  %v6300_v27 = vrot.slane %v3787_v6, 11  ;;  %v3799_v2 = vrot.slane %v10937_v45, 7  ;;  %v3784_v16 = vor.u32 %v3782_v37, %v3781_v50  ;;  %v9444_v22 = vld [vmem:[%s7426_s20 + $0x88] sm:$0xf]  ;;  %v10942_v50 = vld [vmem:[#allocation19_spill] sm:$0xff]  ;;  %vm5915_vm9 = vcmask 1042434  }
 0x151   : > { %v9437_v28 = vadd.f32 %v1117_v10, %v10938_v59  ;;  %v9439_v8 = vadd.f32 %v6715_v47, %v1126_v32  ;;  %v3792_v4 = vor.u32 %v3791_v48, %v10939_v35  ;;  %v6719_v25 = vpop.f32.mrf.mxu0  ;;  %v3794_v46 = vrot.slane %v3791_v48, 4  ;;  %v9463_v35 = vld [vmem:[%s7426_s20 + $0xa0] sm:$0xf] }
 0x152   : > { %v3796_v51 = vor.u32 %v3795_v21, %v10940_v36  ;;  %v3798_v29 = vrot.slane %v3795_v21, 4  ;;  %v6682_v26 = vpop.f32.mrf.mxu1  ;;  %v3800_v6 = vor.u32 %v3799_v2, %v10941_v34  ;;  %v3785_v37 = vsel %vm9237_vm7, %v3777_v24, %v3784_v16  ;;  %v7260_v16 = vld [vmem:[%s7426_s20 + $0x80] sm:$0xf] }
 0x153   : > { %v3793_v47 = vsel %vm9237_vm7, %v6300_v27, %v3792_v4  ;;  %v1139_v30 = vadd.f32 %v6682_v26, %v10942_v50  ;;  %v9452_v5 = vpop.f32.mrf.mxu0  ;;  %v6316_v32 = vcombine.low %v3776_v31, %v3785_v37  ;;  %v3802_v10 = vrot.slane %v3799_v2, 4  ;;  %v7259_v27 = vld [vmem:[%s7426_s20 + $0x7c] sm:$0xf]  ;;  %v7261_v2 = vld [vmem:[%s7426_s20 + $0x84] sm:$0xf] }
 0x154   : > { %v3797_v40 = vsel %vm9237_vm7, %v3794_v46, %v3796_v51  ;;  %v3801_v48 = vsel %vm9237_vm7, %v3798_v29, %v3800_v6  ;;  %v1130_v42 = vpop.f32.mrf.mxu1  ;;  %v3804_v24 = vshrl.u32 %v9444_v22, 16  ;;  %v3807_v45 = vshll.u32 %v9444_v22, 16  ;;  %v10943_v4 = vld [vmem:[#allocation18_spill] sm:$0xff]  ;;  %v10944_v6 = vld [vmem:[#allocation56_spill] sm:$0xff] }
 0x155   : > { %v6317_v21 = vcombine.low %v3793_v47, %v3797_v40  ;;  %v6355_v59 = vcombine.low %v7259_v27, %v7260_v16  ;;  %v6722_v31 = vpop.f32.mrf.mxu0  ;;  %6893 = vmatmul.mubr.msk.bf16.gmra.mxu1 %vm666_vm2, %v6316_v32  ;;  %v1131_v46 = vadd.f32 %v1130_v42, %v10943_v4  ;;  %v9468_v36 = vadd.f32 %v6718_v14, %v1139_v30  ;;  %v10945_v47 = vld [vmem:[#allocation43_spill] sm:$0xff] }
 0x156   : > { %6929 = vmatmul.mubr.msk.bf16.gmra.mxu0 %vm666_vm2, %v6354_v58  ;;  %v6356_v51 = vcombine.low %v7261_v2, %v9444_v22  ;;  %v6683_v29 = vpop.f32.mrf.mxu1  ;;  %v3812_v26 = vshrl.u32 %v9137_v61, 16  ;;  %v3806_v34 = vrot.slane %v3804_v24, 7  ;;  %v3816_v50 = vrot.slane %v10945_v47, 7  ;;  %v10946_v58 = vld [vmem:[#allocation45_spill] sm:$0xff]  ;;  %v10947_v22 = vld [vmem:[#allocation47_spill] sm:$0xff] }
 0x157   : > { %6896 = vmatprep.mubr.msk.bf16.mxu1 %vm666_vm2, %v6317_v21  ;;  %6932 = vmatprep.mubr.msk.bf16.mxu0 %vm666_vm2, %v6355_v59  ;;  %v1142_v37 = vadd.f32 %v6683_v29, %v10944_v6  ;;  %v3820_v32 = vrot.slane %v10946_v58, 7  ;;  %v1551_v40 = vpop.f32.mrf.mxu0  ;;  %v9478_v14 = vadd.f32 %v1535_v23, %v1131_v46  ;;  %v3824_v27 = vrot.slane %v10947_v22, 7  ;;  %v10948_v59 = vld [vmem:[#allocation42_spill] sm:$0xff]  ;;  %v10949_v6 = vld [vmem:[#allocation44_spill] sm:$0xff] }
 0x158   : > { %v1133_v30 = vpop.f32.mrf.mxu1  ;;  %v6301_v42 = vrot.slane %v3812_v26, 11  ;;  %v3829_v61 = vshrl.u32 %v9463_v35, 16  ;;  %v3809_v16 = vor.u32 %v3807_v45, %v3806_v34  ;;  %v3817_v4 = vor.u32 %v3816_v50, %v10948_v59  ;;  %v10950_v26 = vld [vmem:[#allocation46_spill] sm:$0xff] }
 0x159   : > { %v9483_v21 = vadd.f32 %v1133_v30, %v9146_v12  ;;  %v9485_v24 = vadd.f32 %v6719_v25, %v1142_v37  ;;  %v6723_v2 = vpop.f32.mrf.mxu0  ;;  %v3819_v29 = vrot.slane %v3816_v50, 4  ;;  %v3821_v47 = vor.u32 %v3820_v32, %v10949_v6 }
 0x15a   : > { %v3823_v23 = vrot.slane %v3820_v32, 4  ;;  %v6686_v46 = vpop.f32.mrf.mxu1  ;;  %v3825_v58 = vor.u32 %v3824_v27, %v10950_v26  ;;  %v3810_v45 = vsel %vm9237_vm7, %v3802_v10, %v3809_v16  ;;  %v3818_v12 = vsel %vm9237_vm7, %v6301_v42, %v3817_v4  ;;  %v7262_v16 = vld [vmem:[%s7426_s20 + $0x94] sm:$0xf]  ;;  %v7263_v42 = vld [vmem:[%s7426_s20 + $0x98] sm:$0xf] }
 0x15b   : > { %v1155_v25 = vadd.f32 %v6686_v46, %v9151_v15  ;;  %v9495_v34 = vpop.f32.mrf.mxu0  ;;  %v6318_v37 = vcombine.low %v3801_v48, %v3810_v45  ;;  %v3822_v50 = vsel %vm9237_vm7, %v3819_v29, %v3821_v47  ;;  %v3827_v30 = vrot.slane %v3824_v27, 4  ;;  %v9505_v15 = vld [vmem:[%s7426_s20 + $0xb8] sm:$0xf]  ;;  %v7264_v27 = vld [vmem:[%s7426_s20 + $0x9c] sm:$0xf] }
 0x15c   : > { %v3826_v32 = vsel %vm9237_vm7, %v3823_v23, %v3825_v58  ;;  %v1146_v22 = vpop.f32.mrf.mxu1  ;;  %v6319_v59 = vcombine.low %v3818_v12, %v3822_v50  ;;  %v3831_v6 = vrot.slane %v3829_v61, 7  ;;  %v3832_v10 = vshll.u32 %v9463_v35, 16 }
 0x15d   : > { %v6357_v4 = vcombine.low %v7262_v16, %v7263_v42  ;;  %v6726_v46 = vpop.f32.mrf.mxu0  ;;  %6897 = vmatmul.mubr.msk.bf16.gmra.mxu1 %vm666_vm2, %v6318_v37  ;;  %v1147_v48 = vadd.f32 %v1146_v22, %v9163_v17  ;;  %v9510_v29 = vadd.f32 %v6722_v31, %v1155_v25  ;;  %v6358_v47 = vcombine.low %v7264_v27, %v9463_v35  ;;  %v10951_v35 = vld [vmem:[#allocation55_spill] sm:$0xff]  ;;  %v10952_v22 = vld [vmem:[#allocation57_spill] sm:$0xff]  ;;  %v10954_v16 = vld [vmem:[#allocation52_spill] sm:$0xff] }
 0x15e   : > { %6933 = vmatmul.mubr.msk.bf16.gmra.mxu0 %vm666_vm2, %v6356_v51  ;;  %v6687_v61 = vpop.f32.mrf.mxu1  ;;  %v3837_v23 = vshrl.u32 %v9183_v49, 16  ;;  %6900 = vmatprep.mubr.msk.bf16.mxu1 %vm666_vm2, %v6319_v59  ;;  %v3834_v26 = vor.u32 %v3832_v10, %v3831_v6  ;;  %v3841_v45 = vrot.slane %v10825_v63, 7  ;;  %v3845_v51 = vrot.slane %v10897_v54, 7  ;;  %v10953_v63 = vld [vmem:[#allocation50_spill] sm:$0xff] }
 0x15f   : > { %6936 = vmatprep.mubr.msk.bf16.mxu0 %vm666_vm2, %v6357_v4  ;;  %v1158_v58 = vadd.f32 %v6687_v61, %v9174_v1  ;;  %v1567_v17 = vpop.f32.mrf.mxu0  ;;  %v9520_v31 = vadd.f32 %v1551_v40, %v1147_v48  ;;  %v3849_v37 = vrot.slane %v10951_v35, 7  ;;  %v3854_v49 = vshrl.u32 %v9505_v15, 16  ;;  %v10955_v61 = vld [vmem:[#allocation54_spill] sm:$0xff]  ;;  %v4458_v35 = vld [vmem:[%s7426_s20 + $0x8] sm:$0xf] }
 0x160   : > { %v1149_v12 = vpop.f32.mrf.mxu1  ;;  %v6302_v25 = vrot.slane %v3837_v23, 11  ;;  %v3835_v50 = vsel %vm9237_vm7, %v3827_v30, %v3834_v26  ;;  %v3842_v54 = vor.u32 %v3841_v45, %v10953_v63  ;;  %v3844_v10 = vrot.slane %v3841_v45, 4  ;;  %v4457_v23 = vld [vmem:[%s7426_s20 + $0x4] sm:$0xf] }
 0x161   : > { %v9527_v59 = vadd.f32 %v1149_v12, %v10952_v22  ;;  %v9529_v1 = vadd.f32 %v6723_v2, %v1158_v58  ;;  %v6727_v6 = vpop.f32.mrf.mxu0  ;;  %v6320_v40 = vcombine.low %v3826_v32, %v3835_v50  ;;  %v3846_v42 = vor.u32 %v3845_v51, %v10954_v16  ;;  %v7266_v22 = vld [vmem:[%s7426_s20 + $0xb0] sm:$0xf]  ;;  %v4459_v16 = vld [vmem:[%s7426_s20 + $0xc] sm:$0xf] }
 0x162   : > { %v3848_v4 = vrot.slane %v3845_v51, 4  ;;  %v3843_v30 = vsel %vm9237_vm7, %v6302_v25, %v3842_v54  ;;  %v3850_v2 = vor.u32 %v3849_v37, %v10955_v61  ;;  %v3852_v58 = vrot.slane %v3849_v37, 4  ;;  %v7265_v25 = vld [vmem:[%s7426_s20 + $0xac] sm:$0xf] }
 0x163   : > { %v6690_v48 = vpop.f32.mrf.mxu1  ;;  %v9538_v26 = vpop.f32.mrf.mxu0  ;;  %v3847_v32 = vsel %vm9237_vm7, %v3844_v10, %v3846_v42  ;;  %v3856_v45 = vrot.slane %v3854_v49, 7  ;;  %v3857_v51 = vshll.u32 %v9505_v15, 16  ;;  %v6359_v63 = vcombine.low %v7265_v25, %v7266_v22  ;;  %v7267_v10 = vld [vmem:[%s7426_s20 + $0xb4] sm:$0xf] }
 0x164   : > { %v1171_v27 = vadd.f32 %v6690_v48, %v9196_v20  ;;  %v6321_v50 = vcombine.low %v3843_v30, %v3847_v32  ;;  %v3851_v20 = vsel %vm9237_vm7, %v3848_v4, %v3850_v2  ;;  %v6360_v42 = vcombine.low %v7267_v10, %v9505_v15 }
 0x165   : > { %v1162_v12 = vpop.f32.mrf.mxu1  ;;  %v6770_v48 = vpop.f32.mrf.mxu0  ;;  %6901 = vmatmul.mubr.msk.bf16.gmra.mxu1 %vm666_vm2, %v6320_v40  ;;  %v3859_v37 = vor.u32 %v3857_v51, %v3856_v45  ;;  %v4498_v30 = vshrl.u32 %v4457_v23, 16  ;;  %v4460_v40 = vld [vmem:[%s7426_s20 + $0x10] sm:$0xf]  ;;  %v4501_v32 = vshll.u32 %v4457_v23, 16  ;;  %v4461_v51 = vld [vmem:[%s7426_s20 + $0x14] sm:$0x1] }
 0x166   : > { %v1163_v54 = vadd.f32 %v1162_v12, %v9202_v11  ;;  %6937 = vmatmul.mubr.msk.bf16.gmra.mxu0 %vm666_vm2, %v6358_v47  ;;  %v9552_v49 = vadd.f32 %v6726_v46, %v1171_v27  ;;  %6904 = vmatprep.mubr.msk.bf16.mxu1 %vm666_vm2, %v6321_v50  ;;  %v10957_v11 = vld [vmem:[#allocation58_spill] sm:$0xff]  ;;  %v4507_v47 = vshll.u32 %v4458_v35, 16  ;;  %v4511_v12 = vshrl.u32 %v4458_v35, 16  ;;  %v10959_v50 = vld [vmem:[#allocation59_spill] sm:$0xff] }
 0x167   : > { %v6691_v4 = vpop.f32.mrf.mxu1  ;;  %6940 = vmatprep.mubr.msk.bf16.mxu0 %vm666_vm2, %v6359_v63  ;;  %v2473_v45 = vpop.f32.mrf.mxu0  ;;  %v3860_v46 = vsel %vm9237_vm7, %v3852_v58, %v3859_v37  ;;  %v4500_v15 = vrot.slane %v4498_v30, 4  ;;  %v4517_v25 = vshll.u32 %v4459_v16, 16  ;;  %v4527_v37 = vshll.u32 %v4460_v40, 16 }
 0x168   : > { %10956 = vst [vmem:[#allocation60_spill] sm:$0xff] %v9552_v49  ;;  %v1174_v61 = vadd.f32 %v6691_v4, %v10957_v11  ;;  %v9559_v2 = vadd.f32 %v1567_v17, %v1163_v54  ;;  %v6322_v22 = vcombine.low %v3851_v20, %v3860_v46  ;;  %v4503_v17 = vrot.slane %v4501_v32, 5 }
 0x169   : > { %v1165_v27 = vpop.f32.mrf.mxu1  ;;  %v6771_v54 = vpop.f32.mrf.mxu0  ;;  %v4509_v23 = vrot.slane %v4507_v47, 5  ;;  %v4513_v4 = vrot.slane %v4511_v12, 4  ;;  %v4519_v11 = vrot.slane %v4517_v25, 5  ;;  %v4531_v49 = vshrl.u32 %v4460_v40, 16 }
 0x16a   : > { %10958 = vst [vmem:[#allocation53_spill] sm:$0xff] %v9559_v2  ;;  %v9566_v10 = vadd.f32 %v1165_v27, %v10959_v50  ;;  %v9568_v63 = vadd.f32 %v6727_v6, %v1174_v61  ;;  %v4521_v2 = vshrl.u32 %v4459_v16, 16  ;;  %v4504_v58 = vor.u32 %v4503_v17, %v4500_v15  ;;  %v4462_v61 = vld [vmem:[%s7426_s20 + $0x1c] sm:$0xf] }
 0x16b   : > { %v6734_v39 = vpop.f32.mrf.mxu1  ;;  %v4537_v30 = vshll.u32 %v4461_v51, 16  ;;  %v9570_v35 = vpop.f32.mrf.mxu0  ;;  %v4514_v20 = vor.u32 %v4513_v4, %v4509_v23  ;;  %v4529_v50 = vrot.slane %v4527_v37, 5  ;;  %v4533_v47 = vrot.slane %v4531_v49, 4 }
 0x16c   : > { %v4523_v46 = vrot.slane %v4521_v2, 4  ;;  %v2165_v27 = vadd.f32 %v6734_v39, %v9257_v62  ;;  %v4505_v32 = vrot.slane %v4504_v58, 4  ;;  %v4463_v39 = vld [vmem:[%s7426_s20 + $0x20] sm:$0xf]  ;;  %v4542_v58 = vshrl.u32 %v4462_v61, 16 }
 0x16d   : > { %v2036_v6 = vpop.f32.mrf.mxu1  ;;  %v4539_v12 = vrot.slane %v4537_v30, 5  ;;  %6905 = vmatmul.mubr.msk.bf16.gmra.mxu1 %vm666_vm2, %v6322_v22  ;;  %v4515_v16 = vrot.slane %v4514_v20, 4  ;;  %v4534_v4 = vor.u32 %v4533_v47, %v4529_v50  ;;  %v4545_v20 = vshll.u32 %v4462_v61, 16 }
 0x16e   : > { %v6774_v25 = vpop.f32.mrf.mxu0  ;;  %6941 = vmatmul.mubr.msk.bf16.gmra.mxu0 %vm666_vm2, %v6360_v42  ;;  %v4524_v40 = vor.u32 %v4523_v46, %v4519_v11  ;;  %v2163_v51 = vadd.f32 %v2036_v6, %v9266_v19  ;;  %v9577_v2 = vadd.f32 %v6770_v48, %v2165_v27  ;;  %v4510_v17 = vsel %vm7480_vm3, %v4505_v32, %v4509_v23  ;;  %v4464_v48 = vld [vmem:[%s7426_s20 + $0x24] sm:$0xf] }
 0x16f   : > { %v6735_v62 = vpop.f32.mrf.mxu1  ;;  %v4520_v42 = vsel %vm7480_vm3, %v4515_v16, %v4519_v11  ;;  %v4535_v46 = vrot.slane %v4534_v4, 4  ;;  %v4544_v11 = vrot.slane %v4542_v58, 4  ;;  %v4547_v47 = vrot.slane %v4545_v20, 5 }
 0x170   : > { %v2166_v49 = vadd.f32 %v6735_v62, %v9275_v60  ;;  %v2489_v37 = vpop.f32.mrf.mxu0  ;;  %v4525_v22 = vrot.slane %v4524_v40, 4  ;;  %v9585_v30 = vadd.f32 %v2473_v45, %v2163_v51  ;;  %v6383_v27 = vcombine.low %v4510_v17, %v4520_v42  ;;  %v4465_v40 = vld [vmem:[%s7426_s20 + $0x28] sm:$0xf]  ;;  %v4466_v17 = vld [vmem:[%s7426_s20 + $0x2c] sm:$0x1] }
 0x171   : > { %v2039_v19 = vpop.f32.mrf.mxu1  ;;  %v4551_v16 = vshll.u32 %v4463_v39, 16  ;;  %v4540_v61 = vsel %vm7480_vm3, %v4535_v46, %v4539_v12  ;;  %v4555_v51 = vshrl.u32 %v4463_v39, 16  ;;  %v4561_v62 = vshll.u32 %v4464_v48, 16 }
 0x172   : > { %v9589_v23 = vadd.f32 %v2039_v19, %v9285_v44  ;;  %v9591_v60 = vadd.f32 %v6771_v54, %v2166_v49  ;;  %v6775_v6 = vpop.f32.mrf.mxu0  ;;  %v4530_v32 = vsel %vm7480_vm3, %v4525_v22, %v4529_v50  ;;  %6948 = vmatprep.mubr.msk.bf16.mxu1 %vm666_vm2, %v6383_v27  ;;  %v4565_v44 = vshrl.u32 %v4464_v48, 16 }
 0x173   : > { %v6738_v45 = vpop.f32.mrf.mxu1  ;;  %v6384_v4 = vcombine.low %v4530_v32, %v4540_v61  ;;  %v4548_v49 = vor.u32 %v4547_v47, %v4544_v11  ;;  %v4553_v42 = vrot.slane %v4551_v16, 5  ;;  %v4557_v22 = vrot.slane %v4555_v51, 4  ;;  %v4467_v16 = vld [vmem:[%s7426_s20 + $0x34] sm:$0xf] }
 0x174   : > { %10961 = vst [vmem:[#allocation8_spill] sm:$0xff] %v9591_v60  ;;  %v9600_v54 = vpop.f32.mrf.mxu0  ;;  %v2169_v50 = vadd.f32 %v6738_v45, %v9301_v41  ;;  %v4563_v19 = vrot.slane %v4561_v62, 5  ;;  %v4567_v20 = vrot.slane %v4565_v44, 4  ;;  %v4571_v39 = vshll.u32 %v4465_v40, 16 }
 0x175   : > { %10962 = vst [vmem:[#allocation10_spill] sm:$0xff] %v9600_v54  ;;  %v2052_v58 = vpop.f32.mrf.mxu1  ;;  %6949 = vmatmul.mubr.msk.bf16.vlgmr.msra.gmra.mxu1 %vm666_vm2, %v6384_v4  ;;  %v4549_v12 = vrot.slane %v4548_v49, 4  ;;  %v4575_v48 = vshrl.u32 %v4465_v40, 16  ;;  %v4581_v46 = vshll.u32 %v4466_v17, 16  ;;  %v4558_v32 = vor.u32 %v4557_v22, %v4553_v42  ;;  %v4468_v40 = vld [vmem:[%s7426_s20 + $0x38] sm:$0xf] }
 0x176   : > { %v9603_v60 = vpop.f32.mrf.mxu0  ;;  %v4568_v11 = vor.u32 %v4567_v20, %v4563_v19  ;;  %v2167_v47 = vadd.f32 %v2052_v58, %v9310_v53  ;;  %v9607_v41 = vadd.f32 %v6774_v25, %v2169_v50  ;;  %v4573_v51 = vrot.slane %v4571_v39, 5  ;;  %v4469_v58 = vld [vmem:[%s7426_s20 + $0x3c] sm:$0xf] }
 0x177   : > { %v6739_v27 = vpop.f32.mrf.mxu1  ;;  %v4554_v61 = vsel %vm7480_vm3, %v4549_v12, %v4553_v42  ;;  %v4577_v62 = vrot.slane %v4575_v48, 4  ;;  %v4583_v44 = vrot.slane %v4581_v46, 5  ;;  %v4559_v17 = vrot.slane %v4558_v32, 4 }
 0x178   : > { %10963 = vst [vmem:[#allocation5_spill] sm:$0xff] %v9607_v41  ;;  %v9610_v45 = vpop.f32.mrf.mxu0  ;;  %v4569_v49 = vrot.slane %v4568_v11, 4  ;;  %v2170_v22 = vadd.f32 %v6739_v27, %v9320_v3  ;;  %v9616_v20 = vadd.f32 %v2489_v37, %v2167_v47  ;;  %v4586_v42 = vshrl.u32 %v4467_v16, 16 }
 0x179   : > { %v2055_v4 = vpop.f32.mrf.mxu1  ;;  %v4578_v25 = vor.u32 %v4577_v62, %v4573_v51  ;;  %v4589_v12 = vshll.u32 %v4467_v16, 16  ;;  %v4564_v48 = vsel %vm7480_vm3, %v4559_v17, %v4563_v19  ;;  %v4595_v46 = vshll.u32 %v4468_v40, 16  ;;  %v4470_v62 = vld [vmem:[%s7426_s20 + $0x40] sm:$0xf] }
 0x17a   : > { %10964 = vst [vmem:[#allocation7_spill] sm:$0xff] %v9616_v20  ;;  %v9618_v53 = vpop.f32.mrf.mxu0  ;;  %v9621_v50 = vadd.f32 %v2055_v4, %v9326_v0  ;;  %v4574_v3 = vsel %vm7480_vm3, %v4569_v49, %v4573_v51  ;;  %v9628_v37 = vadd.f32 %v6775_v6, %v2170_v22  ;;  %v6385_v32 = vcombine.low %v4554_v61, %v4564_v48 }
 0x17b   : > { %v4579_v11 = vrot.slane %v4578_v25, 4  ;;  %v4588_v0 = vrot.slane %v4586_v42, 4  ;;  %v4591_v47 = vrot.slane %v4589_v12, 5  ;;  %v4597_v16 = vrot.slane %v4595_v46, 5 }
 0x17c   : > { %10965 = vst [vmem:[#allocation9_spill] sm:$0xff] %v9621_v50  ;;  %v6742_v39 = vpop.f32.mrf.mxu1  ;;  %v9630_v27 = vpop.f32.mrf.mxu0  ;;  %v4599_v20 = vshrl.u32 %v4468_v40, 16  ;;  %v4605_v41 = vshll.u32 %v4469_v58, 16  ;;  %v4609_v54 = vshrl.u32 %v4469_v58, 16  ;;  %v4471_v50 = vld [vmem:[%s7426_s20 + $0x44] sm:$0x1]  ;;  %6952 = vmatprep.mubr.msk.bf16.mxu1 %vm666_vm2, %v6385_v32 }
 0x17d   : > { %10966 = vst [vmem:[#allocation13_spill] sm:$0xff] %v9630_v27  ;;  %v4584_v6 = vsel %vm7480_vm3, %v4579_v11, %v4583_v44  ;;  %v4592_v51 = vor.u32 %v4591_v47, %v4588_v0  ;;  %v2173_v61 = vadd.f32 %v6742_v39, %v9341_v52  ;;  %v4615_v12 = vshll.u32 %v4470_v62, 16  ;;  %v4473_v47 = vld [vmem:[%s7426_s20 + $0x50] sm:$0xf] }
 0x17e   : > { %v2068_v4 = vpop.f32.mrf.mxu1  ;;  %v6386_v49 = vcombine.low %v4574_v3, %v4584_v6  ;;  %v4601_v22 = vrot.slane %v4599_v20, 4  ;;  %v4607_v25 = vrot.slane %v4605_v41, 5  ;;  %v4611_v42 = vrot.slane %v4609_v54, 4  ;;  %v4472_v41 = vld [vmem:[%s7426_s20 + $0x4c] sm:$0xf] }
 0x17f   : > { %v9634_v19 = vpop.f32.mrf.mxu0  ;;  %v4593_v58 = vrot.slane %v4592_v51, 4  ;;  %v4619_v48 = vshrl.u32 %v4470_v62, 16  ;;  %v4625_v46 = vshll.u32 %v4471_v50, 16  ;;  %v2171_v52 = vadd.f32 %v2068_v4, %v9351_v7 }
 0x180   : > { %v6743_v17 = vpop.f32.mrf.mxu1  ;;  %6953 = vmatmul.mubr.msk.bf16.gmra.mxu1 %vm666_vm2, %v6386_v49  ;;  %v4602_v44 = vor.u32 %v4601_v22, %v4597_v16  ;;  %v4612_v11 = vor.u32 %v4611_v42, %v4607_v25  ;;  %v9645_v39 = vadd.f32 %v9603_v60, %v2173_v61  ;;  %v4617_v3 = vrot.slane %v4615_v12, 5 }
 0x181   : > { %v9640_v40 = vpop.f32.mrf.mxu0  ;;  %v4598_v20 = vsel %vm7480_vm3, %v4593_v58, %v4597_v16  ;;  %v4621_v0 = vrot.slane %v4619_v48, 4  ;;  %v4627_v50 = vrot.slane %v4625_v46, 5  ;;  %v2174_v49 = vadd.f32 %v6743_v17, %v9354_v13  ;;  %v4474_v16 = vld [vmem:[%s7426_s20 + $0x54] sm:$0xf] }
 0x182   : > { %v2071_v32 = vpop.f32.mrf.mxu1  ;;  %v4603_v6 = vrot.slane %v4602_v44, 4  ;;  %v4613_v51 = vrot.slane %v4612_v11, 4  ;;  %v9655_v7 = vadd.f32 %v9610_v45, %v2171_v52  ;;  %v4630_v22 = vshrl.u32 %v4472_v41, 16  ;;  %v4475_v11 = vld [vmem:[%s7426_s20 + $0x58] sm:$0xf] }
 0x183   : > { %v9648_v54 = vpop.f32.mrf.mxu0  ;;  %v4622_v4 = vor.u32 %v4621_v0, %v4617_v3  ;;  %v9660_v61 = vadd.f32 %v2071_v32, %v9367_v56  ;;  %v4633_v42 = vshll.u32 %v4472_v41, 16  ;;  %v9668_v45 = vadd.f32 %v9618_v53, %v2174_v49 }
 0x184   : > { %v6746_v62 = vpop.f32.mrf.mxu1  ;;  %v4608_v12 = vsel %vm7480_vm3, %v4603_v6, %v4607_v25  ;;  %v4618_v13 = vsel %vm7480_vm3, %v4613_v51, %v4617_v3  ;;  %v4639_v17 = vshll.u32 %v4473_v47, 16  ;;  %v4632_v32 = vrot.slane %v4630_v22, 4  ;;  %v4476_v25 = vld [vmem:[%s7426_s20 + $0x5c] sm:$0x1] }
 0x185   : > { %v9657_v60 = vpop.f32.mrf.mxu0  ;;  %v6387_v46 = vcombine.low %v4598_v20, %v4608_v12  ;;  %v4623_v56 = vrot.slane %v4622_v4, 4  ;;  %v4635_v44 = vrot.slane %v4633_v42, 5  ;;  %v4643_v0 = vshrl.u32 %v4473_v47, 16 }
 0x186   : > { %10967 = vst [vmem:[#allocation12_spill] sm:$0xff] %v9657_v60  ;;  %v2084_v58 = vpop.f32.mrf.mxu1  ;;  %v4641_v41 = vrot.slane %v4639_v17, 5  ;;  %v4649_v60 = vshll.u32 %v4474_v16, 16  ;;  %v4653_v27 = vshrl.u32 %v4474_v16, 16  ;;  %v9678_v53 = vadd.f32 %v9408_v43, %v9437_v28 }
 0x187   : > { %v9670_v48 = vpop.f32.mrf.mxu0  ;;  %6956 = vmatprep.mubr.msk.bf16.mxu1 %vm666_vm2, %v6387_v46  ;;  %v4628_v20 = vsel %vm7480_vm3, %v4623_v56, %v4627_v50  ;;  %v4636_v3 = vor.u32 %v4635_v44, %v4632_v32  ;;  %v2177_v51 = vadd.f32 %v6746_v62, %v9381_v57  ;;  %v4645_v4 = vrot.slane %v4643_v0, 4  ;;  %v4478_v0 = vld [vmem:[%s7426_s20 + $0x68] sm:$0xf] }
 0x188   : > { %v6747_v52 = vpop.f32.mrf.mxu1  ;;  %v6388_v47 = vcombine.low %v4618_v13, %v4628_v20  ;;  %v4651_v16 = vrot.slane %v4649_v60, 5  ;;  %v4655_v22 = vrot.slane %v4653_v27, 4  ;;  %v4659_v43 = vshll.u32 %v4475_v11, 16  ;;  %v4477_v60 = vld [vmem:[%s7426_s20 + $0x64] sm:$0xf] }
 0x189   : > { %v9674_v6 = vpop.f32.mrf.mxu0  ;;  %v4637_v12 = vrot.slane %v4636_v3, 4  ;;  %v4663_v28 = vshrl.u32 %v4475_v11, 16  ;;  %v4669_v17 = vshll.u32 %v4476_v25, 16  ;;  %v4646_v50 = vor.u32 %v4645_v4, %v4641_v41 }
 0x18a   : > { %v2087_v49 = vpop.f32.mrf.mxu1  ;;  %6957 = vmatmul.mubr.msk.bf16.gmra.mxu1 %vm666_vm2, %v6388_v47  ;;  %v4656_v56 = vor.u32 %v4655_v22, %v4651_v16  ;;  %v2175_v57 = vadd.f32 %v2084_v58, %v9389_v55  ;;  %v9689_v62 = vadd.f32 %v9634_v19, %v2177_v51  ;;  %v4661_v32 = vrot.slane %v4659_v43, 5 }
 0x18b   : > { %v9684_v42 = vpop.f32.mrf.mxu0  ;;  %v4642_v13 = vsel %vm7480_vm3, %v4637_v12, %v4641_v41  ;;  %v4665_v44 = vrot.slane %v4663_v28, 4  ;;  %v4671_v11 = vrot.slane %v4669_v17, 5  ;;  %v4647_v20 = vrot.slane %v4646_v50, 4  ;;  %v4479_v41 = vld [vmem:[%s7426_s20 + $0x6c] sm:$0xf] }
 0x18c   : > { %v6750_v46 = vpop.f32.mrf.mxu1  ;;  %v4657_v3 = vrot.slane %v4656_v56, 4  ;;  %v2178_v47 = vadd.f32 %v6747_v52, %v9395_v38  ;;  %v9699_v55 = vadd.f32 %v9640_v40, %v2175_v57  ;;  %v9704_v51 = vadd.f32 %v2087_v49, %v9405_v33  ;;  %v4480_v56 = vld [vmem:[%s7426_s20 + $0x70] sm:$0xf] }
 0x18d   : > { %v9692_v27 = vpop.f32.mrf.mxu0  ;;  %v4666_v58 = vor.u32 %v4665_v44, %v4661_v32  ;;  %v4674_v4 = vshrl.u32 %v4477_v60, 16  ;;  %v4677_v22 = vshll.u32 %v4477_v60, 16  ;;  %v4652_v43 = vsel %vm7480_vm3, %v4647_v20, %v4651_v16  ;;  %v4481_v16 = vld [vmem:[%s7426_s20 + $0x74] sm:$0x1] }
 0x18e   : > { %10968 = vst [vmem:[#allocation14_spill] sm:$0xff] %v9692_v27  ;;  %v2100_v25 = vpop.f32.mrf.mxu1  ;;  %10969 = vst [vmem:[#allocation16_spill] sm:$0xff] %v9704_v51  ;;  %v4662_v38 = vsel %vm7480_vm3, %v4657_v3, %v4661_v32  ;;  %v9712_v40 = vadd.f32 %v9648_v54, %v2178_v47  ;;  %v4683_v52 = vshll.u32 %v4478_v0, 16  ;;  %v6389_v17 = vcombine.low %v4642_v13, %v4652_v43 }
 0x18f   : > { %v9701_v19 = vpop.f32.mrf.mxu0  ;;  %v4667_v33 = vrot.slane %v4666_v58, 4  ;;  %v4676_v49 = vrot.slane %v4674_v4, 4  ;;  %v4679_v50 = vrot.slane %v4677_v22, 5  ;;  %v4687_v44 = vshrl.u32 %v4478_v0, 16  ;;  %v7073_v0 = vld [vmem:[%s10558_s3] ss:$8 sps:$4 sm:$0xff]  }
 0x190   : > { %v6751_v12 = vpop.f32.mrf.mxu1  ;;  %v4685_v60 = vrot.slane %v4683_v52, 5  ;;  %v4693_v27 = vshll.u32 %v4479_v41, 16  ;;  %v4697_v51 = vshrl.u32 %v4479_v41, 16  ;;  %v9722_v54 = vadd.f32 %v9452_v5, %v9483_v21  ;;  %6960 = vmatprep.mubr.msk.bf16.mxu1 %vm666_vm2, %v6389_v17  ;;  %v7075_v58 = vld [vmem:[%s10558_s3 + $0x4] ss:$8 sps:$4 sm:$0xff]  }
 0x191   : > { %v9714_v28 = vpop.f32.mrf.mxu0  ;;  %v4672_v13 = vsel %vm7480_vm3, %v4667_v33, %v4671_v11  ;;  %v4680_v32 = vor.u32 %v4679_v50, %v4676_v49  ;;  %v2181_v3 = vadd.f32 %v6750_v46, %v9423_v18  ;;  %v4689_v5 = vrot.slane %v4687_v44, 4  ;;  %5317 = vmatprep.subr.bf16.mxu0 %v7075_v58 }
 0x192   : > { %v2103_v57 = vpop.f32.mrf.mxu1  ;;  %v6390_v41 = vcombine.low %v4662_v38, %v4672_v13  ;;  %v4695_v21 = vrot.slane %v4693_v27, 5  ;;  %v4699_v4 = vrot.slane %v4697_v51, 4  ;;  %v4703_v43 = vshll.u32 %v4480_v56, 16  ;;  %v4482_v27 = vld [vmem:[%s7426_s20 + $0x7c] sm:$0xf]  ;;  %5318 = vmatpush1.bf16.msra.mxu0 %v7073_v0 }
 0x193   : > { %v9718_v20 = vpop.f32.mrf.mxu0  ;;  %v4681_v11 = vrot.slane %v4680_v32, 4  ;;  %v4707_v18 = vshrl.u32 %v4480_v56, 16  ;;  %v4713_v46 = vshll.u32 %v4481_v16, 16  ;;  %v4690_v17 = vor.u32 %v4689_v5, %v4685_v60  ;;  %v4483_v13 = vld [vmem:[%s7426_s20 + $0x80] sm:$0xf] }
 0x194   : > { %v6754_v47 = vpop.f32.mrf.mxu1  ;;  %6961 = vmatmul.mubr.msk.bf16.gmra.mxu1 %vm666_vm2, %v6390_v41  ;;  %v4700_v33 = vor.u32 %v4699_v4, %v4695_v21  ;;  %v2179_v38 = vadd.f32 %v2100_v25, %v9432_v9  ;;  %v9741_v49 = vadd.f32 %v9670_v48, %v2181_v3  ;;  %v4705_v56 = vrot.slane %v4703_v43, 5 }
 0x195   : > { %v9734_v22 = vpop.f32.mrf.mxu0  ;;  %v4686_v50 = vsel %vm7480_vm3, %v4681_v11, %v4685_v60  ;;  %v4709_v44 = vrot.slane %v4707_v18, 4  ;;  %v4715_v16 = vrot.slane %v4713_v46, 5  ;;  %v4691_v58 = vrot.slane %v4690_v17, 4  ;;  %v4484_v60 = vld [vmem:[%s7426_s20 + $0x84] sm:$0xf] }
 0x196   : > { %10970 = vst [vmem:[#allocation20_spill] sm:$0xff] %v9734_v22  ;;  %v9736_v52 = vpop.f32.mrf.mxu1  ;;  %v4701_v41 = vrot.slane %v4700_v33, 4  ;;  %v2182_v9 = vadd.f32 %v6751_v12, %v9439_v8  ;;  %v9751_v48 = vadd.f32 %v9674_v6, %v2179_v38  ;;  %v9756_v5 = vadd.f32 %v2103_v57, %v9678_v53  ;;  %v4485_v33 = vld [vmem:[%s7426_s20 + $0x88] sm:$0xf] }
 0x197   : > { %v9744_v51 = vpop.f32.mrf.mxu0  ;;  %v4710_v3 = vor.u32 %v4709_v44, %v4705_v56  ;;  %v4718_v4 = vshrl.u32 %v4482_v27, 16  ;;  %v4721_v11 = vshll.u32 %v4482_v27, 16  ;;  %v4696_v0 = vsel %vm7480_vm3, %v4691_v58, %v4695_v21  ;;  %v4486_v58 = vld [vmem:[%s7426_s20 + $0x8c] sm:$0x1] }
 0x198   : > { %v6755_v32 = vpop.f32.mrf.mxu1  ;;  %10971 = vst [vmem:[#allocation22_spill] sm:$0xff] %v9756_v5  ;;  %v4706_v8 = vsel %vm7480_vm3, %v4701_v41, %v4705_v56  ;;  %v9764_v6 = vadd.f32 %v9684_v42, %v2182_v9  ;;  %v4727_v12 = vshll.u32 %v4483_v13, 16  ;;  %v6391_v46 = vcombine.low %v4686_v50, %v4696_v0 }
 0x199   : > { %v9753_v25 = vpop.f32.mrf.mxu0  ;;  %v4711_v53 = vrot.slane %v4710_v3, 4  ;;  %v4720_v57 = vrot.slane %v4718_v4, 4  ;;  %v4723_v17 = vrot.slane %v4721_v11, 5  ;;  %v4731_v44 = vshrl.u32 %v4483_v13, 16 }
 0x19a   : > { %v2119_v43 = vpop.f32.mrf.mxu1  ;;  %v4729_v27 = vrot.slane %v4727_v12, 5  ;;  %v4737_v22 = vshll.u32 %v4484_v60, 16  ;;  %v4741_v21 = vshrl.u32 %v4484_v60, 16  ;;  %v9776_v42 = vadd.f32 %v9495_v34, %v9527_v59  ;;  %6964 = vmatprep.mubr.msk.bf16.mxu1 %vm666_vm2, %v6391_v46 }
 0x19b   : > { %v9766_v18 = vpop.f32.mrf.mxu0  ;;  %v4716_v50 = vsel %vm7480_vm3, %v4711_v53, %v4715_v16  ;;  %v4724_v56 = vor.u32 %v4723_v17, %v4720_v57  ;;  %v2185_v41 = vadd.f32 %v6754_v47, %v9468_v36  ;;  %v4733_v3 = vrot.slane %v4731_v44, 4 }
 0x19c   : > { %v9769_v38 = vpop.f32.mrf.mxu1  ;;  %v6392_v13 = vcombine.low %v4706_v8, %v4716_v50  ;;  %v4739_v60 = vrot.slane %v4737_v22, 5  ;;  %v4743_v4 = vrot.slane %v4741_v21, 4  ;;  %v4747_v34 = vshll.u32 %v4485_v33, 16  ;;  %v4487_v22 = vld [vmem:[%s7426_s20 + $0x94] sm:$0xf] }
 0x19d   : > { %v9772_v5 = vpop.f32.mrf.mxu0  ;;  %v4725_v0 = vrot.slane %v4724_v56, 4  ;;  %v4751_v59 = vshrl.u32 %v4485_v33, 16  ;;  %v4757_v12 = vshll.u32 %v4486_v58, 16  ;;  %v4734_v16 = vor.u32 %v4733_v3, %v4729_v27  ;;  %v4488_v21 = vld [vmem:[%s7426_s20 + $0x98] sm:$0xf] }
 0x19e   : > { %10972 = vst [vmem:[#allocation25_spill] sm:$0xff] %v9772_v5  ;;  %v9782_v9 = vpop.f32.mrf.mxu1  ;;  %6965 = vmatmul.mubr.msk.bf16.gmra.mxu1 %vm666_vm2, %v6392_v13  ;;  %v4744_v36 = vor.u32 %v4743_v4, %v4739_v60  ;;  %v2183_v47 = vadd.f32 %v9736_v52, %v9478_v14  ;;  %v9792_v8 = vadd.f32 %v9701_v19, %v2185_v41  ;;  %v4749_v17 = vrot.slane %v4747_v34, 5 }
 0x19f   : > { %v9784_v11 = vpop.f32.mrf.mxu0  ;;  %v4730_v57 = vsel %vm7480_vm3, %v4725_v0, %v4729_v27  ;;  %v4753_v33 = vrot.slane %v4751_v59, 4  ;;  %v4759_v44 = vrot.slane %v4757_v12, 5  ;;  %v4735_v50 = vrot.slane %v4734_v16, 4  ;;  %v4489_v27 = vld [vmem:[%s7426_s20 + $0x9c] sm:$0xf] }
 0x1a0   : > { %v9786_v46 = vpop.f32.mrf.mxu1  ;;  %v4745_v56 = vrot.slane %v4744_v36, 4  ;;  %v2186_v14 = vadd.f32 %v6755_v32, %v9485_v24  ;;  %v9804_v19 = vadd.f32 %v9714_v28, %v2183_v47  ;;  %v9809_v13 = vadd.f32 %v2119_v43, %v9722_v54  ;;  %v4490_v36 = vld [vmem:[%s7426_s20 + $0xa0] sm:$0xf] }
 0x1a1   : > { %v9795_v53 = vpop.f32.mrf.mxu0  ;;  %v4754_v41 = vor.u32 %v4753_v33, %v4749_v17  ;;  %v4762_v3 = vshrl.u32 %v4487_v22, 16  ;;  %v4765_v4 = vshll.u32 %v4487_v22, 16  ;;  %v4740_v34 = vsel %vm7480_vm3, %v4735_v50, %v4739_v60  ;;  %v4491_v50 = vld [vmem:[%s7426_s20 + $0xa4] sm:$0x1] }
 0x1a2   : > { %v9800_v58 = vpop.f32.mrf.mxu1  ;;  %10973 = vst [vmem:[#allocation27_spill] sm:$0xff] %v9809_v13  ;;  %v4750_v24 = vsel %vm7480_vm3, %v4745_v56, %v4749_v17  ;;  %v9819_v28 = vadd.f32 %v9718_v20, %v2186_v14  ;;  %v4771_v32 = vshll.u32 %v4488_v21, 16  ;;  %v6393_v54 = vcombine.low %v4730_v57, %v4740_v34 }
 0x1a3   : > { %v9806_v52 = vpop.f32.mrf.mxu0  ;;  %v4755_v43 = vrot.slane %v4754_v41, 4  ;;  %v4764_v12 = vrot.slane %v4762_v3, 4  ;;  %v4767_v16 = vrot.slane %v4765_v4, 5  ;;  %v4775_v33 = vshrl.u32 %v4488_v21, 16 }
 0x1a4   : > { %v9812_v0 = vpop.f32.mrf.mxu1  ;;  %v4773_v22 = vrot.slane %v4771_v32, 5  ;;  %v4781_v5 = vshll.u32 %v4489_v27, 16  ;;  %v4785_v60 = vshrl.u32 %v4489_v27, 16  ;;  %v9831_v20 = vadd.f32 %v9538_v26, %v9566_v10  ;;  %6968 = vmatprep.mubr.msk.bf16.mxu1 %vm666_vm2, %v6393_v54 }
 0x1a5   : > { %v9821_v59 = vpop.f32.mrf.mxu0  ;;  %v4760_v57 = vsel %vm7480_vm3, %v4755_v43, %v4759_v44  ;;  %v4768_v17 = vor.u32 %v4767_v16, %v4764_v12  ;;  %v2189_v56 = vadd.f32 %v9769_v38, %v9510_v29  ;;  %v4777_v41 = vrot.slane %v4775_v33, 4 }
 0x1a6   : > { %10974 = vst [vmem:[#allocation29_spill] sm:$0xff] %v9821_v59  ;;  %v9824_v47 = vpop.f32.mrf.mxu1  ;;  %v6394_v21 = vcombine.low %v4750_v24, %v4760_v57  ;;  %v4783_v27 = vrot.slane %v4781_v5, 5  ;;  %v4787_v3 = vrot.slane %v4785_v60, 4  ;;  %v4791_v10 = vshll.u32 %v4490_v36, 16  ;;  %v4492_v5 = vld [vmem:[%s7426_s20 + $0xac] sm:$0xf] }
 0x1a7   : > { %v9827_v13 = vpop.f32.mrf.mxu0  ;;  %v4769_v26 = vrot.slane %v4768_v17, 4  ;;  %v4795_v34 = vshrl.u32 %v4490_v36, 16  ;;  %v4801_v32 = vshll.u32 %v4491_v50, 16  ;;  %v4778_v44 = vor.u32 %v4777_v41, %v4773_v22  ;;  %v4493_v60 = vld [vmem:[%s7426_s20 + $0xb0] sm:$0xf] }
 0x1a8   : > { %v9838_v14 = vpop.f32.mrf.mxu1  ;;  %6969 = vmatmul.mubr.msk.bf16.gmra.mxu1 %vm666_vm2, %v6394_v21  ;;  %v4788_v29 = vor.u32 %v4787_v3, %v4783_v27  ;;  %v2187_v38 = vadd.f32 %v9782_v9, %v9520_v31  ;;  %v9848_v24 = vadd.f32 %v9744_v51, %v2189_v56  ;;  %v4793_v16 = vrot.slane %v4791_v10, 5  ;;  %v4494_v21 = vld [vmem:[%s7426_s20 + $0xb4] sm:$0xf] }
 0x1a9   : > { %v9840_v4 = vpop.f32.mrf.mxu0  ;;  %v4774_v12 = vsel %vm7480_vm3, %v4769_v26, %v4773_v22  ;;  %v4797_v36 = vrot.slane %v4795_v34, 4  ;;  %v4803_v33 = vrot.slane %v4801_v32, 5  ;;  %v4779_v57 = vrot.slane %v4778_v44, 4 }
 0x1aa   : > { %v9842_v54 = vpop.f32.mrf.mxu1  ;;  %v4789_v17 = vrot.slane %v4788_v29, 4  ;;  %v2190_v31 = vadd.f32 %v9786_v46, %v9529_v1  ;;  %v9859_v51 = vadd.f32 %v9753_v25, %v2187_v38  ;;  %v9865_v22 = vadd.f32 %v9800_v58, %v9776_v42  ;;  %v4495_v29 = vld [vmem:[%s7426_s20 + $0xb8] sm:$0xf] }
 0x1ab   : > { %v9851_v43 = vpop.f32.mrf.mxu0  ;;  %v4798_v56 = vor.u32 %v4797_v36, %v4793_v16  ;;  %v4806_v41 = vshrl.u32 %v4492_v5, 16  ;;  %v4809_v3 = vshll.u32 %v4492_v5, 16  ;;  %v4784_v10 = vsel %vm7480_vm3, %v4779_v57, %v4783_v27  ;;  %v4496_v27 = vld [vmem:[%s7426_s20 + $0xbc] sm:$0x1] }
 0x1ac   : > { %v6806_v50 = vpop.f32.mrf.mxu1  ;;  %10975 = vst [vmem:[#allocation24_spill] sm:$0xff] %v9859_v51  ;;  %10977 = vst [vmem:[#allocation28_spill] sm:$0xff] %v9865_v22  ;;  %v4794_v1 = vsel %vm7480_vm3, %v4789_v17, %v4793_v16  ;;  %v9873_v25 = vadd.f32 %v9766_v18, %v2190_v31  ;;  %v4815_v46 = vshll.u32 %v4493_v60, 16  ;;  %v6395_v32 = vcombine.low %v4774_v12, %v4784_v10  ;;  %v10979_v17 = vld [vmem:[#allocation60_spill] sm:$0xff] }
 0x1ad   : > { %v9861_v9 = vpop.f32.mrf.mxu0  ;;  %v4799_v42 = vrot.slane %v4798_v56, 4  ;;  %v4808_v58 = vrot.slane %v4806_v41, 4  ;;  %v4811_v44 = vrot.slane %v4809_v3, 5  ;;  %v4819_v36 = vshrl.u32 %v4493_v60, 16 }
 0x1ae   : > { %10976 = vst [vmem:[#allocation26_spill] sm:$0xff] %v9861_v9  ;;  %v3054_v26 = vpop.f32.mrf.mxu1  ;;  %10978 = vst [vmem:[#allocation49_spill] sm:$0xff] %v9873_v25  ;;  %v4817_v5 = vrot.slane %v4815_v46, 5  ;;  %v4825_v9 = vshll.u32 %v4494_v21, 16  ;;  %v4829_v59 = vshrl.u32 %v4494_v21, 16  ;;  %v2601_v16 = vadd.f32 %v9570_v35, %v9589_v23  ;;  %6972 = vmatprep.mubr.msk.bf16.mxu1 %vm666_vm2, %v6395_v32 }
 0x1af   : > { %v9875_v34 = vpop.f32.mrf.mxu0  ;;  %v4804_v18 = vsel %vm7480_vm3, %v4799_v42, %v4803_v33  ;;  %v4812_v12 = vor.u32 %v4811_v44, %v4808_v58  ;;  %v2193_v31 = vadd.f32 %v9812_v0, %v10979_v17  ;;  %v4821_v3 = vrot.slane %v4819_v36, 4  ;;  %v10980_v33 = vld [vmem:[#allocation53_spill] sm:$0xff]  ;;  %v10982_v17 = vld [vmem:[#allocation10_spill] sm:$0xff] }
 0x1b0   : > { %v6807_v38 = vpop.f32.mrf.mxu1  ;;  %v6396_v41 = vcombine.low %v4794_v1, %v4804_v18  ;;  %v4827_v60 = vrot.slane %v4825_v9, 5  ;;  %v4831_v10 = vrot.slane %v4829_v59, 4  ;;  %v4835_v25 = vshll.u32 %v4495_v29, 16 }
 0x1b1   : > { %v3507_v57 = vpop.f32.mrf.mxu0  ;;  %v4813_v46 = vrot.slane %v4812_v12, 4  ;;  %v4839_v22 = vshrl.u32 %v4495_v29, 16  ;;  %v4845_v51 = vshll.u32 %v4496_v27, 16  ;;  %v4822_v23 = vor.u32 %v4821_v3, %v4817_v5 }
 0x1b2   : > { %v3057_v56 = vpop.f32.mrf.mxu1  ;;  %6973 = vmatmul.mubr.msk.bf16.gmra.mxu1 %vm666_vm2, %v6396_v41  ;;  %v4832_v32 = vor.u32 %v4831_v10, %v4827_v60  ;;  %v2191_v42 = vadd.f32 %v9824_v47, %v10980_v33  ;;  %v9890_v0 = vadd.f32 %v9784_v11, %v2193_v31  ;;  %v4837_v59 = vrot.slane %v4835_v25, 5 }
 0x1b3   : > { %v6847_v21 = vpop.f32.mrf.mxu0  ;;  %v4818_v9 = vsel %vm7480_vm3, %v4813_v46, %v4817_v5  ;;  %v4841_v1 = vrot.slane %v4839_v22, 4  ;;  %v4847_v58 = vrot.slane %v4845_v51, 5  ;;  %v4823_v36 = vrot.slane %v4822_v23, 4  ;;  %v10981_v5 = vld [vmem:[#allocation9_spill] sm:$0xff]  ;;  %v10985_v23 = vld [vmem:[#allocation7_spill] sm:$0xff] }
 0x1b4   : > { %v6810_v35 = vpop.f32.mrf.mxu1  ;;  %v4833_v27 = vrot.slane %v4832_v32, 4  ;;  %v2194_v18 = vadd.f32 %v9838_v14, %v9568_v63  ;;  %v9899_v12 = vadd.f32 %v9795_v53, %v2191_v42  ;;  %v9903_v11 = vadd.f32 %v9842_v54, %v9831_v20  ;;  %v10983_v53 = vld [vmem:[#allocation8_spill] sm:$0xff] }
 0x1b5   : > { %v9894_v29 = vpop.f32.mrf.mxu0  ;;  %v4842_v47 = vor.u32 %v4841_v1, %v4837_v59  ;;  %v3183_v25 = vadd.f32 %v6806_v50, %v9577_v2  ;;  %v3181_v51 = vadd.f32 %v3054_v26, %v9585_v30  ;;  %v2605_v31 = vadd.f32 %v10982_v17, %v10981_v5  ;;  %v10987_v17 = vld [vmem:[#allocation16_spill] sm:$0xff] }
 0x1b6   : > { %v3070_v44 = vpop.f32.mrf.mxu1  ;;  %v4828_v41 = vsel %vm7480_vm3, %v4823_v36, %v4827_v60  ;;  %v9912_v63 = vadd.f32 %v9806_v52, %v2194_v18  ;;  %v3184_v14 = vadd.f32 %v6807_v38, %v10983_v53  ;;  %v4838_v20 = vsel %vm7480_vm3, %v4833_v27, %v4837_v59  ;;  %v10984_v60 = vld [vmem:[#allocation5_spill] sm:$0xff] }
 0x1b7   : > { %v6397_v3 = vcombine.low %v4818_v9, %v4828_v41  ;;  %v4843_v54 = vrot.slane %v4842_v47, 4  ;;  %v9918_v2 = vadd.f32 %v9827_v13, %v3183_v25  ;;  %v9921_v26 = vadd.f32 %v9840_v4, %v3181_v51 }
 0x1b8   : > { %v6811_v22 = vpop.f32.mrf.mxu1  ;;  %v6850_v50 = vpop.f32.mrf.mxu0  ;;  %v9923_v10 = vadd.f32 %v3057_v56, %v2601_v16  ;;  %v9926_v52 = vadd.f32 %v9851_v43, %v3184_v14  ;;  %v3187_v38 = vadd.f32 %v6810_v35, %v10984_v60  ;;  %v3185_v13 = vadd.f32 %v3070_v44, %v10985_v23  ;;  %v10986_v44 = vld [vmem:[#allocation13_spill] sm:$0xff] }
 0x1b9   : > { %6976 = vmatprep.mubr.msk.bf16.mxu1 %vm666_vm2, %v6397_v3  ;;  %v4848_v46 = vsel %vm7480_vm3, %v4843_v54, %v4847_v58  ;;  %v3188_v32 = vadd.f32 %v6811_v22, %v9628_v37  ;;  %v2609_v36 = vadd.f32 %v10986_v44, %v9660_v61  ;;  %vm5923_vm12 = vcmask 1046534  }
 0x1ba   : > { %v3073_v30 = vpop.f32.mrf.mxu1  ;;  %v3523_v42 = vpop.f32.mrf.mxu0  ;;  %v6398_v16 = vcombine.low %v4838_v20, %v4848_v46  ;;  %v9937_v56 = vadd.f32 %v9875_v34, %v3187_v38  ;;  %v9940_v35 = vadd.f32 %v3507_v57, %v3185_v13  ;;  %v10989_v13 = vld [vmem:[#allocation22_spill] sm:$0xff] }
 0x1bb   : > { %v9934_v33 = vadd.f32 %v3073_v30, %v2605_v31  ;;  %v9942_v9 = vadd.f32 %v6847_v21, %v3188_v32  ;;  %v10988_v31 = vld [vmem:[#allocation12_spill] sm:$0xff]  ;;  %v10990_v32 = vld [vmem:[#allocation14_spill] sm:$0xff] }
 0x1bc   : > { %v6814_v4 = vpop.f32.mrf.mxu1  ;;  %v6851_v59 = vpop.f32.mrf.mxu0  ;;  %6977 = vmatmul.mubr.msk.bf16.gmra.mxu1 %vm666_vm2, %v6398_v16  ;;  %v2613_v41 = vadd.f32 %v10988_v31, %v10987_v17  ;;  %vm5254_vm2 = vcmask 130048  }
 0x1bd   : > { %v3191_v43 = vadd.f32 %v6814_v4, %v9645_v39  ;;  %v2617_v4 = vadd.f32 %v10990_v32, %v10989_v13 }
 0x1be   : > { %v3086_v15 = vpop.f32.mrf.mxu1  ;;  %v9953_v39 = vpop.f32.mrf.mxu0 }
 0x1bf   : > { %v3189_v37 = vadd.f32 %v3086_v15, %v9655_v7  ;;  %v9946_v1 = vadd.f32 %v6850_v50, %v3191_v43 }
 0x1c0   : > { %v6815_v58 = vpop.f32.mrf.mxu1 }
 0x1c1   : > { %v3192_v34 = vadd.f32 %v6815_v58, %v9668_v45  ;;  %v9951_v27 = vadd.f32 %v3523_v42, %v3189_v37 }
 0x1c2   : > { %v3089_v57 = vpop.f32.mrf.mxu1 }
 0x1c3   : > { %v9955_v21 = vadd.f32 %v3089_v57, %v2609_v36  ;;  %v9957_v18 = vadd.f32 %v6851_v59, %v3192_v34  ;;  %v6854_v25 = vpop.f32.mrf.mxu0 }
 0x1c4   : > { %v6818_v47 = vpop.f32.mrf.mxu1 }
 0x1c5   : > { %v3195_v7 = vadd.f32 %v6818_v47, %v9689_v62  ;;  %v3539_v61 = vpop.f32.mrf.mxu0 }
 0x1c6   : > { %v3102_v51 = vpop.f32.mrf.mxu1 }
 0x1c7   : > { %v3193_v22 = vadd.f32 %v3102_v51, %v9699_v55  ;;  %v9961_v5 = vadd.f32 %v6854_v25, %v3195_v7  ;;  %v6855_v3 = vpop.f32.mrf.mxu0  ;;  %v10991_v25 = vld [vmem:[#allocation27_spill] sm:$0xff]  ;;  %v10992_v51 = vld [vmem:[#allocation20_spill] sm:$0xff] }
 0x1c8   : > { %v6819_v45 = vpop.f32.mrf.mxu1 }
 0x1c9   : > { %v3196_v53 = vadd.f32 %v6819_v45, %v9712_v40  ;;  %v9966_v14 = vadd.f32 %v3539_v61, %v3193_v22  ;;  %v9972_v30 = vpop.f32.mrf.mxu0  ;;  %v2621_v22 = vadd.f32 %v10992_v51, %v10991_v25 }
 0x1ca   : > { %v3105_v20 = vpop.f32.mrf.mxu1 }
 0x1cb   : > { %v9968_v54 = vadd.f32 %v3105_v20, %v2613_v41  ;;  %v9970_v62 = vadd.f32 %v6855_v3, %v3196_v53  ;;  %v7330_v3 = vmov 0  }
 0x1cc   : > { %v6822_v55 = vpop.f32.mrf.mxu1  ;;  %5335 = vmatprep.mubr.bf16.mxu0 %v7330_v3 }
 0x1cd   : > { %v3199_v50 = vadd.f32 %v6822_v55, %v9741_v49 }
 0x1ce   : > { %v3118_v60 = vpop.f32.mrf.mxu1  ;;  %v6858_v46 = vpop.f32.mrf.mxu0 }
 0x1cf   : > { %v3197_v38 = vadd.f32 %v3118_v60, %v9751_v48  ;;  %v9976_v23 = vadd.f32 %v6858_v46, %v3199_v50 }
 0x1d0   : > { %v6823_v40 = vpop.f32.mrf.mxu1  ;;  %v3555_v16 = vpop.f32.mrf.mxu0 }
 0x1d1   : > { %v3200_v42 = vadd.f32 %v6823_v40, %v9764_v6  ;;  %v9981_v43 = vadd.f32 %v3555_v16, %v3197_v38 }
 0x1d2   : > { %v3121_v15 = vpop.f32.mrf.mxu1  ;;  %v6859_v37 = vpop.f32.mrf.mxu0 }
 0x1d3   : > { %v3198_v59 = vadd.f32 %v3121_v15, %v2617_v4  ;;  %v9983_v58 = vadd.f32 %v6859_v37, %v3200_v42  ;;  %v10994_v4 = vld [vmem:[#allocation28_spill] sm:$0xff]  ;;  %v10995_v42 = vld [vmem:[#allocation25_spill] sm:$0xff] }
 0x1d4   : > { %v3558_v49 = vpop.f32.mrf.mxu0  ;;  %v2625_v16 = vadd.f32 %v10995_v42, %v10994_v4  ;;  %v10996_v15 = vld [vmem:[#allocation49_spill] sm:$0xff] }
 0x1d5   : > { %v9985_v44 = vadd.f32 %v3558_v49, %v3198_v59 }
 0x1d6   : > { %v6826_v48 = vpop.f32.mrf.mxu1 }
 0x1d7   : > { %v3203_v36 = vadd.f32 %v6826_v48, %v9792_v8 }
 0x1d8   : > { %v3134_v34 = vpop.f32.mrf.mxu1 }
 0x1d9   : > { %v3201_v57 = vadd.f32 %v3134_v34, %v9804_v19  ;;  %v6862_v47 = vpop.f32.mrf.mxu0 }
 0x1da   : > { %v9989_v7 = vadd.f32 %v6862_v47, %v3203_v36  ;;  %v6827_v6 = vpop.f32.mrf.mxu1 }
 0x1db   : > { %v3204_v61 = vadd.f32 %v6827_v6, %v9819_v28  ;;  %v3571_v45 = vpop.f32.mrf.mxu0  ;;  %v10993_v28 = vld [vmem:[#allocation24_spill] sm:$0xff] }
 0x1dc   : > { %v9994_v17 = vadd.f32 %v3571_v45, %v3201_v57  ;;  %v3137_v31 = vpop.f32.mrf.mxu1 }
 0x1dd   : > { %v3202_v41 = vadd.f32 %v3137_v31, %v2621_v22  ;;  %v6863_v53 = vpop.f32.mrf.mxu0  ;;  %v10997_v31 = vld [vmem:[#allocation29_spill] sm:$0xff] }
 0x1de   : > { %v9997_v8 = vadd.f32 %v6863_v53, %v3204_v61 }
 0x1df   : > { %v3574_v19 = vpop.f32.mrf.mxu0 }
 0x1e0   : > { %v9999_v20 = vadd.f32 %v3574_v19, %v3202_v41  ;;  %v2629_v41 = vadd.f32 %v10997_v31, %v9903_v11 }
 0x1e1   : > { %v6830_v55 = vpop.f32.mrf.mxu1 }
 0x1e2   : > { %v3207_v50 = vadd.f32 %v6830_v55, %v9848_v24  ;;  %v6866_v60 = vpop.f32.mrf.mxu0 }
 0x1e3   : > { %v3150_v38 = vpop.f32.mrf.mxu1 }
 0x1e4   : > { %v3205_v46 = vadd.f32 %v3150_v38, %v10993_v28  ;;  %v10003_v40 = vadd.f32 %v6866_v60, %v3207_v50  ;;  %v3587_v13 = vpop.f32.mrf.mxu0 }
 0x1e5   : > { %v6831_v32 = vpop.f32.mrf.mxu1 }
 0x1e6   : > { %v3208_v59 = vadd.f32 %v6831_v32, %v10996_v15  ;;  %v10008_v37 = vadd.f32 %v3587_v13, %v3205_v46  ;;  %v6867_v49 = vpop.f32.mrf.mxu0 }
 0x1e7   : > { %v3153_v48 = vpop.f32.mrf.mxu1 }
 0x1e8   : > { %v3206_v36 = vadd.f32 %v3153_v48, %v2625_v16  ;;  %v10010_v34 = vadd.f32 %v6867_v49, %v3208_v59  ;;  %v3590_v24 = vpop.f32.mrf.mxu0  ;;  %v3623_v48 = vadd.f32 %v9894_v29, %v9934_v33  ;;  %v3627_v29 = vadd.f32 %v9953_v39, %v9955_v21 }
 0x1e9   : > { %v3631_v39 = vadd.f32 %v9972_v30, %v9968_v54 }
 0x1ea   : > { %v10012_v57 = vadd.f32 %v3590_v24, %v3206_v36 }
 0x1eb   : > { %v6834_v47 = vpop.f32.mrf.mxu1 }
 0x1ec   : > { %v3211_v6 = vadd.f32 %v6834_v47, %v9890_v0 }
 0x1ed   : > { %v3166_v25 = vpop.f32.mrf.mxu1 }
 0x1ee   : > { %v3209_v51 = vadd.f32 %v3166_v25, %v9899_v12  ;;  %v6870_v22 = vpop.f32.mrf.mxu0 }
 0x1ef   : > { %v10016_v61 = vadd.f32 %v6870_v22, %v3211_v6  ;;  %v6835_v45 = vpop.f32.mrf.mxu1 }
 0x1f0   : > { %v3212_v53 = vadd.f32 %v6835_v45, %v9912_v63  ;;  %v3603_v19 = vpop.f32.mrf.mxu0 }
 0x1f1   : > { %v10021_v55 = vadd.f32 %v3603_v19, %v3209_v51  ;;  %v3169_v50 = vpop.f32.mrf.mxu1 }
 0x1f2   : > { %v3210_v60 = vadd.f32 %v3169_v50, %v2629_v41  ;;  %v6871_v38 = vpop.f32.mrf.mxu0 }
 0x1f3   : > { %v10023_v28 = vadd.f32 %v6871_v38, %v3212_v53 }
 0x1f4   : > { %v3606_v0 = vpop.f32.mrf.mxu0  ;;  %v6878_v12 = vpop.f32.mrf.mxu1 }
 0x1f5   : > { %v10025_v46 = vadd.f32 %v3606_v0, %v3210_v60  ;;  %v10028_v13 = vadd.f32 %v6878_v12, %v9918_v2 }
 0x1f6   : > { %v4008_v32 = vpop.f32.mrf.mxu1  ;;  %v10049_v36 = vpop.f32.mrf.mxu0 }
 0x1f7   : > { %v10031_v11 = vadd.f32 %v4008_v32, %v9921_v26 }
 0x1f8   : > { %v6879_v63 = vpop.f32.mrf.mxu1  ;;  %v10056_v6 = vpop.f32.mrf.mxu0 }
 0x1f9   : > { %v10034_v4 = vadd.f32 %v6879_v63, %v9926_v52 }
 0x1fa   : > { %v10036_v42 = vpop.f32.mrf.mxu1 }
 0x1fc   : > { %v6882_v16 = vpop.f32.mrf.mxu1 }
 0x1fd   : > { %v10039_v15 = vadd.f32 %v6882_v16, %v9937_v56 }
 0x1fe   : > { %v4024_v59 = vpop.f32.mrf.mxu1 }
 0x1ff   : > { %v10042_v49 = vadd.f32 %v4024_v59, %v9940_v35 }
 0x200   : > { %v6883_v2 = vpop.f32.mrf.mxu1 }
 0x201   : > { %v10047_v26 = vadd.f32 %v6883_v2, %v9942_v9  ;;  %v10066_v9 = vpop.f32.mrf.mxu0 }
 0x202   : > { %v4027_v52 = vpop.f32.mrf.mxu1 }
 0x203   : > { %v10051_v24 = vadd.f32 %v4027_v52, %v3623_v48  ;;  %v10070_v31 = vpop.f32.mrf.mxu0 }
 0x204   : > { %v6886_v47 = vpop.f32.mrf.mxu1 }
 0x205   : > { %v10054_v56 = vadd.f32 %v6886_v47, %v9946_v1  ;;  %v10080_v21 = vpop.f32.mrf.mxu0 }
 0x206   : > { %v4040_v35 = vpop.f32.mrf.mxu1 }
 0x207   : > { %v10059_v25 = vadd.f32 %v4040_v35, %v9951_v27  ;;  %v10087_v0 = vpop.f32.mrf.mxu0 }
 0x208   : > { %v6887_v51 = vpop.f32.mrf.mxu1 }
 0x209   : > { %v10064_v33 = vadd.f32 %v6887_v51, %v9957_v18  ;;  %v10095_v54 = vpop.f32.mrf.mxu0 }
 0x20a   : > { %v4043_v22 = vpop.f32.mrf.mxu1 }
 0x20b   : > { %v10068_v45 = vadd.f32 %v4043_v22, %v3627_v29  ;;  %v10103_v59 = vpop.f32.mrf.mxu0 }
 0x20d   : > { %v6890_v1 = vpop.f32.mrf.mxu1  ;;  %v10111_v52 = vpop.f32.mrf.mxu0 }
 0x20e   : > { %v10073_v41 = vadd.f32 %v6890_v1, %v9961_v5 }
 0x20f   : > { %v4056_v27 = vpop.f32.mrf.mxu1  ;;  %v10119_v51 = vpop.f32.mrf.mxu0 }
 0x210   : > { %v10076_v53 = vadd.f32 %v4056_v27, %v9966_v14 }
 0x211   : > { %v6891_v19 = vpop.f32.mrf.mxu1  ;;  %v10127_v1 = vpop.f32.mrf.mxu0 }
 0x212   : > { %v10083_v18 = vadd.f32 %v6891_v19, %v9970_v62 }
 0x213   : > { %v4059_v50 = vpop.f32.mrf.mxu1 }
 0x214   : > { %v10085_v60 = vadd.f32 %v4059_v50, %v3631_v39  ;;  %v10135_v39 = vpop.f32.mrf.mxu0 }
 0x215   : > { %v6894_v38 = vpop.f32.mrf.mxu1 }
 0x216   : > { %v10090_v5 = vadd.f32 %v6894_v38, %v9976_v23 }
 0x217   : > { %v4072_v14 = vpop.f32.mrf.mxu1 }
 0x218   : > { %v10093_v12 = vadd.f32 %v4072_v14, %v9981_v43  ;;  %v10143_v14 = vpop.f32.mrf.mxu0 }
 0x219   : > { %v6895_v32 = vpop.f32.mrf.mxu1 }
 0x21a   : > { %v10098_v30 = vadd.f32 %v6895_v32, %v9983_v58 }
 0x21b   : > { %v4075_v62 = vpop.f32.mrf.mxu1 }
 0x21c   : > { %v10101_v63 = vadd.f32 %v4075_v62, %v9985_v44 }
 0x21d   : > { %v6898_v16 = vpop.f32.mrf.mxu1 }
 0x21e   : > { %v10106_v23 = vadd.f32 %v6898_v16, %v9989_v7  ;;  %v4427_v16 = vadd.f32 %v10049_v36, %v10028_v13  ;;  %v4428_v13 = vadd.f32 %v10066_v9, %v10034_v4  ;;  %v4431_v9 = vadd.f32 %v10080_v21, %v10039_v15 }
 0x21f   : > { %v4088_v2 = vpop.f32.mrf.mxu1  ;;  %v4430_v15 = vadd.f32 %v10103_v59, %v10051_v24 }
 0x220   : > { %v10109_v43 = vadd.f32 %v4088_v2, %v9994_v17 }
 0x221   : > { %v6899_v48 = vpop.f32.mrf.mxu1 }
 0x222   : > { %v10114_v58 = vadd.f32 %v6899_v48, %v9997_v8 }
 0x223   : > { %v4091_v47 = vpop.f32.mrf.mxu1 }
 0x224   : > { %v10117_v44 = vadd.f32 %v4091_v47, %v9999_v20  ;;  %v10158_v47 = vpop.f32.mrf.mxu0 }
 0x225   : > { %v6902_v35 = vpop.f32.mrf.mxu1 }
 0x226   : > { %v10122_v7 = vadd.f32 %v6902_v35, %v10003_v40  ;;  %v10163_v35 = vld [vmem:[%s10557_s2] ss:$0 sm:$0xff] }
 0x227   : > { %v4104_v29 = vpop.f32.mrf.mxu1 }
 0x228   : > { %v10125_v17 = vadd.f32 %v4104_v29, %v10008_v37 }
 0x229   : > { %v6903_v22 = vpop.f32.mrf.mxu1 }
 0x22a   : > { %v10130_v8 = vadd.f32 %v6903_v22, %v10010_v34 }
 0x22b   : > { %v4107_v27 = vpop.f32.mrf.mxu1 }
 0x22c   : > { %v10133_v20 = vadd.f32 %v4107_v27, %v10012_v57  ;;  %v10998_v57 = vld [vmem:[#allocation26_spill] sm:$0xff] }
 0x22d   : > { %v6906_v19 = vpop.f32.mrf.mxu1  ;;  %v3619_v62 = vadd.f32 %v10998_v57, %v9923_v10 }
 0x22e   : > { %v10138_v40 = vadd.f32 %v6906_v19, %v10016_v61 }
 0x22f   : > { %v4120_v50 = vpop.f32.mrf.mxu1  ;;  %v4136_v48 = vadd.f32 %v10036_v42, %v3619_v62 }
 0x230   : > { %v10141_v37 = vadd.f32 %v4120_v50, %v10021_v55  ;;  %v4425_v55 = vadd.f32 %v10056_v6, %v10031_v11  ;;  %v10169_v6 = vpop.f32.mrf.mxu0 }
 0x231   : > { %v6907_v38 = vpop.f32.mrf.mxu1  ;;  %v4426_v11 = vadd.f32 %v10070_v31, %v4136_v48 }
 0x232   : > { %v10146_v34 = vadd.f32 %v6907_v38, %v10023_v28  ;;  %v10173_v38 = vpop.f32.mrf.mxu0 }
 0x233   : > { %v4123_v32 = vpop.f32.mrf.mxu1 }
 0x234   : > { %v10153_v61 = vadd.f32 %v4123_v32, %v10025_v46  ;;  %v4429_v32 = vadd.f32 %v10087_v0, %v10042_v49  ;;  %v10180_v62 = vpop.f32.mrf.mxu0 }
 0x235   : > { %v6950_v2 = vpop.f32.mrf.mxu1 }
 0x236   : > { %v5125_v28 = vadd.f32 %v6950_v2, %v4427_v16  ;;  %v4432_v2 = vadd.f32 %v10095_v54, %v10047_v26  ;;  %v4435_v26 = vadd.f32 %v10111_v52, %v10054_v56  ;;  %v4436_v56 = vadd.f32 %v10127_v1, %v10064_v33 }
 0x237   : > { %v4996_v10 = vpop.f32.mrf.mxu1 }
 0x238   : > { %v5123_v46 = vadd.f32 %v4996_v10, %v4425_v55  ;;  %v5164_v36 = vadd.f32 %v10163_v35, %v5125_v28  ;;  %v10187_v10 = vpop.f32.mrf.mxu0 }
 0x239   : > { %v6951_v29 = vpop.f32.mrf.mxu1 }
 0x23a   : > { %v5126_v42 = vadd.f32 %v6951_v29, %v4428_v13  ;;  %v5162_v22 = vadd.f32 %v10163_v35, %v5123_v46  ;;  %7076 = vtanh.f32 %v5164_v36  ;;  %v10194_v29 = vpop.f32.mrf.mxu0 }
 0x23b   : > { %v4999_v27 = vpop.f32.mrf.mxu1 }
 0x23c   : > { %v5165_v19 = vadd.f32 %v10163_v35, %v5126_v42  ;;  %v5124_v50 = vadd.f32 %v4999_v27, %v4426_v11  ;;  %v4433_v11 = vadd.f32 %v10119_v51, %v10059_v25  ;;  %v4434_v25 = vadd.f32 %v10135_v39, %v10068_v45 }
 0x23e   : > { %7078 = vtanh.f32 %v5165_v19  ;;  %v5163_v4 = vadd.f32 %v10163_v35, %v5124_v50 }
 0x23f   : > { %7080 = vtanh.f32 %v5162_v22 }
 0x240   : > { %7082 = vtanh.f32 %v5163_v4  ;;  %v6954_v31 = vpop.f32.mrf.mxu1  ;;  %v10200_v4 = vpop.f32.mrf.mxu0 }
 0x241   : > { %v5129_v57 = vadd.f32 %v6954_v31, %v4431_v9 }
 0x242   : > { %v5012_v16 = vpop.f32.mrf.mxu1  ;;  %v10209_v1 = vpop.f32.mrf.mxu0 }
 0x243   : > { %v5127_v55 = vadd.f32 %v5012_v16, %v4429_v32  ;;  %v5168_v48 = vadd.f32 %v10163_v35, %v5129_v57 }
 0x244   : > { %v6955_v28 = vpop.f32.mrf.mxu1 }
 0x245   : > { %v5130_v21 = vadd.f32 %v6955_v28, %v4432_v2  ;;  %v5166_v13 = vadd.f32 %v10163_v35, %v5127_v55  ;;  %7084 = vtanh.f32 %v5168_v48  ;;  %v4439_v55 = vadd.f32 %v10143_v14, %v10073_v41 }
 0x246   : > { %v5015_v49 = vpop.f32.mrf.mxu1  ;;  %v4437_v28 = vadd.f32 %v10158_v47, %v10076_v53  ;;  %v4438_v53 = vadd.f32 %v10173_v38, %v10085_v60 }
 0x247   : > { %v5169_v0 = vadd.f32 %v10163_v35, %v5130_v21  ;;  %v5128_v46 = vadd.f32 %v5015_v49, %v4430_v15  ;;  %v7077_v36 = vpop.eup %7076 }
 0x249   : > { %7086 = vtanh.f32 %v5169_v0  ;;  %v5167_v54 = vadd.f32 %v10163_v35, %v5128_v46  ;;  %v4440_v46 = vadd.f32 %v10169_v6, %v10083_v18 }
 0x24a   : > { %7088 = vtanh.f32 %v5166_v13  ;;  %v6958_v24 = vpop.f32.mrf.mxu1  ;;  %v4378_v13 = vpop.f32.mrf.mxu0 }
 0x24b   : > { %v7079_v59 = vpop.eup %7078  ;;  %7090 = vtanh.f32 %v5167_v54  ;;  %v5133_v42 = vadd.f32 %v6958_v24, %v4435_v26 }
 0x24c   : > { %v7081_v22 = vpop.eup %7080  ;;  %v5028_v27 = vpop.f32.mrf.mxu1  ;;  %v5227_v19 = vpack.c.bf16 %v7079_v59, %v7077_v36 }
 0x24d   : > { %v7083_v50 = vpop.eup %7082  ;;  %v5131_v52 = vadd.f32 %v5028_v27, %v4433_v11  ;;  %v5172_v31 = vadd.f32 %v10163_v35, %v5133_v42  ;;  %v6935_v59 = vpop.f32.mrf.mxu0 }
 0x24e   : > { %v5226_v9 = vpack.c.bf16 %v7083_v50, %v7081_v22  ;;  %v6959_v32 = vpop.f32.mrf.mxu1  ;;  %v4443_v22 = vadd.f32 %v10180_v62, %v10090_v5  ;;  %v4441_v50 = vadd.f32 %v10187_v10, %v10093_v12  ;;  %v4444_v5 = vadd.f32 %v10194_v29, %v10098_v30 }
 0x24f   : > { %v5134_v51 = vadd.f32 %v6959_v32, %v4436_v56  ;;  %v5170_v57 = vadd.f32 %v10163_v35, %v5131_v52  ;;  %7092 = vtanh.f32 %v5172_v31 }
 0x250   : > { %v5031_v16 = vpop.f32.mrf.mxu1  ;;  %6420 = vmatmul.mubr.msk.bf16.vlgmr.msra.gmra.mxu0 %vm5254_vm2, %v5226_v9 }
 0x251   : > { %v5173_v2 = vadd.f32 %v10163_v35, %v5134_v51  ;;  %v5132_v33 = vadd.f32 %v5031_v16, %v4434_v25  ;;  %5345 = vmatprep.mubr.bf16.mxu0 %v7330_v3 }
 0x252   : > { %v7085_v48 = vpop.eup %7084 }
 0x253   : > { %7094 = vtanh.f32 %v5173_v2  ;;  %v5171_v45 = vadd.f32 %v10163_v35, %v5132_v33 }
 0x254   : > { %7096 = vtanh.f32 %v5170_v57  ;;  %v6962_v39 = vpop.f32.mrf.mxu1  ;;  %v4442_v57 = vadd.f32 %v10200_v4, %v10101_v63  ;;  %v4445_v4 = vadd.f32 %v4378_v13, %v10109_v43 }
 0x255   : > { %7098 = vtanh.f32 %v5171_v45  ;;  %v5137_v15 = vadd.f32 %v6962_v39, %v4439_v55  ;;  %v4447_v39 = vadd.f32 %v10209_v1, %v10106_v23  ;;  %v4448_v1 = vadd.f32 %v6935_v59, %v10114_v58 }
 0x256   : > { %v7087_v21 = vpop.eup %7086  ;;  %v5044_v49 = vpop.f32.mrf.mxu1 }
 0x257   : > { %v7089_v0 = vpop.eup %7088  ;;  %v5135_v26 = vadd.f32 %v5044_v49, %v4437_v28  ;;  %v5229_v41 = vpack.c.bf16 %v7087_v21, %v7085_v48  ;;  %v5176_v54 = vadd.f32 %v10163_v35, %v5137_v15 }
 0x258   : > { %v7091_v14 = vpop.eup %7090  ;;  %v6963_v36 = vpop.f32.mrf.mxu1  ;;  %6421 = vmatmul.mubr.msk.bf16.gmra.mxu0 %vm5254_vm2, %v5227_v19 }
 0x259   : > { %v5138_v47 = vadd.f32 %v6963_v36, %v4440_v46  ;;  %5355 = vmatprep.mubr.bf16.mxu0 %v7330_v3  ;;  %v5228_v24 = vpack.c.bf16 %v7091_v14, %v7089_v0  ;;  %v5174_v11 = vadd.f32 %v10163_v35, %v5135_v26  ;;  %7100 = vtanh.f32 %v5176_v54  ;;  %v4381_v19 = vpop.f32.mrf.mxu0 }
 0x25a   : > { %v5047_v42 = vpop.f32.mrf.mxu1  ;;  %v4446_v14 = vadd.f32 %v4381_v19, %v10117_v44 }
 0x25b   : > { %v5177_v18 = vadd.f32 %v10163_v35, %v5138_v47  ;;  %v5136_v6 = vadd.f32 %v5047_v42, %v4438_v53  ;;  %v6938_v51 = vpop.f32.mrf.mxu0 }
 0x25c   : > { %v10228_v38 = vpop.eup %7092 }
 0x25d   : > { %7102 = vtanh.f32 %v5177_v18  ;;  %v5175_v27 = vadd.f32 %v10163_v35, %v5136_v6  ;;  %v4394_v45 = vpop.f32.mrf.mxu0 }
 0x25e   : > { %7104 = vtanh.f32 %v5174_v11  ;;  %v6966_v60 = vpop.f32.mrf.mxu1  ;;  %v4451_v11 = vadd.f32 %v6938_v51, %v10122_v7 }
 0x25f   : > { %7106 = vtanh.f32 %v5175_v27  ;;  %v5141_v56 = vadd.f32 %v6966_v60, %v4443_v22  ;;  %v6939_v49 = vpop.f32.mrf.mxu0  ;;  %v4449_v22 = vadd.f32 %v4394_v45, %v10125_v17 }
 0x260   : > { %v10232_v52 = vpop.eup %7094  ;;  %v5060_v9 = vpop.f32.mrf.mxu1  ;;  %6422 = vmatmul.mubr.msk.bf16.gmra.mxu0 %vm5254_vm2, %v5228_v24  ;;  %v4452_v7 = vadd.f32 %v6939_v49, %v10130_v8 }
 0x261   : > { %v7097_v31 = vpop.eup %7096  ;;  %v5139_v62 = vadd.f32 %v5060_v9, %v4441_v50  ;;  %5365 = vmatprep.mubr.bf16.mxu0 %v7330_v3  ;;  %v5231_v32 = vpack.c.bf16 %v10232_v52, %v10228_v38  ;;  %v5180_v12 = vadd.f32 %v10163_v35, %v5141_v56  ;;  %v4397_v53 = vpop.f32.mrf.mxu0 }
 0x262   : > { %v7099_v25 = vpop.eup %7098  ;;  %v6967_v10 = vpop.f32.mrf.mxu1  ;;  %v4450_v51 = vadd.f32 %v4397_v53, %v10133_v20 }
 0x263   : > { %v5142_v16 = vadd.f32 %v6967_v10, %v4444_v5  ;;  %v5230_v2 = vpack.c.bf16 %v7099_v25, %v7097_v31  ;;  %v5178_v33 = vadd.f32 %v10163_v35, %v5139_v62  ;;  %7108 = vtanh.f32 %v5180_v12  ;;  %v6942_v44 = vpop.f32.mrf.mxu0 }
 0x264   : > { %v5063_v55 = vpop.f32.mrf.mxu1 }
 0x265   : > { %v5181_v30 = vadd.f32 %v10163_v35, %v5142_v16  ;;  %v5140_v29 = vadd.f32 %v5063_v55, %v4442_v57  ;;  %v4410_v5 = vpop.f32.mrf.mxu0 }
 0x266   : > { %v10249_v63 = vpop.eup %7100 }
 0x267   : > { %7110 = vtanh.f32 %v5181_v30  ;;  %v5179_v48 = vadd.f32 %v10163_v35, %v5140_v29  ;;  %v4453_v29 = vadd.f32 %v4410_v5, %v10141_v37 }
 0x268   : > { %7112 = vtanh.f32 %v5178_v33  ;;  %v6970_v28 = vpop.f32.mrf.mxu1  ;;  %6423 = vmatmul.mubr.msk.bf16.gmra.mxu0 %vm5254_vm2, %v5229_v41  ;;  %v4455_v33 = vadd.f32 %v6942_v44, %v10138_v40 }
 0x269   : > { %7114 = vtanh.f32 %v5179_v48  ;;  %v5145_v15 = vadd.f32 %v6970_v28, %v4447_v39  ;;  %5375 = vmatprep.mubr.bf16.mxu0 %v7330_v3 }
 0x26a   : > { %v10253_v21 = vpop.eup %7102  ;;  %v5076_v0 = vpop.f32.mrf.mxu1 }
 0x26b   : > { %v10255_v23 = vpop.eup %7104  ;;  %v5143_v46 = vadd.f32 %v5076_v0, %v4445_v4  ;;  %v5233_v26 = vpack.c.bf16 %v10253_v21, %v10249_v63  ;;  %v5184_v43 = vadd.f32 %v10163_v35, %v5145_v15  ;;  %v5496_v63 = vlaneseq }
 0x26c   : > { %v10260_v41 = vpop.eup %7106  ;;  %v6971_v13 = vpop.f32.mrf.mxu1 }
 0x26d   : > { %v5146_v54 = vadd.f32 %v6971_v13, %v4448_v1  ;;  %v5232_v36 = vpack.c.bf16 %v10260_v41, %v10255_v23  ;;  %v5182_v47 = vadd.f32 %v10163_v35, %v5143_v46  ;;  %7116 = vtanh.f32 %v5184_v43 }
 0x26e   : > { %v5079_v24 = vpop.f32.mrf.mxu1  ;;  %v5497_v21 = vshrl.u32 %v5496_v63, 7 }
 0x26f   : > { %v5185_v58 = vadd.f32 %v10163_v35, %v5146_v54  ;;  %v5144_v59 = vadd.f32 %v5079_v24, %v4446_v14 }
 0x270   : > { %6424 = vmatmul.mubr.msk.bf16.gmra.mxu0 %vm5254_vm2, %v5230_v2  ;;  %v10272_v6 = vpop.eup %7108  ;;  %v6943_v2 = vpop.f32.mrf.mxu0  ;;  %v10325_v44 = vadd.s32 16, %v5497_v21 }
 0x271   : > { %7118 = vtanh.f32 %v5185_v58  ;;  %v5183_v42 = vadd.f32 %v10163_v35, %v5144_v59  ;;  %5385 = vmatprep.mubr.bf16.mxu0 %v7330_v3  ;;  %v4456_v48 = vadd.f32 %v6943_v2, %v10146_v34 }
 0x272   : > { %7120 = vtanh.f32 %v5182_v47  ;;  %v6974_v18 = vpop.f32.mrf.mxu1  ;;  %vm5503_vm3 = vcmp.lt.s32.totalorder %v10325_v44, 17 }
 0x273   : > { %7122 = vtanh.f32 %v5183_v42  ;;  %v5149_v27 = vadd.f32 %v6974_v18, %v4451_v11 }
 0x274   : > { %v10275_v19 = vpop.eup %7110  ;;  %v5092_v60 = vpop.f32.mrf.mxu1 }
 0x275   : > { %v7113_v50 = vpop.eup %7112  ;;  %v5147_v56 = vadd.f32 %v5092_v60, %v4449_v22  ;;  %v5235_v9 = vpack.c.bf16 %v10275_v19, %v10272_v6  ;;  %v5188_v62 = vadd.f32 %v10163_v35, %v5149_v27 }
 0x276   : > { %v7115_v31 = vpop.eup %7114  ;;  %v6975_v25 = vpop.f32.mrf.mxu1 }
 0x277   : > { %v5150_v17 = vadd.f32 %v6975_v25, %v4452_v7  ;;  %v5234_v12 = vpack.c.bf16 %v7115_v31, %v7113_v50  ;;  %v5186_v10 = vadd.f32 %v10163_v35, %v5147_v56  ;;  %7124 = vtanh.f32 %v5188_v62 }
 0x278   : > { %v5095_v57 = vpop.f32.mrf.mxu1  ;;  %6425 = vmatmul.mubr.msk.bf16.gmra.mxu0 %vm5254_vm2, %v5231_v32  ;;  %v4413_v32 = vpop.f32.mrf.mxu0 }
 0x279   : > { %v5189_v8 = vadd.f32 %v10163_v35, %v5150_v17  ;;  %v5148_v16 = vadd.f32 %v5095_v57, %v4450_v51  ;;  %5395 = vmatprep.mubr.bf16.mxu0 %v7330_v3  ;;  %v4454_v0 = vadd.f32 %v4413_v32, %v10153_v61 }
 0x27a   : > { %v7117_v30 = vpop.eup %7116 }
 0x27b   : > { %7126 = vtanh.f32 %v5189_v8  ;;  %v5187_v20 = vadd.f32 %v10163_v35, %v5148_v16 }
 0x27c   : > { %7128 = vtanh.f32 %v5186_v10  ;;  %v6978_v55 = vpop.f32.mrf.mxu1 }
 0x27d   : > { %7130 = vtanh.f32 %v5187_v20  ;;  %v5153_v38 = vadd.f32 %v6978_v55, %v4455_v33 }
 0x27e   : > { %v7119_v52 = vpop.eup %7118  ;;  %v5108_v45 = vpop.f32.mrf.mxu1 }
 0x27f   : > { %v7121_v39 = vpop.eup %7120  ;;  %v5151_v28 = vadd.f32 %v5108_v45, %v4453_v29  ;;  %v5237_v4 = vpack.c.bf16 %v7119_v52, %v7117_v30  ;;  %v5192_v40 = vadd.f32 %v10163_v35, %v5153_v38 }
 0x280   : > { %v7123_v15 = vpop.eup %7122  ;;  %v6979_v49 = vpop.f32.mrf.mxu1  ;;  %6426 = vmatmul.mubr.msk.bf16.gmra.mxu0 %vm5254_vm2, %v5232_v36 }
 0x281   : > { %v5154_v23 = vadd.f32 %v6979_v49, %v4456_v48  ;;  %5405 = vmatprep.mubr.bf16.mxu0 %v7330_v3  ;;  %v5236_v37 = vpack.c.bf16 %v7123_v15, %v7121_v39  ;;  %v5190_v1 = vadd.f32 %v10163_v35, %v5151_v28  ;;  %7132 = vtanh.f32 %v5192_v40 }
 0x282   : > { %v5111_v46 = vpop.f32.mrf.mxu1 }
 0x283   : > { %v5193_v41 = vadd.f32 %v10163_v35, %v5154_v23  ;;  %v5152_v34 = vadd.f32 %v5111_v46, %v4454_v0 }
 0x284   : > { %v7125_v13 = vpop.eup %7124 }
 0x285   : > { %7134 = vtanh.f32 %v5193_v41  ;;  %v5191_v43 = vadd.f32 %v10163_v35, %v5152_v34 }
 0x286   : > { %7136 = vtanh.f32 %v5190_v1 }
 0x287   : > { %7138 = vtanh.f32 %v5191_v43 }
 0x288   : > { %v7127_v14 = vpop.eup %7126  ;;  %6427 = vmatmul.mubr.msk.bf16.gmra.mxu0 %vm5254_vm2, %v5233_v26 }
 0x289   : > { %v7129_v61 = vpop.eup %7128  ;;  %5415 = vmatprep.mubr.bf16.mxu0 %v7330_v3  ;;  %v5239_v54 = vpack.c.bf16 %v7127_v14, %v7125_v13 }
 0x28a   : > { %v7131_v36 = vpop.eup %7130 }
 0x28b   : > { %v5238_v53 = vpack.c.bf16 %v7131_v36, %v7129_v61 }
 0x28e   : > { %v7133_v47 = vpop.eup %7132 }
 0x290   : > { %6428 = vmatmul.mubr.msk.bf16.gmra.mxu0 %vm5254_vm2, %v5234_v12 }
 0x291   : > { %5425 = vmatprep.mubr.bf16.mxu0 %v7330_v3 }
 0x292   : > { %v7135_v35 = vpop.eup %7134 }
 0x293   : > { %v7137_v24 = vpop.eup %7136  ;;  %v5241_v58 = vpack.c.bf16 %v7135_v35, %v7133_v47 }
 0x294   : > { %v7139_v59 = vpop.eup %7138 }
 0x295   : > { %v5240_v11 = vpack.c.bf16 %v7139_v59, %v7137_v24 }
 0x298   : > { %6429 = vmatmul.mubr.msk.bf16.gmra.mxu0 %vm5254_vm2, %v5235_v9 }
 0x299   : > { %5435 = vmatprep.mubr.bf16.mxu0 %v7330_v3 }
 0x2a0   : > { %6430 = vmatmul.mubr.msk.bf16.gmra.mxu0 %vm5254_vm2, %v5236_v37 }
 0x2a1   : > { %5445 = vmatprep.mubr.bf16.mxu0 %v7330_v3 }
 0x2a8   : > { %6431 = vmatmul.mubr.msk.bf16.gmra.mxu0 %vm5254_vm2, %v5237_v4 }
 0x2a9   : > { %5455 = vmatprep.mubr.bf16.mxu0 %v7330_v3 }
 0x2b0   : > { %6432 = vmatmul.mubr.msk.bf16.gmra.mxu0 %vm5254_vm2, %v5238_v53 }
 0x2b1   : > { %5465 = vmatprep.mubr.bf16.mxu0 %v7330_v3 }
 0x2b8   : > { %6433 = vmatmul.mubr.msk.bf16.gmra.mxu0 %vm5254_vm2, %v5239_v54 }
 0x2b9   : > { %5475 = vmatprep.mubr.bf16.mxu0 %v7330_v3 }
 0x2c0   : > { %6434 = vmatmul.mubr.msk.bf16.gmra.mxu0 %vm5254_vm2, %v5240_v11 }
 0x2c1   : > { %5485 = vmatprep.mubr.bf16.mxu0 %v7330_v3 }
 0x2c8   : > { %6435 = vmatmul.mubr.msk.bf16.gmra.mxu0 %vm5254_vm2, %v5241_v58 }
 0x310   : > { %v5337_v26 = vpop.f32.mrf.mxu0 }
 0x312   : > { %v10323_v42 = vpop.f32.mrf.mxu0 }
 0x314   : > { %v5341_v18 = vpop.f32.mrf.mxu0 }
 0x315   : > { %v5545_v6 = vmax.f32 %v5337_v26, %v5341_v18 }
 0x316   : > { %v10327_v22 = vpop.f32.mrf.mxu0 }
 0x318   : > { %v5347_v27 = vpop.f32.mrf.mxu0 }
 0x319   : > { %v5515_v19 = vsel %vm5503_vm3, %v5347_v27, -1e+30 }
 0x31a   : > { %v5546_v3 = vmax.f32 %v5545_v6, %v5515_v19  ;;  %v10332_v60 = vpop.f32.mrf.mxu0 }
 0x31c   : > { %v5547_v50 = vmax.f32 %v5546_v3, -1e+30  ;;  %v5351_v7 = vpop.f32.mrf.mxu0 }
 0x31e   : > { %v5548_v56 = vrot.slane %v5547_v50, 4  ;;  %v10334_v9 = vpop.f32.mrf.mxu0 }
 0x320   : > { %v5549_v31 = vmax.f32 %v5547_v50, %v5548_v56  ;;  %v5357_v5 = vpop.f32.mrf.mxu0 }
 0x322   : > { %v5550_v62 = vrot.slane %v5549_v31, 2  ;;  %v10336_v25 = vpop.f32.mrf.mxu0 }
 0x324   : > { %v5551_v51 = vmax.f32 %v5549_v31, %v5550_v62  ;;  %v5361_v17 = vpop.f32.mrf.mxu0 }
 0x325   : > { %v5554_v12 = vmax.f32 %v5357_v5, %v5361_v17 }
 0x326   : > { %v5552_v10 = vrot.slane %v5551_v51, 1  ;;  %v10338_v57 = vpop.f32.mrf.mxu0 }
 0x328   : > { %v5553_v8 = vmax.f32 %v5551_v51, %v5552_v10  ;;  %v5367_v16 = vpop.f32.mrf.mxu0 }
 0x329   : > { %v5519_v2 = vsel %vm5503_vm3, %v5367_v16, -1e+30 }
 0x32a   : > { %v5617_v33 = vsub.f32 %v5337_v26, %v5553_v8  ;;  %v5618_v20 = vsub.f32 %v5341_v18, %v5553_v8  ;;  %v5619_v55 = vsub.f32 %v5515_v19, %v5553_v8  ;;  %v5620_v30 = vsub.f32 -1e+30, %v5553_v8  ;;  %v10342_v29 = vpop.f32.mrf.mxu0 }
 0x32b   : > { %v5555_v38 = vmax.f32 %v5554_v12, %v5519_v2 }
 0x32c   : > { %v5649_v52 = vmul.f32 1.442695, %v5617_v33  ;;  %v5651_v32 = vmul.f32 1.442695, %v5618_v20  ;;  %v5653_v45 = vmul.f32 1.442695, %v5619_v55  ;;  %v5371_v39 = vpop.f32.mrf.mxu0 }
 0x32d   : > { %v5655_v48 = vmul.f32 1.442695, %v5620_v30  ;;  %v5556_v28 = vmax.f32 %v5555_v38, -1e+30 }
 0x32e   : > { %7140 = vpow2.f32 %v5649_v52  ;;  %v10344_v4 = vpop.f32.mrf.mxu0 }
 0x32f   : > { %7142 = vpow2.f32 %v5651_v32  ;;  %v5557_v15 = vrot.slane %v5556_v28, 4 }
 0x330   : > { %7144 = vpow2.f32 %v5653_v45  ;;  %v10346_v40 = vpop.f32.mrf.mxu0 }
 0x331   : > { %7146 = vpow2.f32 %v5655_v48  ;;  %v5558_v49 = vmax.f32 %v5556_v28, %v5557_v15 }
 0x332   : > { %v10348_v0 = vpop.f32.mrf.mxu0 }
 0x333   : > { %v5559_v23 = vrot.slane %v5558_v49, 2 }
 0x334   : > { %v10350_v37 = vpop.f32.mrf.mxu0 }
 0x335   : > { %v5560_v1 = vmax.f32 %v5558_v49, %v5559_v23  ;;  %v5563_v46 = vmax.f32 %v10346_v40, %v10350_v37 }
 0x336   : > { %v10354_v41 = vpop.f32.mrf.mxu0 }
 0x337   : > { %v5561_v34 = vrot.slane %v5560_v1, 1 }
 0x338   : > { %v5387_v43 = vpop.f32.mrf.mxu0 }
 0x339   : > { %v5562_v13 = vmax.f32 %v5560_v1, %v5561_v34  ;;  %v10358_v14 = vsel %vm5503_vm3, %v5387_v43, -1e+30 }
 0x33a   : > { %v5564_v61 = vmax.f32 %v5563_v46, %v10358_v14  ;;  %v10361_v54 = vpop.f32.mrf.mxu0 }
 0x33b   : > { %v7141_v36 = vpop.eup %7140  ;;  %v5621_v53 = vsub.f32 %v5357_v5, %v5562_v13  ;;  %v5622_v47 = vsub.f32 %v5361_v17, %v5562_v13  ;;  %v5623_v35 = vsub.f32 %v5519_v2, %v5562_v13  ;;  %v5624_v24 = vsub.f32 -1e+30, %v5562_v13 }
 0x33c   : > { %v7143_v58 = vpop.eup %7142  ;;  %v5785_v59 = vmul.f32 %v7141_v36, %v10323_v42  ;;  %v5565_v11 = vmax.f32 %v5564_v61, -1e+30  ;;  %v5391_v63 = vpop.f32.mrf.mxu0 }
 0x33d   : > { %v7145_v21 = vpop.eup %7144  ;;  %v5713_v26 = vadd.f32 %v7143_v58, %v7141_v36  ;;  %v5786_v18 = vmul.f32 %v7143_v58, %v10327_v22  ;;  %v5657_v6 = vmul.f32 1.442695, %v5621_v53  ;;  %v5659_v27 = vmul.f32 1.442695, %v5622_v47 }
 0x33e   : > { %v7147_v19 = vpop.eup %7146  ;;  %v5787_v3 = vmul.f32 %v7145_v21, %v10332_v60  ;;  %v5661_v50 = vmul.f32 1.442695, %v5623_v35  ;;  %v5663_v7 = vmul.f32 1.442695, %v5624_v24  ;;  %v5566_v56 = vrot.slane %v5565_v11, 4  ;;  %v10366_v31 = vpop.f32.mrf.mxu0 }
 0x33f   : > { %v5714_v5 = vadd.f32 %v7145_v21, %v5713_v26  ;;  %v5817_v62 = vadd.f32 %v5786_v18, %v5785_v59  ;;  %v5788_v42 = vmul.f32 %v7147_v19, %v10334_v9  ;;  %7148 = vpow2.f32 %v5657_v6 }
 0x340   : > { %7150 = vpow2.f32 %v5659_v27  ;;  %v5567_v51 = vmax.f32 %v5565_v11, %v5566_v56  ;;  %v10369_v17 = vpop.f32.mrf.mxu0 }
 0x341   : > { %v5818_v22 = vadd.f32 %v5817_v62, %v5787_v3  ;;  %v5715_v12 = vadd.f32 %v7147_v19, %v5714_v5  ;;  %7152 = vpow2.f32 %v5661_v50 }
 0x342   : > { %7154 = vpow2.f32 %v5663_v7  ;;  %v5568_v10 = vrot.slane %v5567_v51, 2  ;;  %v10371_v60 = vpop.f32.mrf.mxu0 }
 0x343   : > { %v5716_v8 = vrot.slane %v5715_v12, 4  ;;  %v5819_v16 = vadd.f32 %v5818_v22, %v5788_v42 }
 0x344   : > { %v5569_v2 = vmax.f32 %v5567_v51, %v5568_v10  ;;  %v10373_v33 = vpop.f32.mrf.mxu0 }
 0x345   : > { %v5717_v20 = vadd.f32 %v5716_v8, %v5715_v12  ;;  %v5572_v9 = vmax.f32 %v10369_v17, %v10373_v33  ;;  %v5820_v52 = vrot.slane %v5819_v16, 4 }
 0x346   : > { %v5570_v55 = vrot.slane %v5569_v2, 1  ;;  %v10377_v30 = vpop.f32.mrf.mxu0 }
 0x347   : > { %v5718_v38 = vrot.slane %v5717_v20, 2  ;;  %v5821_v34 = vadd.f32 %v5820_v52, %v5819_v16 }
 0x348   : > { %v5571_v32 = vmax.f32 %v5569_v2, %v5570_v55  ;;  %v5407_v45 = vpop.f32.mrf.mxu0 }
 0x349   : > { %v5719_v39 = vadd.f32 %v5718_v38, %v5717_v20  ;;  %v10381_v48 = vsel %vm5503_vm3, %v5407_v45, -1e+30  ;;  %v5822_v26 = vrot.slane %v5821_v34, 2 }
 0x34a   : > { %v5625_v28 = vsub.f32 %v10346_v40, %v5571_v32  ;;  %v5626_v15 = vsub.f32 %v10350_v37, %v5571_v32  ;;  %v5627_v49 = vsub.f32 %v10358_v14, %v5571_v32  ;;  %v5628_v23 = vsub.f32 -1e+30, %v5571_v32  ;;  %v10386_v1 = vpop.f32.mrf.mxu0 }
 0x34b   : > { %v5720_v46 = vrot.slane %v5719_v39, 1  ;;  %v5573_v43 = vmax.f32 %v5572_v9, %v10381_v48  ;;  %v5823_v56 = vadd.f32 %v5822_v26, %v5821_v34 }
 0x34c   : > { %v7149_v13 = vpop.eup %7148  ;;  %v5665_v61 = vmul.f32 1.442695, %v5625_v28  ;;  %v5667_v36 = vmul.f32 1.442695, %v5626_v15  ;;  %v5411_v53 = vpop.f32.mrf.mxu0  ;;  %v5669_v40 = vmul.f32 1.442695, %v5627_v49 }
 0x34d   : > { %v7151_v47 = vpop.eup %7150  ;;  %v5721_v35 = vadd.f32 %v5720_v46, %v5719_v39  ;;  %v5789_v24 = vmul.f32 %v7149_v13, %v10336_v25  ;;  %v5671_v58 = vmul.f32 1.442695, %v5628_v23  ;;  %v5574_v11 = vmax.f32 %v5573_v43, -1e+30 }
 0x34e   : > { %v7153_v37 = vpop.eup %7152  ;;  %v5722_v59 = vadd.f32 %v7151_v47, %v7149_v13  ;;  %v5790_v14 = vmul.f32 %v7151_v47, %v10338_v57  ;;  %7156 = vpow2.f32 %v5665_v61  ;;  %v10391_v63 = vpop.f32.mrf.mxu0 }
 0x34f   : > { %v7155_v21 = vpop.eup %7154  ;;  %7158 = vrcp.f32 %v5721_v35  ;;  %v5791_v18 = vmul.f32 %v7153_v37, %v10342_v29  ;;  %v5575_v3 = vrot.slane %v5574_v11, 4 }
 0x350   : > { %v5723_v6 = vadd.f32 %v7153_v37, %v5722_v59  ;;  %v5826_v27 = vadd.f32 %v5790_v14, %v5789_v24  ;;  %v5792_v19 = vmul.f32 %v7155_v21, %v10344_v4  ;;  %7160 = vpow2.f32 %v5667_v36  ;;  %v10395_v25 = vpop.f32.mrf.mxu0 }
 0x351   : > { %7162 = vpow2.f32 %v5669_v40  ;;  %v5576_v5 = vmax.f32 %v5574_v11, %v5575_v3  ;;  %v5824_v4 = vrot.slane %v5823_v56, 1 }
 0x352   : > { %v5827_v50 = vadd.f32 %v5826_v27, %v5791_v18  ;;  %v5724_v57 = vadd.f32 %v7155_v21, %v5723_v6  ;;  %7164 = vpow2.f32 %v5671_v58  ;;  %v10397_v7 = vpop.f32.mrf.mxu0 }
 0x353   : > { %v5577_v29 = vrot.slane %v5576_v5, 2  ;;  %v5825_v39 = vadd.f32 %v5824_v4, %v5823_v56 }
 0x354   : > { %v5725_v62 = vrot.slane %v5724_v57, 4  ;;  %v5828_v42 = vadd.f32 %v5827_v50, %v5792_v19  ;;  %v10399_v51 = vpop.f32.mrf.mxu0 }
 0x355   : > { %v5578_v10 = vmax.f32 %v5576_v5, %v5577_v29  ;;  %v5581_v2 = vmax.f32 %v10395_v25, %v10399_v51 }
 0x356   : > { %v5726_v22 = vadd.f32 %v5725_v62, %v5724_v57  ;;  %v10401_v12 = vpop.f32.mrf.mxu0  ;;  %v5829_v16 = vrot.slane %v5828_v42, 4 }
 0x357   : > { %v5579_v9 = vrot.slane %v5578_v10, 1 }
 0x358   : > { %v5727_v8 = vrot.slane %v5726_v22, 2  ;;  %v5427_v20 = vpop.f32.mrf.mxu0  ;;  %v5830_v23 = vadd.f32 %v5829_v16, %v5828_v42 }
 0x359   : > { %v10407_v55 = vsel %vm5503_vm3, %v5427_v20, -1e+30  ;;  %v5580_v28 = vmax.f32 %v5578_v10, %v5579_v9 }
 0x35a   : > { %v5728_v38 = vadd.f32 %v5727_v8, %v5726_v22  ;;  %v5582_v52 = vmax.f32 %v5581_v2, %v10407_v55  ;;  %v10410_v32 = vpop.f32.mrf.mxu0  ;;  %v5831_v26 = vrot.slane %v5830_v23, 2 }
 0x35b   : > { %v7157_v45 = vpop.eup %7156  ;;  %v5629_v36 = vsub.f32 %v10369_v17, %v5580_v28  ;;  %v5630_v53 = vsub.f32 %v10373_v33, %v5580_v28  ;;  %v5631_v47 = vsub.f32 %v10381_v48, %v5580_v28  ;;  %v5632_v6 = vsub.f32 -1e+30, %v5580_v28 }
 0x35c   : > { %v7159_v15 = vpop.eup %7158  ;;  %v5729_v49 = vrot.slane %v5728_v38, 1  ;;  %v5793_v46 = vmul.f32 %v7157_v45, %v10348_v0  ;;  %v5583_v34 = vmax.f32 %v5582_v52, -1e+30  ;;  %v5431_v43 = vpop.f32.mrf.mxu0  ;;  %v5832_v57 = vadd.f32 %v5831_v26, %v5830_v23 }
 0x35d   : > { %v7161_v13 = vpop.eup %7160  ;;  %v10413_v61 = vmul.f32 %v7159_v15, %v5825_v39  ;;  %v5673_v14 = vmul.f32 1.442695, %v5629_v36  ;;  %v5675_v11 = vmul.f32 1.442695, %v5630_v53  ;;  %v5677_v21 = vmul.f32 1.442695, %v5631_v47 }
 0x35e   : > { %v7163_v35 = vpop.eup %7162  ;;  %v5730_v24 = vadd.f32 %v5729_v49, %v5728_v38  ;;  %v5731_v40 = vadd.f32 %v7161_v13, %v7157_v45  ;;  %v5794_v58 = vmul.f32 %v7161_v13, %v10354_v41  ;;  %v10419_v37 = vpop.f32.mrf.mxu0  ;;  %v5584_v27 = vrot.slane %v5583_v34, 4 }
 0x35f   : > { %v7165_v59 = vpop.eup %7164  ;;  %v5795_v0 = vmul.f32 %v7163_v35, %v10361_v54  ;;  %v5679_v54 = vmul.f32 1.442695, %v5632_v6  ;;  %v5833_v10 = vrot.slane %v5832_v57, 1 }
 0x360   : > { %7166 = vrcp.f32 %v5730_v24  ;;  %v5732_v17 = vadd.f32 %v7163_v35, %v5731_v40  ;;  %v5835_v18 = vadd.f32 %v5794_v58, %v5793_v46  ;;  %v10422_v33 = vpop.f32.mrf.mxu0  ;;  %v5796_v48 = vmul.f32 %v7165_v59, %v10366_v31 }
 0x361   : > { %7168 = vpow2.f32 %v5673_v14  ;;  %v5585_v50 = vmax.f32 %v5583_v34, %v5584_v27  ;;  %v5834_v15 = vadd.f32 %v5833_v10, %v5832_v57 }
 0x362   : > { %v5836_v41 = vadd.f32 %v5835_v18, %v5795_v0  ;;  %v5733_v19 = vadd.f32 %v7165_v59, %v5732_v17  ;;  %7170 = vpow2.f32 %v5675_v11  ;;  %v10425_v3 = vpop.f32.mrf.mxu0 }
 0x363   : > { %7172 = vpow2.f32 %v5677_v21  ;;  %v5586_v42 = vrot.slane %v5585_v50, 2 }
 0x364   : > { %v5734_v56 = vrot.slane %v5733_v19, 4  ;;  %v5837_v5 = vadd.f32 %v5836_v41, %v5796_v48  ;;  %v10427_v62 = vpop.f32.mrf.mxu0  ;;  %7174 = vpow2.f32 %v5679_v54 }
 0x365   : > { %v5587_v4 = vmax.f32 %v5585_v50, %v5586_v42  ;;  %v5590_v16 = vmax.f32 %v10422_v33, %v10427_v62 }
 0x366   : > { %v5735_v29 = vadd.f32 %v5734_v56, %v5733_v19  ;;  %v5838_v31 = vrot.slane %v5837_v5, 4  ;;  %v10429_v22 = vpop.f32.mrf.mxu0 }
 0x367   : > { %v5588_v20 = vrot.slane %v5587_v4, 1 }
 0x368   : > { %v5736_v8 = vrot.slane %v5735_v29, 2  ;;  %v5447_v2 = vpop.f32.mrf.mxu0  ;;  %v5839_v52 = vadd.f32 %v5838_v31, %v5837_v5 }
 0x369   : > { %v10435_v9 = vsel %vm5503_vm3, %v5447_v2, -1e+30  ;;  %v5589_v28 = vmax.f32 %v5587_v4, %v5588_v20 }
 0x36a   : > { %v5737_v38 = vadd.f32 %v5736_v8, %v5735_v29  ;;  %v5591_v45 = vmax.f32 %v5590_v16, %v10435_v9  ;;  %v10438_v39 = vpop.f32.mrf.mxu0  ;;  %v5840_v40 = vrot.slane %v5839_v52, 2 }
 0x36b   : > { %v5633_v43 = vsub.f32 %v10395_v25, %v5589_v28  ;;  %v5634_v13 = vsub.f32 %v10399_v51, %v5589_v28  ;;  %v5635_v36 = vsub.f32 %v10407_v55, %v5589_v28  ;;  %v5636_v53 = vsub.f32 -1e+30, %v5589_v28 }
 0x36c   : > { %v5738_v49 = vrot.slane %v5737_v38, 1  ;;  %v5592_v23 = vmax.f32 %v5591_v45, -1e+30  ;;  %v5451_v46 = vpop.f32.mrf.mxu0  ;;  %v5841_v54 = vadd.f32 %v5840_v40, %v5839_v52 }
 0x36d   : > { %v7167_v34 = vpop.eup %7166  ;;  %v5681_v11 = vmul.f32 1.442695, %v5633_v43  ;;  %v5683_v21 = vmul.f32 1.442695, %v5634_v13  ;;  %v5685_v26 = vmul.f32 1.442695, %v5635_v36 }
 0x36e   : > { %v7169_v47 = vpop.eup %7168  ;;  %v5898_v35 = vmul.f32 %v7167_v34, %v5834_v15  ;;  %v5739_v24 = vadd.f32 %v5738_v49, %v5737_v38  ;;  %v5593_v58 = vrot.slane %v5592_v23, 4  ;;  %v10443_v59 = vpop.f32.mrf.mxu0  ;;  %v5687_v6 = vmul.f32 1.442695, %v5636_v53 }
 0x36f   : > { %v7171_v0 = vpop.eup %7170  ;;  %v5797_v14 = vmul.f32 %v7169_v47, %v10371_v60  ;;  %v5842_v31 = vrot.slane %v5841_v54, 1 }
 0x370   : > { %v7173_v17 = vpop.eup %7172  ;;  %v5914_v25 = vsel %vm5913_vm8, %v5898_v35, %v10413_v61  ;;  %7176 = vrcp.f32 %v5739_v24  ;;  %v5740_v51 = vadd.f32 %v7171_v0, %v7169_v47  ;;  %v10448_v55 = vpop.f32.mrf.mxu0  ;;  %v5798_v18 = vmul.f32 %v7171_v0, %v10377_v30 }
 0x371   : > { %v5799_v48 = vmul.f32 %v7173_v17, %v10386_v1  ;;  %7178 = vpow2.f32 %v5681_v11  ;;  %v7175_v27 = vpop.eup %7174  ;;  %v5594_v60 = vmax.f32 %v5592_v23, %v5593_v58  ;;  %v5843_v15 = vadd.f32 %v5842_v31, %v5841_v54 }
 0x372   : > { %v5741_v41 = vadd.f32 %v7173_v17, %v5740_v51  ;;  %7180 = vpow2.f32 %v5683_v21  ;;  %v10452_v19 = vpop.f32.mrf.mxu0  ;;  %v5844_v50 = vadd.f32 %v5798_v18, %v5797_v14  ;;  %v5800_v61 = vmul.f32 %v7175_v27, %v10391_v63 }
 0x373   : > { %7182 = vpow2.f32 %v5685_v26  ;;  %v5595_v56 = vrot.slane %v5594_v60, 2 }
 0x374   : > { %v5742_v57 = vadd.f32 %v7175_v27, %v5741_v41  ;;  %7184 = vpow2.f32 %v5687_v6  ;;  %v10455_v5 = vpop.f32.mrf.mxu0  ;;  %v5845_v30 = vadd.f32 %v5844_v50, %v5799_v48 }
 0x375   : > { %v5596_v42 = vmax.f32 %v5594_v60, %v5595_v56  ;;  %v5599_v16 = vmax.f32 %v10448_v55, %v10455_v5 }
 0x376   : > { %v5743_v1 = vrot.slane %v5742_v57, 4  ;;  %v10457_v29 = vpop.f32.mrf.mxu0  ;;  %v5846_v4 = vadd.f32 %v5845_v30, %v5800_v61 }
 0x377   : > { %v5597_v8 = vrot.slane %v5596_v42, 1 }
 0x378   : > { %v5744_v10 = vadd.f32 %v5743_v1, %v5742_v57  ;;  %v5467_v2 = vpop.f32.mrf.mxu0  ;;  %v5847_v63 = vrot.slane %v5846_v4, 4 }
 0x379   : > { %v10463_v20 = vsel %vm5503_vm3, %v5467_v2, -1e+30  ;;  %v5598_v52 = vmax.f32 %v5596_v42, %v5597_v8 }
 0x37a   : > { %v5745_v38 = vrot.slane %v5744_v10, 2  ;;  %v5600_v45 = vmax.f32 %v5599_v16, %v10463_v20  ;;  %v10466_v28 = vpop.f32.mrf.mxu0  ;;  %v5848_v36 = vadd.f32 %v5847_v63, %v5846_v4 }
 0x37b   : > { %v5637_v23 = vsub.f32 %v10422_v33, %v5598_v52  ;;  %v5638_v46 = vsub.f32 %v10427_v62, %v5598_v52  ;;  %v5639_v34 = vsub.f32 %v10435_v9, %v5598_v52  ;;  %v5640_v53 = vsub.f32 -1e+30, %v5598_v52 }
 0x37c   : > { %v5746_v49 = vadd.f32 %v5745_v38, %v5744_v10  ;;  %v5471_v43 = vpop.f32.mrf.mxu0  ;;  %v5601_v47 = vmax.f32 %v5600_v45, -1e+30  ;;  %v5849_v6 = vrot.slane %v5848_v36, 2 }
 0x37d   : > { %v7177_v13 = vpop.eup %7176  ;;  %v5689_v58 = vmul.f32 1.442695, %v5637_v23  ;;  %v5691_v33 = vmul.f32 1.442695, %v5638_v46  ;;  %v5693_v21 = vmul.f32 1.442695, %v5639_v34 }
 0x37e   : > { %v7179_v35 = vpop.eup %7178  ;;  %v5899_v24 = vmul.f32 %v7177_v13, %v5843_v15  ;;  %v5747_v40 = vrot.slane %v5746_v49, 1  ;;  %v10471_v0 = vpop.f32.mrf.mxu0  ;;  %v5695_v27 = vmul.f32 1.442695, %v5640_v53  ;;  %v5602_v41 = vrot.slane %v5601_v47, 4 }
 0x37f   : > { %v7181_v14 = vpop.eup %7180  ;;  %v5801_v11 = vmul.f32 %v7179_v35, %v10397_v7  ;;  %7186 = vpow2.f32 %v5689_v58  ;;  %v5850_v1 = vadd.f32 %v5849_v6, %v5848_v36 }
 0x380   : > { %v7183_v62 = vpop.eup %7182  ;;  %v10474_v26 = vsel %vm5915_vm9, %v5899_v24, %v5914_v25  ;;  %v5748_v9 = vadd.f32 %v5747_v40, %v5746_v49  ;;  %v5749_v17 = vadd.f32 %v7181_v14, %v7179_v35  ;;  %v5802_v51 = vmul.f32 %v7181_v14, %v10401_v12  ;;  %v10477_v18 = vpop.f32.mrf.mxu0 }
 0x381   : > { %v7185_v48 = vpop.eup %7184  ;;  %v5803_v7 = vmul.f32 %v7183_v62, %v10410_v32  ;;  %v5603_v25 = vmax.f32 %v5601_v47, %v5602_v41  ;;  %v5851_v63 = vrot.slane %v5850_v1, 1 }
 0x382   : > { %7188 = vrcp.f32 %v5748_v9  ;;  %v5750_v60 = vadd.f32 %v7183_v62, %v5749_v17  ;;  %v5853_v54 = vadd.f32 %v5802_v51, %v5801_v11  ;;  %v10480_v50 = vpop.f32.mrf.mxu0  ;;  %v5804_v12 = vmul.f32 %v7185_v48, %v10419_v37 }
 0x383   : > { %7190 = vpow2.f32 %v5691_v33  ;;  %v5604_v30 = vrot.slane %v5603_v25, 2  ;;  %v5852_v47 = vadd.f32 %v5851_v63, %v5850_v1 }
 0x384   : > { %v5854_v61 = vadd.f32 %v5853_v54, %v5803_v7  ;;  %v5751_v57 = vadd.f32 %v7185_v48, %v5750_v60  ;;  %7192 = vpow2.f32 %v5693_v21  ;;  %v10483_v56 = vpop.f32.mrf.mxu0 }
 0x385   : > { %7194 = vpow2.f32 %v5695_v27  ;;  %v5605_v32 = vmax.f32 %v5603_v25, %v5604_v30  ;;  %v5608_v8 = vmax.f32 %v10477_v18, %v10483_v56 }
 0x386   : > { %v5752_v42 = vrot.slane %v5751_v57, 4  ;;  %v5855_v31 = vadd.f32 %v5854_v61, %v5804_v12  ;;  %v10485_v4 = vpop.f32.mrf.mxu0 }
 0x387   : > { %v5606_v2 = vrot.slane %v5605_v32, 1 }
 0x388   : > { %v5753_v10 = vadd.f32 %v5752_v42, %v5751_v57  ;;  %v5487_v16 = vpop.f32.mrf.mxu0  ;;  %v5856_v52 = vrot.slane %v5855_v31, 4 }
 0x389   : > { %v10491_v37 = vsel %vm5503_vm3, %v5487_v16, -1e+30  ;;  %v5607_v49 = vmax.f32 %v5605_v32, %v5606_v2 }
 0x38a   : > { %v5754_v38 = vrot.slane %v5753_v10, 2  ;;  %v5609_v45 = vmax.f32 %v5608_v8, %v10491_v37  ;;  %v10494_v15 = vpop.f32.mrf.mxu0  ;;  %v5857_v24 = vadd.f32 %v5856_v52, %v5855_v31 }
 0x38b   : > { %v5641_v43 = vsub.f32 %v10448_v55, %v5607_v49  ;;  %v5642_v13 = vsub.f32 %v10455_v5, %v5607_v49  ;;  %v5643_v36 = vsub.f32 %v10463_v20, %v5607_v49  ;;  %v5644_v44 = vsub.f32 -1e+30, %v5607_v49 }
 0x38c   : > { %v5755_v23 = vadd.f32 %v5754_v38, %v5753_v10  ;;  %v5610_v46 = vmax.f32 %v5609_v45, -1e+30  ;;  %v5491_v34 = vpop.f32.mrf.mxu0  ;;  %v7187_v53 = vpop.eup %7186  ;;  %v5858_v27 = vrot.slane %v5857_v24, 2 }
 0x38d   : > { %v5805_v14 = vmul.f32 %v7187_v53, %v10425_v3  ;;  %v5697_v11 = vmul.f32 1.442695, %v5641_v43  ;;  %v5699_v33 = vmul.f32 1.442695, %v5642_v13  ;;  %v5701_v55 = vmul.f32 1.442695, %v5643_v36 }
 0x38e   : > { %v5756_v35 = vrot.slane %v5755_v23, 1  ;;  %v5611_v40 = vrot.slane %v5610_v46, 4  ;;  %v5703_v17 = vmul.f32 1.442695, %v5644_v44 }
 0x38f   : > { %v7189_v58 = vpop.eup %7188  ;;  %7196 = vpow2.f32 %v5697_v11 }
 0x390   : > { %v7191_v21 = vpop.eup %7190  ;;  %v5900_v62 = vmul.f32 %v7189_v58, %v5852_v47  ;;  %v5757_v9 = vadd.f32 %v5756_v35, %v5755_v23  ;;  %v5612_v48 = vmax.f32 %v5610_v46, %v5611_v40 }
 0x391   : > { %v7193_v5 = vpop.eup %7192  ;;  %v5758_v51 = vadd.f32 %v7191_v21, %v7187_v53  ;;  %v5806_v20 = vmul.f32 %v7191_v21, %v10429_v22  ;;  %v5859_v22 = vadd.f32 %v5858_v27, %v5857_v24 }
 0x392   : > { %v7195_v6 = vpop.eup %7194  ;;  %7198 = vrcp.f32 %v5757_v9  ;;  %v5918_v41 = vsel %vm5917_vm10, %v5900_v62, %v10474_v26  ;;  %v5807_v60 = vmul.f32 %v7193_v5, %v10438_v39  ;;  %v5613_v54 = vrot.slane %v5612_v48, 2 }
 0x393   : > { %v5759_v3 = vadd.f32 %v7193_v5, %v5758_v51  ;;  %v5862_v7 = vadd.f32 %v5806_v20, %v5805_v14  ;;  %7200 = vpow2.f32 %v5699_v33  ;;  %v5808_v57 = vmul.f32 %v7195_v6, %v10443_v59 }
 0x394   : > { %7202 = vpow2.f32 %v5701_v55  ;;  %v5614_v12 = vmax.f32 %v5612_v48, %v5613_v54  ;;  %v5860_v32 = vrot.slane %v5859_v22, 1 }
 0x395   : > { %v5863_v25 = vadd.f32 %v5862_v7, %v5807_v60  ;;  %v5760_v61 = vadd.f32 %v7195_v6, %v5759_v3  ;;  %7204 = vpow2.f32 %v5703_v17 }
 0x396   : > { %v5615_v42 = vrot.slane %v5614_v12, 1  ;;  %v5861_v52 = vadd.f32 %v5860_v32, %v5859_v22 }
 0x397   : > { %v5761_v30 = vrot.slane %v5760_v61, 4  ;;  %v5864_v1 = vadd.f32 %v5863_v25, %v5808_v57 }
 0x398   : > { %v5616_v10 = vmax.f32 %v5614_v12, %v5615_v42 }
 0x399   : > { %v5762_v31 = vadd.f32 %v5761_v30, %v5760_v61  ;;  %v5865_v26 = vrot.slane %v5864_v1, 4 }
 0x39a   : > { %v5645_v39 = vsub.f32 %v10477_v18, %v5616_v10  ;;  %v5646_v16 = vsub.f32 %v10483_v56, %v5616_v10  ;;  %v5647_v2 = vsub.f32 %v10491_v37, %v5616_v10  ;;  %v5648_v38 = vsub.f32 -1e+30, %v5616_v10 }
 0x39b   : > { %v5763_v8 = vrot.slane %v5762_v31, 2  ;;  %v5866_v45 = vadd.f32 %v5865_v26, %v5864_v1 }
 0x39c   : > { %v7197_v59 = vpop.eup %7196  ;;  %v5705_v49 = vmul.f32 1.442695, %v5645_v39  ;;  %v5707_v23 = vmul.f32 1.442695, %v5646_v16  ;;  %v5709_v44 = vmul.f32 1.442695, %v5647_v2 }
 0x39d   : > { %v5764_v63 = vadd.f32 %v5763_v8, %v5762_v31  ;;  %v5809_v43 = vmul.f32 %v7197_v59, %v10452_v19  ;;  %v5711_v47 = vmul.f32 1.442695, %v5648_v38  ;;  %v5867_v24 = vrot.slane %v5866_v45, 2 }
 0x39e   : > { %7206 = vpow2.f32 %v5705_v49 }
 0x39f   : > { %v7199_v46 = vpop.eup %7198  ;;  %v5765_v34 = vrot.slane %v5764_v63, 1  ;;  %7208 = vpow2.f32 %v5707_v23  ;;  %v5868_v62 = vadd.f32 %v5867_v24, %v5866_v45 }
 0x3a0   : > { %v7201_v13 = vpop.eup %7200  ;;  %v5901_v36 = vmul.f32 %v7199_v46, %v5861_v52 }
 0x3a1   : > { %v7203_v18 = vpop.eup %7202  ;;  %v5766_v53 = vadd.f32 %v5765_v34, %v5764_v63  ;;  %v5767_v56 = vadd.f32 %v7201_v13, %v7197_v59  ;;  %v5810_v37 = vmul.f32 %v7201_v13, %v10457_v29  ;;  %v5869_v17 = vrot.slane %v5868_v62, 1 }
 0x3a2   : > { %v7205_v35 = vpop.eup %7204  ;;  %v5920_v40 = vsel %vm3238_vm1, %v5901_v36, %v5918_v41  ;;  %v5811_v14 = vmul.f32 %v7203_v18, %v10466_v28 }
 0x3a3   : > { %7210 = vrcp.f32 %v5766_v53  ;;  %v5768_v58 = vadd.f32 %v7203_v18, %v5767_v56  ;;  %v5871_v19 = vadd.f32 %v5810_v37, %v5809_v43  ;;  %v5812_v21 = vmul.f32 %v7205_v35, %v10471_v0 }
 0x3a4   : > { %7212 = vpow2.f32 %v5709_v44  ;;  %v5870_v28 = vadd.f32 %v5869_v17, %v5868_v62 }
 0x3a5   : > { %v5872_v11 = vadd.f32 %v5871_v19, %v5811_v14  ;;  %v5769_v33 = vadd.f32 %v7205_v35, %v5768_v58  ;;  %7214 = vpow2.f32 %v5711_v47 }
 0x3a7   : > { %v5770_v9 = vrot.slane %v5769_v33, 4  ;;  %v5873_v29 = vadd.f32 %v5872_v11, %v5812_v21 }
 0x3a9   : > { %v5771_v55 = vadd.f32 %v5770_v9, %v5769_v33  ;;  %v5874_v51 = vrot.slane %v5873_v29, 4 }
 0x3ab   : > { %v5772_v5 = vrot.slane %v5771_v55, 2  ;;  %v7207_v20 = vpop.eup %7206  ;;  %v5875_v3 = vadd.f32 %v5874_v51, %v5873_v29 }
 0x3ac   : > { %v5813_v6 = vmul.f32 %v7207_v20, %v10480_v50  ;;  %v7209_v27 = vpop.eup %7208  ;;  %v5493_v50 = vpop.f32.mrf.mxu0 }
 0x3ad   : > { %v5773_v48 = vadd.f32 %v5772_v5, %v5771_v55  ;;  %v5776_v7 = vadd.f32 %v7209_v27, %v7207_v20  ;;  %v5814_v0 = vmul.f32 %v7209_v27, %v10485_v4  ;;  %v5876_v1 = vrot.slane %v5875_v3, 2 }
 0x3af   : > { %v5774_v41 = vrot.slane %v5773_v48, 1  ;;  %v5880_v30 = vadd.f32 %v5814_v0, %v5813_v6  ;;  %v5877_v39 = vadd.f32 %v5876_v1, %v5875_v3 }
 0x3b0   : > { %v7211_v60 = vpop.eup %7210 }
 0x3b1   : > { %v7213_v54 = vpop.eup %7212  ;;  %v5902_v25 = vmul.f32 %v7211_v60, %v5870_v28  ;;  %v5775_v61 = vadd.f32 %v5774_v41, %v5773_v48  ;;  %v5878_v63 = vrot.slane %v5877_v39, 1 }
 0x3b2   : > { %v7215_v57 = vpop.eup %7214  ;;  %v5777_v22 = vadd.f32 %v7213_v54, %v5776_v7  ;;  %v5815_v12 = vmul.f32 %v7213_v54, %v10494_v15 }
 0x3b3   : > { %7216 = vrcp.f32 %v5775_v61  ;;  %v5922_v42 = vsel %vm5921_vm11, %v5902_v25, %v5920_v40  ;;  %v5816_v26 = vmul.f32 %v7215_v57, %v5493_v50  ;;  %v5879_v52 = vadd.f32 %v5878_v63, %v5877_v39 }
 0x3b4   : > { %v5881_v31 = vadd.f32 %v5880_v30, %v5815_v12  ;;  %v5778_v32 = vadd.f32 %v7215_v57, %v5777_v22 }
 0x3b6   : > { %v5882_v10 = vadd.f32 %v5881_v31, %v5816_v26  ;;  %v5779_v8 = vrot.slane %v5778_v32, 4 }
 0x3b8   : > { %v5780_v4 = vadd.f32 %v5779_v8, %v5778_v32  ;;  %v5883_v16 = vrot.slane %v5882_v10, 4 }
 0x3ba   : > { %v5781_v2 = vrot.slane %v5780_v4, 2  ;;  %v5884_v59 = vadd.f32 %v5883_v16, %v5882_v10 }
 0x3bc   : > { %v5782_v38 = vadd.f32 %v5781_v2, %v5780_v4  ;;  %v5885_v46 = vrot.slane %v5884_v59, 2 }
 0x3be   : > { %v5783_v15 = vrot.slane %v5782_v38, 1  ;;  %v5886_v43 = vadd.f32 %v5885_v46, %v5884_v59 }
 0x3c0   : > { %v7217_v45 = vpop.eup %7216  ;;  %v5784_v49 = vadd.f32 %v5783_v15, %v5782_v38  ;;  %v5887_v13 = vrot.slane %v5886_v43, 1 }
 0x3c1   : > { %v5903_v23 = vmul.f32 %v7217_v45, %v5879_v52 }
 0x3c2   : > { %7218 = vrcp.f32 %v5784_v49  ;;  %v5888_v36 = vadd.f32 %v5887_v13, %v5886_v43 }
 0x3c3   : > { %v5924_v34 = vsel %vm5923_vm12, %v5903_v23, %v5922_v42 }
 0x3cf   : > { %v7219_v44 = vpop.eup %7218 }
 0x3d0   : > { %v5904_v18 = vmul.f32 %v7219_v44, %v5888_v36 }
 0x3d2   : > { %v5926_v53 = vsel %vm5925_vm13, %v5904_v18, %v5924_v34 }
 0x3d3   : > { %5928 = vst [vmem:[%s193_s5] sm:$0xff] %v5926_v53 }
 0x3d4   : > { %7281 = shalt.err (!%p7278_p3)
}
 0x3d5   : > { %s7282_s14 = scalar_lea.hbm %s10520_s9, 128  ;;  %s7286_s20 = scalar_lea.hbm %s10559_s4, 256 }
 0x3d6   : > { %p7283_p4 = scmp.ne.s32.totalorder %s10520_s9, %s7282_s14  ;;  %p7287_p9 = scmp.lt.s32.totalorder %s10520_s9, %s10559_s4 }
 0x3d7   : > { %p7288_p10 = scmp.lt.s32.totalorder %s7286_s20, %s7282_s14 }
 0x3d8   : > { %p7284_p7 = pnand %p7283_p4, %p7395_p5 }
 0x3d9   : > { %p7289_p11 = por %p7288_p10, %p7287_p9 }
 0x3da   : > { %p7285_p8 = pneg %p7284_p7 }
 0x3dc   : > { %p7290_p12 = pnand %p7289_p11, %p7285_p8 }
 0x3de   : > { %7293 = shalt.err (!%p7290_p12)
}
 0x3df   : > { %6981 = dma.vmem_to_hbm [thread:$0]  (%p7395_p5), %s5944_s6, 128, %s10520_s9, %s5930_s10  }
 0x3e0 PF: > { %p6987_p13 = scmp.ge.s32.totalorder %s7328_s18, 2  ;;  %s5955_s29 = sand.u32 1, %s7316_s15  }
 0x3e1   : > { %s5956_s30 = scalar_lea.sflag [#allocation3], %s5955_s29 }
 0x3e2   : > { %p6984_p0 = pnand %p6987_p13, %p7399_p6 }
 0x3e4   : > { %p6985_p1 = pneg %p6984_p0 }
 0x3e6   : > { %7311 = dma.done.wait (%p6985_p1), %s5956_s30, 128  }
 0x3e7   : > { %7313 = vsyncadd (%p6985_p1), %s5956_s30, 4294967168  ;;  %p14_p2 = scmp.ge.s32.totalorder %s7382_s21, 4   ;;  %s10999_s15 = smov %s7320_s16 }
 0x3e8   : > { %s11000_s16 = smov %s7324_s17  ;;  %s11001_s17 = smov %s7393_s24 }
 0x3e9   : > { %s11002_s18 = smov %s7382_s21  ;;  %16 = sbr.rel (!%p14_p2) target bundleno = 3 (0x3), region = 80 }
 0x3ee   :  { %5961 = vsyncpa [#allocation3], 1 }
 0x3ef   :  { %5963 = vsyncpa [#allocation3 + $0x1], 1 }

</bundles_post_ra>
